<compile_context>
chip_gen: v6e
topology: v6e:2x2x1
jax: 0.10.0
libtpu: 0.0.40
codegen_flags: <defaults>
</compile_context>

<pallas_src>
import functools
import math

import jax
import jax.numpy as jnp
from jax.experimental import pallas as pl
from jax.experimental.pallas import tpu as pltpu

# ----- config (stand-in for `args`) -----
B, T, C, IMG = 2, 8, 3, 16        # video: B x T x 3 x IMG x IMG
QPV, SEQ_Q = 3, 8                 # questions per video, question seq len
FRAME_FEAT = 512                  # ResNet18 feature dim (fixed by the module)
DV = 32                           # video transformer input_dim == out_dim
NH, FF, NLAYERS, MAX_LEN = 4, 64, 2, 64
DQ = 48                           # ques_models.out_dim (BERT hidden stand-in)
H = 32                            # classifier.hidden_dim
OUT = 16                          # classifier.out_dim
SV = T + 1                        # video seq len after cls token
CIN = C * IMG * IMG
LN_EPS = 1e-5


# ----- small helpers traced inside the kernel (all f32) -----
def _softmax(x, axis=-1):
    m = jnp.max(x, axis=axis, keepdims=True)
    e = jnp.exp(x - m)
    return e * pl.reciprocal(jnp.sum(e, axis=axis, keepdims=True), approx=True)


def _layer_norm(x, g, b):
    m = jnp.mean(x, axis=-1, keepdims=True)
    v = jnp.mean((x - m) ** 2, axis=-1, keepdims=True)
    return (x - m) * jax.lax.rsqrt(v + LN_EPS) * g + b


# ----------------------------------------------------------------------------
# Single fused kernel: (normalize+frame+proj fused matmul) -> PE/CLS ->
# TransformerEncoder (NLAYERS post-norm layers, fused QKV, single W_o matmul)
# -> folded ClassifierAttn for all QPV questions.
# Grid: (B,) with "parallel" semantics (megacore on v7x).
# ----------------------------------------------------------------------------
def _vqa_fused_kernel(video_ref, ques_ref, mask_ref,
                      fw_ref, fb_ref, pe_ref, cls_ref,
                      wqkv_ref, bqkv_ref, wo_ref, bo_ref,
                      ln1g_ref, ln1b_ref, w1_ref, b1_ref, w2_ref, b2_ref,
                      ln2g_ref, ln2b_ref,
                      ckv_ref, ckvb_ref, cq_ref, cqb_ref,
                      cw1a_ref, cw1q_ref, cb1_ref, cw2_ref, cb2_ref,
                      o_ref, seq_ref, ctx_ref, *, nh, nlayers):
    # --- frame features (normalize + frame + proj folded into one bf16 matmul) ---
    x_img = video_ref[...].astype(jnp.bfloat16)                               # (T, CIN)
    vid = (jnp.dot(x_img, fw_ref[...],
                   preferred_element_type=jnp.float32) + fb_ref[...])         # (T, DV)
    vid = vid + pe_ref[...]                                                   # PositionEmbedding

    # --- [frames; CLS] sequence: frames sublane-aligned at rows 0..T-1, CLS at row T ---
    t = vid.shape[0]
    seq_ref[pl.ds(0, t), :] = vid
    seq_ref[t:t + 1, :] = cls_ref[...]
    x = seq_ref[...]                                                          # (SV, DV) f32

    d = x.shape[-1]
    dh = d // nh
    inv_sqrt_dh = 1.0 / math.sqrt(dh)

    # --- TransformerEncoder (batch_first, post-norm, ReLU, dropout=0) ---
    for li in range(nlayers):
        qkv = (jnp.dot(x.astype(jnp.bfloat16), wqkv_ref[li],
                       preferred_element_type=jnp.float32) + bqkv_ref[li])    # (SV, 3*DV)
        q = qkv[:, 0:d].astype(jnp.bfloat16)
        k = qkv[:, d:2 * d].astype(jnp.bfloat16)
        v = qkv[:, 2 * d:3 * d].astype(jnp.bfloat16)
        for h in range(nh):
            sl = slice(h * dh, (h + 1) * dh)
            s = jnp.einsum("sd,td->st", q[:, sl], k[:, sl],
                           preferred_element_type=jnp.float32) * inv_sqrt_dh
            p = _softmax(s, axis=-1).astype(jnp.bfloat16)
            # head context written into its lane slice of the (SV, DV) scratch
            ctx_ref[:, sl] = jnp.dot(p, v[:, sl], preferred_element_type=jnp.float32)
        attn = (jnp.dot(ctx_ref[...].astype(jnp.bfloat16), wo_ref[li],
                        preferred_element_type=jnp.float32) + bo_ref[li])     # one W_o matmul
        y = _layer_norm(x + attn, ln1g_ref[li], ln1b_ref[li])
        hid = jnp.maximum(
            jnp.dot(y.astype(jnp.bfloat16), w1_ref[li],
                    preferred_element_type=jnp.float32) + b1_ref[li], 0.0)
        ff = (jnp.dot(hid.astype(jnp.bfloat16), w2_ref[li],
                      preferred_element_type=jnp.float32) + b2_ref[li])
        x = _layer_norm(y + ff, ln2g_ref[li], ln2b_ref[li])

    # --- ClassifierAttn (algebraically folded), all QPV questions at once ---
    hdim = cw1a_ref.shape[0]
    xb = x.astype(jnp.bfloat16)
    kv = (jnp.dot(xb, ckv_ref[...], preferred_element_type=jnp.float32)
          + ckvb_ref[...])                                                    # (SV, 3H)
    key = kv[:, 0:2 * hdim]                                                   # (SV, 2H)
    val = kv[:, 2 * hdim:3 * hdim]                                            # (SV, H)
    qtok = ques_ref[...].astype(jnp.bfloat16)                                 # (QPV, DQ)
    query = (jnp.dot(qtok, cq_ref[...], preferred_element_type=jnp.float32)
             + cqb_ref[...])                                                  # (QPV, 2H)
    scores = jnp.einsum("qf,kf->qk", query.astype(jnp.bfloat16),
                        key.astype(jnp.bfloat16),
                        preferred_element_type=jnp.float32) * (1.0 / math.sqrt(2.0 * hdim))
    p = _softmax(scores, axis=-1)                        # softmax over video positions
    attended = jnp.dot(p.astype(jnp.bfloat16), val.astype(jnp.bfloat16),
                       preferred_element_type=jnp.float32)                    # (QPV, H)
    # lin1(concat([attended, qproj])) with the qproj half pre-folded into cw1q/cb1:
    hid = jnp.maximum(
        jnp.dot(attended.astype(jnp.bfloat16), cw1a_ref[...],
                preferred_element_type=jnp.float32)
        + jnp.dot(qtok, cw1q_ref[...], preferred_element_type=jnp.float32)
        + cb1_ref[...], 0.0)
    logits = (jnp.dot(hid.astype(jnp.bfloat16), cw2_ref[...],
                      preferred_element_type=jnp.float32) + cb2_ref[...])
    logits = logits + mask_ref[...]
    # exact final softmax (returned probabilities sum to 1)
    m = jnp.max(logits, axis=-1, keepdims=True)
    e = jnp.exp(logits - m)
    o_ref[...] = e / jnp.sum(e, axis=-1, keepdims=True)


def _full_spec(a):
    nd = a.ndim
    return pl.BlockSpec(a.shape, lambda b, _nd=nd: (0,) * _nd)


def vqa_forward(params, video, ques_enc, output_mask):
    video_r = video.reshape(B, T, CIN).astype(jnp.float32)
    ques0 = ques_enc[:, :, 0, :].astype(jnp.float32)          # (B, QPV, DQ) CLS token
    mask = output_mask.astype(jnp.float32)                    # (B, QPV, OUT)
    pe_t = params["pe"][:T]                                   # (T, DV)
    L = params["layers"]
    Cf = params["clf"]
    weight_args = [
        params["fw"], params["fb"], pe_t, params["cls_token"],
        L["wqkv"], L["bqkv"], L["wo"], L["bo"],
        L["ln1_g"], L["ln1_b"], L["w1"], L["b1"], L["w2"], L["b2"],
        L["ln2_g"], L["ln2_b"],
        Cf["ckv"], Cf["ckvb"], Cf["cq"], Cf["cqb"],
        Cf["cw1a"], Cf["cw1q"], Cf["cb1"], Cf["cw2"], Cf["cb2"],
    ]
    in_specs = [
        pl.BlockSpec((pl.Squeezed(), T, CIN), lambda b: (b, 0, 0)),
        pl.BlockSpec((pl.Squeezed(), QPV, DQ), lambda b: (b, 0, 0)),
        pl.BlockSpec((pl.Squeezed(), QPV, OUT), lambda b: (b, 0, 0)),
    ] + [_full_spec(w) for w in weight_args]

    return pl.pallas_call(
        functools.partial(_vqa_fused_kernel, nh=NH, nlayers=NLAYERS),
        out_shape=jax.ShapeDtypeStruct((B, QPV, OUT), jnp.float32),
        grid=(B,),
        in_specs=in_specs,
        out_specs=pl.BlockSpec((pl.Squeezed(), QPV, OUT), lambda b: (b, 0, 0)),
        scratch_shapes=[pltpu.VMEM((SV, DV), jnp.float32),    # [frames; CLS] sequence
                        pltpu.VMEM((SV, DV), jnp.float32)],   # per-head context assembly
        compiler_params=pltpu.CompilerParams(dimension_semantics=("parallel",)),
    )(video_r, ques0, mask, *weight_args)


# ----------------------------------------------------------------------------
# Parameter init (deterministic) — exact algebraic folds done here, matmul
# weights stored in bf16, biases / LayerNorm params in f32.
# ----------------------------------------------------------------------------
def _init_linear(key, din, dout, bias=True, scale=0.05):
    kw, kb = jax.random.split(key)
    w = scale * jax.random.normal(kw, (din, dout), jnp.float32)
    if bias:
        return w, scale * jax.random.normal(kb, (1, dout), jnp.float32)
    return w


def make_position_embedding(max_len, dim):
    seq = jnp.exp(-jnp.arange(0, dim, 2, dtype=jnp.float32) / float(dim)
                  * math.log(10000.0))
    pos = jnp.arange(0, max_len, dtype=jnp.float32)
    ang = pos[:, None] * seq[None, :]
    return jnp.concatenate([jnp.sin(ang), jnp.cos(ang)], axis=-1)   # (max_len, dim)


def init_params(key):
    keys = jax.random.split(key, 4 + NLAYERS)
    frame_w, frame_b = _init_linear(keys[0], CIN, FRAME_FEAT)
    proj_w, proj_b = _init_linear(keys[1], FRAME_FEAT, DV)
    cls_token = 0.05 * jax.random.normal(keys[2], (1, DV), jnp.float32)

    # Frame linear stand-in and projection fused exactly: x@Wf@Wp = x@(Wf@Wp).
    fw = frame_w @ proj_w                            # (CIN, DV)
    fb = frame_b @ proj_w + proj_b                   # (1, DV)
    # Fold Resnet3D.forward ImageNet normalize into the same matrix:
    # ((x - m)/s) @ W + b == x @ (W / s[:,None]) + (b - (m/s) @ W)
    mean = jnp.repeat(jnp.array([0.485, 0.456, 0.406], jnp.float32), IMG * IMG)
    std = jnp.repeat(jnp.array([0.229, 0.224, 0.225], jnp.float32), IMG * IMG)
    fb = fb - ((mean / std)[None, :] @ fw)
    fw = fw / std[:, None]

    layer_list = []
    for li in range(NLAYERS):
        lk = jax.random.split(keys[3 + li], 6)
        wq, bq = _init_linear(lk[0], DV, DV)
        wk, bk = _init_linear(lk[1], DV, DV)
        wv, bv = _init_linear(lk[2], DV, DV)
        wo, bo = _init_linear(lk[3], DV, DV)
        w1, b1 = _init_linear(lk[4], DV, FF)
        w2, b2 = _init_linear(lk[5], FF, DV)
        layer_list.append(dict(
            wqkv=jnp.concatenate([wq, wk, wv], axis=1),      # (DV, 3*DV) fused QKV
            bqkv=jnp.concatenate([bq, bk, bv], axis=1),      # (1, 3*DV)
            wo=wo, bo=bo,
            ln1_g=jnp.ones((1, DV), jnp.float32), ln1_b=jnp.zeros((1, DV), jnp.float32),
            w1=w1, b1=b1, w2=w2, b2=b2,
            ln2_g=jnp.ones((1, DV), jnp.float32), ln2_b=jnp.zeros((1, DV), jnp.float32)))
    layers = {name: jnp.stack([lp[name] for lp in layer_list], axis=0)
              for name in layer_list[0]}
    # bf16 storage for the MXU-operand weights (f32 accumulation in-kernel)
    for name in ("wqkv", "wo", "w1", "w2"):
        layers[name] = layers[name].astype(jnp.bfloat16)

    ck = jax.random.split(keys[3 + NLAYERS], 7)
    wvp, bvp = _init_linear(ck[0], DV, H)
    wqp, bqp = _init_linear(ck[1], DQ, H)
    wk_c = _init_linear(ck[2], H, 2 * H, bias=False)
    wv_c = _init_linear(ck[3], H, H, bias=False)
    wq_c = _init_linear(ck[4], H, 2 * H, bias=False)
    w1c, b1c = _init_linear(ck[5], 2 * H, H)
    w2c, b2c = _init_linear(ck[6], H, OUT)
    # Exact classifier folds (no nonlinearity between the folded linears):
    wkv = jnp.concatenate([wk_c, wv_c], axis=1)              # (H, 3H)
    clf = dict(
        ckv=(wvp @ wkv).astype(jnp.bfloat16),                # (DV, 3H): key|val from x
        ckvb=bvp @ wkv,                                      # (1, 3H)
        cq=(wqp @ wq_c).astype(jnp.bfloat16),                # (DQ, 2H): query from ques
        cqb=bqp @ wq_c,                                      # (1, 2H)
        cw1a=w1c[:H, :].astype(jnp.bfloat16),                # (H, H): lin1, attended half
        cw1q=(wqp @ w1c[H:, :]).astype(jnp.bfloat16),        # (DQ, H): lin1, question half
        cb1=bqp @ w1c[H:, :] + b1c,                          # (1, H)
        cw2=w2c.astype(jnp.bfloat16), cb2=b2c)
    return dict(fw=fw.astype(jnp.bfloat16), fb=fb,
                cls_token=cls_token, layers=layers, clf=clf,
                pe=make_position_embedding(MAX_LEN, DV))


if __name__ == "__main__":
    key = jax.random.PRNGKey(0)
    kp, kv, kq, km = jax.random.split(key, 4)
    params = init_params(kp)

    video = jax.random.normal(kv, (B, T, C, IMG, IMG), jnp.float32)
    # TODO(synk): pretrained BERT TextEncoder replaced by synthetic encodings.
    ques_enc = jax.random.normal(kq, (B, QPV, SEQ_Q, DQ), jnp.float32)
    output_mask = jnp.where(jax.random.uniform(km, (B, QPV, OUT)) < 0.8,
                            0.0, -1e9).astype(jnp.float32)

    fwd = jax.jit(vqa_forward)
    out = jax.block_until_ready(fwd(params, video, ques_enc, output_mask))
    assert out.shape == (B, QPV, OUT)
    assert bool(jnp.all(jnp.isfinite(out)))
    print("KERNEL_OK")
</pallas_src>

<mosaic_0001>
module attributes {stable_mosaic.version = 11 : i64} {
  func.func @_vqa_fused_kernel(%arg0: i32, %arg1: memref<1x8x768xf32, #tpu.memory_space<vmem>>, %arg2: memref<1x3x48xf32, #tpu.memory_space<vmem>>, %arg3: memref<1x3x16xf32, #tpu.memory_space<vmem>>, %arg4: memref<768x32xbf16, #tpu.memory_space<vmem>>, %arg5: memref<1x32xf32, #tpu.memory_space<vmem>>, %arg6: memref<8x32xf32, #tpu.memory_space<vmem>>, %arg7: memref<1x32xf32, #tpu.memory_space<vmem>>, %arg8: memref<2x32x96xbf16, #tpu.memory_space<vmem>>, %arg9: memref<2x1x96xf32, #tpu.memory_space<vmem>>, %arg10: memref<2x32x32xbf16, #tpu.memory_space<vmem>>, %arg11: memref<2x1x32xf32, #tpu.memory_space<vmem>>, %arg12: memref<2x1x32xf32, #tpu.memory_space<vmem>>, %arg13: memref<2x1x32xf32, #tpu.memory_space<vmem>>, %arg14: memref<2x32x64xbf16, #tpu.memory_space<vmem>>, %arg15: memref<2x1x64xf32, #tpu.memory_space<vmem>>, %arg16: memref<2x64x32xbf16, #tpu.memory_space<vmem>>, %arg17: memref<2x1x32xf32, #tpu.memory_space<vmem>>, %arg18: memref<2x1x32xf32, #tpu.memory_space<vmem>>, %arg19: memref<2x1x32xf32, #tpu.memory_space<vmem>>, %arg20: memref<32x96xbf16, #tpu.memory_space<vmem>>, %arg21: memref<1x96xf32, #tpu.memory_space<vmem>>, %arg22: memref<48x64xbf16, #tpu.memory_space<vmem>>, %arg23: memref<1x64xf32, #tpu.memory_space<vmem>>, %arg24: memref<32x32xbf16, #tpu.memory_space<vmem>>, %arg25: memref<48x32xbf16, #tpu.memory_space<vmem>>, %arg26: memref<1x32xf32, #tpu.memory_space<vmem>>, %arg27: memref<32x16xbf16, #tpu.memory_space<vmem>>, %arg28: memref<1x16xf32, #tpu.memory_space<vmem>>, %arg29: memref<1x3x16xf32, #tpu.memory_space<vmem>>, %arg30: memref<9x32xf32, #tpu.memory_space<vmem>>, %arg31: memref<9x32xf32, #tpu.memory_space<vmem>>) attributes {dimension_semantics = [#tpu.dimension_semantics<parallel>], iteration_bounds = array<i64: 2>, scalar_prefetch = 0 : i64, scratch_operands = 2 : i64, tpu.core_type = #tpu.core_type<tc>, window_params = [{transform_indices = @transform_0, window_bounds = array<i64: 1, 8, 768>}, {transform_indices = @transform_1, window_bounds = array<i64: 1, 3, 48>}, {transform_indices = @transform_2, window_bounds = array<i64: 1, 3, 16>}, {pipeline_mode = #tpu.pipeline_mode<synchronous>, transform_indices = @transform_3, window_bounds = array<i64: 768, 32>}, {pipeline_mode = #tpu.pipeline_mode<synchronous>, transform_indices = @transform_4, window_bounds = array<i64: 1, 32>}, {pipeline_mode = #tpu.pipeline_mode<synchronous>, transform_indices = @transform_5, window_bounds = array<i64: 8, 32>}, {pipeline_mode = #tpu.pipeline_mode<synchronous>, transform_indices = @transform_6, window_bounds = array<i64: 1, 32>}, {pipeline_mode = #tpu.pipeline_mode<synchronous>, transform_indices = @transform_7, window_bounds = array<i64: 2, 32, 96>}, {pipeline_mode = #tpu.pipeline_mode<synchronous>, transform_indices = @transform_8, window_bounds = array<i64: 2, 1, 96>}, {pipeline_mode = #tpu.pipeline_mode<synchronous>, transform_indices = @transform_9, window_bounds = array<i64: 2, 32, 32>}, {pipeline_mode = #tpu.pipeline_mode<synchronous>, transform_indices = @transform_10, window_bounds = array<i64: 2, 1, 32>}, {pipeline_mode = #tpu.pipeline_mode<synchronous>, transform_indices = @transform_11, window_bounds = array<i64: 2, 1, 32>}, {pipeline_mode = #tpu.pipeline_mode<synchronous>, transform_indices = @transform_12, window_bounds = array<i64: 2, 1, 32>}, {pipeline_mode = #tpu.pipeline_mode<synchronous>, transform_indices = @transform_13, window_bounds = array<i64: 2, 32, 64>}, {pipeline_mode = #tpu.pipeline_mode<synchronous>, transform_indices = @transform_14, window_bounds = array<i64: 2, 1, 64>}, {pipeline_mode = #tpu.pipeline_mode<synchronous>, transform_indices = @transform_15, window_bounds = array<i64: 2, 64, 32>}, {pipeline_mode = #tpu.pipeline_mode<synchronous>, transform_indices = @transform_16, window_bounds = array<i64: 2, 1, 32>}, {pipeline_mode = #tpu.pipeline_mode<synchronous>, transform_indices = @transform_17, window_bounds = array<i64: 2, 1, 32>}, {pipeline_mode = #tpu.pipeline_mode<synchronous>, transform_indices = @transform_18, window_bounds = array<i64: 2, 1, 32>}, {pipeline_mode = #tpu.pipeline_mode<synchronous>, transform_indices = @transform_19, window_bounds = array<i64: 32, 96>}, {pipeline_mode = #tpu.pipeline_mode<synchronous>, transform_indices = @transform_20, window_bounds = array<i64: 1, 96>}, {pipeline_mode = #tpu.pipeline_mode<synchronous>, transform_indices = @transform_21, window_bounds = array<i64: 48, 64>}, {pipeline_mode = #tpu.pipeline_mode<synchronous>, transform_indices = @transform_22, window_bounds = array<i64: 1, 64>}, {pipeline_mode = #tpu.pipeline_mode<synchronous>, transform_indices = @transform_23, window_bounds = array<i64: 32, 32>}, {pipeline_mode = #tpu.pipeline_mode<synchronous>, transform_indices = @transform_24, window_bounds = array<i64: 48, 32>}, {pipeline_mode = #tpu.pipeline_mode<synchronous>, transform_indices = @transform_25, window_bounds = array<i64: 1, 32>}, {pipeline_mode = #tpu.pipeline_mode<synchronous>, transform_indices = @transform_26, window_bounds = array<i64: 32, 16>}, {pipeline_mode = #tpu.pipeline_mode<synchronous>, transform_indices = @transform_27, window_bounds = array<i64: 1, 16>}, {transform_indices = @transform_28, window_bounds = array<i64: 1, 3, 16>}]} {
    %c0 = arith.constant 0 : index
    %c0_0 = arith.constant 0 : index
    %c0_1 = arith.constant 0 : index
    %0 = vector.load %arg1[%c0, %c0_0, %c0_1] : memref<1x8x768xf32, #tpu.memory_space<vmem>>, vector<1x8x768xf32>
    %1 = vector.shape_cast %0 : vector<1x8x768xf32> to vector<8x768xf32>
    %2 = arith.truncf %1 : vector<8x768xf32> to vector<8x768xbf16>
    %c0_2 = arith.constant 0 : index
    %c0_3 = arith.constant 0 : index
    %3 = vector.load %arg4[%c0_2, %c0_3] : memref<768x32xbf16, #tpu.memory_space<vmem>>, vector<768x32xbf16>
    %cst = arith.constant dense<0.000000e+00> : vector<8x32xf32>
    %4 = tpu.matmul %2, %3, %cst {dimension_numbers = #tpu.dot_dimension_numbers<[1], [0], [0], [1], [0, 0, 1, 1], [], []>} : vector<8x768xbf16>, vector<768x32xbf16>, vector<8x32xf32> -> vector<8x32xf32>
    %c0_4 = arith.constant 0 : index
    %c0_5 = arith.constant 0 : index
    %5 = vector.load %arg5[%c0_4, %c0_5] : memref<1x32xf32, #tpu.memory_space<vmem>>, vector<1x32xf32>
    %6 = vector.broadcast %5 : vector<1x32xf32> to vector<8x32xf32>
    %7 = arith.addf %4, %6 : vector<8x32xf32>
    %c0_6 = arith.constant 0 : index
    %c0_7 = arith.constant 0 : index
    %8 = vector.load %arg6[%c0_6, %c0_7] : memref<8x32xf32, #tpu.memory_space<vmem>>, vector<8x32xf32>
    %9 = arith.addf %7, %8 : vector<8x32xf32>
    %c0_8 = arith.constant 0 : index
    %c0_9 = arith.constant 0 : index
    %10 = vector.load %arg30[%c0_8, %c0_9] : memref<9x32xf32, #tpu.memory_space<vmem>>, vector<8x32xf32>
    tpu.vector_store %arg30[%c0_8, %c0_9], %9 {strides = array<i32>} : memref<9x32xf32, #tpu.memory_space<vmem>>, vector<8x32xf32>,
    %c0_10 = arith.constant 0 : index
    %c0_11 = arith.constant 0 : index
    %11 = vector.load %arg7[%c0_10, %c0_11] : memref<1x32xf32, #tpu.memory_space<vmem>>, vector<1x32xf32>
    %c8 = arith.constant 8 : index
    %c0_12 = arith.constant 0 : index
    %12 = vector.load %arg30[%c8, %c0_12] : memref<9x32xf32, #tpu.memory_space<vmem>>, vector<1x32xf32>
    tpu.vector_store %arg30[%c8, %c0_12], %11 {strides = array<i32>} : memref<9x32xf32, #tpu.memory_space<vmem>>, vector<1x32xf32>,
    %c0_13 = arith.constant 0 : index
    %c0_14 = arith.constant 0 : index
    %13 = vector.load %arg30[%c0_13, %c0_14] : memref<9x32xf32, #tpu.memory_space<vmem>>, vector<9x32xf32>
    %14 = arith.truncf %13 : vector<9x32xf32> to vector<9x32xbf16>
    %c0_15 = arith.constant 0 : index
    %c0_16 = arith.constant 0 : index
    %c0_17 = arith.constant 0 : index
    %15 = vector.load %arg8[%c0_15, %c0_16, %c0_17] : memref<2x32x96xbf16, #tpu.memory_space<vmem>>, vector<1x32x96xbf16>
    %16 = vector.shape_cast %15 : vector<1x32x96xbf16> to vector<32x96xbf16>
    %cst_18 = arith.constant dense<0.000000e+00> : vector<9x96xf32>
    %17 = tpu.matmul %14, %16, %cst_18 {dimension_numbers = #tpu.dot_dimension_numbers<[1], [0], [0], [1], [0, 0, 1, 1], [], []>} : vector<9x32xbf16>, vector<32x96xbf16>, vector<9x96xf32> -> vector<9x96xf32>
    %c0_19 = arith.constant 0 : index
    %c0_20 = arith.constant 0 : index
    %c0_21 = arith.constant 0 : index
    %18 = vector.load %arg9[%c0_19, %c0_20, %c0_21] : memref<2x1x96xf32, #tpu.memory_space<vmem>>, vector<1x1x96xf32>
    %19 = vector.shape_cast %18 : vector<1x1x96xf32> to vector<1x96xf32>
    %20 = vector.broadcast %19 : vector<1x96xf32> to vector<9x96xf32>
    %21 = arith.addf %17, %20 : vector<9x96xf32>
    %22 = vector.extract_strided_slice %21 {offsets = [0, 0], sizes = [9, 32], strides = [1, 1]} : vector<9x96xf32> to vector<9x32xf32>
    %23 = arith.truncf %22 : vector<9x32xf32> to vector<9x32xbf16>
    %24 = vector.extract_strided_slice %21 {offsets = [0, 32], sizes = [9, 32], strides = [1, 1]} : vector<9x96xf32> to vector<9x32xf32>
    %25 = arith.truncf %24 : vector<9x32xf32> to vector<9x32xbf16>
    %26 = vector.extract_strided_slice %21 {offsets = [0, 64], sizes = [9, 32], strides = [1, 1]} : vector<9x96xf32> to vector<9x32xf32>
    %27 = arith.truncf %26 : vector<9x32xf32> to vector<9x32xbf16>
    %28 = vector.extract_strided_slice %23 {offsets = [0, 0], sizes = [9, 8], strides = [1, 1]} : vector<9x32xbf16> to vector<9x8xbf16>
    %29 = vector.extract_strided_slice %25 {offsets = [0, 0], sizes = [9, 8], strides = [1, 1]} : vector<9x32xbf16> to vector<9x8xbf16>
    "tpu.trace_start"() <{level = 10 : i32, message = "sd,td->st"}> : () -> ()
    %cst_22 = arith.constant dense<0.000000e+00> : vector<9x9xf32>
    %30 = tpu.matmul %28, %29, %cst_22 {dimension_numbers = #tpu.dot_dimension_numbers<[1], [1], [0], [0], [0, 0, 1, 0], [], []>} : vector<9x8xbf16>, vector<9x8xbf16>, vector<9x9xf32> -> vector<9x9xf32>
    "tpu.trace_stop"() : () -> ()
    %cst_23 = arith.constant 0.353553385 : f32
    %31 = vector.broadcast %cst_23 : f32 to vector<9x9xf32>
    %32 = arith.mulf %30, %31 : vector<9x9xf32>
    %cst_24 = arith.constant dense<0xFF800000> : vector<9xf32>
    %33 = vector.multi_reduction <maximumf>, %32, %cst_24 [1] : vector<9x9xf32> to vector<9xf32>
    %34 = vector.shape_cast %33 : vector<9xf32> to vector<9x1xf32>
    %35 = vector.broadcast %34 : vector<9x1xf32> to vector<9x9xf32>
    %36 = arith.subf %32, %35 : vector<9x9xf32>
    %37 = math.exp %36 : vector<9x9xf32>
    %cst_25 = arith.constant dense<0.000000e+00> : vector<9xf32>
    %38 = vector.multi_reduction <add>, %37, %cst_25 [1] : vector<9x9xf32> to vector<9xf32>
    %39 = vector.shape_cast %38 : vector<9xf32> to vector<9x1xf32>
    %40 = tpu.reciprocal %39 {approx = true} : vector<9x1xf32> -> vector<9x1xf32>
    %41 = vector.broadcast %40 : vector<9x1xf32> to vector<9x9xf32>
    %42 = arith.mulf %37, %41 : vector<9x9xf32>
    %43 = arith.truncf %42 : vector<9x9xf32> to vector<9x9xbf16>
    %44 = vector.extract_strided_slice %27 {offsets = [0, 0], sizes = [9, 8], strides = [1, 1]} : vector<9x32xbf16> to vector<9x8xbf16>
    %cst_26 = arith.constant dense<0.000000e+00> : vector<9x8xf32>
    %45 = tpu.matmul %43, %44, %cst_26 {dimension_numbers = #tpu.dot_dimension_numbers<[1], [0], [0], [1], [0, 0, 1, 1], [], []>} : vector<9x9xbf16>, vector<9x8xbf16>, vector<9x8xf32> -> vector<9x8xf32>
    %c0_27 = arith.constant 0 : index
    %c0_28 = arith.constant 0 : index
    %46 = vector.load %arg31[%c0_27, %c0_28] : memref<9x32xf32, #tpu.memory_space<vmem>>, vector<9x8xf32>
    tpu.vector_store %arg31[%c0_27, %c0_28], %45 {strides = array<i32>} : memref<9x32xf32, #tpu.memory_space<vmem>>, vector<9x8xf32>,
    %47 = vector.extract_strided_slice %23 {offsets = [0, 8], sizes = [9, 8], strides = [1, 1]} : vector<9x32xbf16> to vector<9x8xbf16>
    %48 = vector.extract_strided_slice %25 {offsets = [0, 8], sizes = [9, 8], strides = [1, 1]} : vector<9x32xbf16> to vector<9x8xbf16>
    "tpu.trace_start"() <{level = 10 : i32, message = "sd,td->st"}> : () -> ()
    %cst_29 = arith.constant dense<0.000000e+00> : vector<9x9xf32>
    %49 = tpu.matmul %47, %48, %cst_29 {dimension_numbers = #tpu.dot_dimension_numbers<[1], [1], [0], [0], [0, 0, 1, 0], [], []>} : vector<9x8xbf16>, vector<9x8xbf16>, vector<9x9xf32> -> vector<9x9xf32>
    "tpu.trace_stop"() : () -> ()
    %cst_30 = arith.constant 0.353553385 : f32
    %50 = vector.broadcast %cst_30 : f32 to vector<9x9xf32>
    %51 = arith.mulf %49, %50 : vector<9x9xf32>
    %cst_31 = arith.constant dense<0xFF800000> : vector<9xf32>
    %52 = vector.multi_reduction <maximumf>, %51, %cst_31 [1] : vector<9x9xf32> to vector<9xf32>
    %53 = vector.shape_cast %52 : vector<9xf32> to vector<9x1xf32>
    %54 = vector.broadcast %53 : vector<9x1xf32> to vector<9x9xf32>
    %55 = arith.subf %51, %54 : vector<9x9xf32>
    %56 = math.exp %55 : vector<9x9xf32>
    %cst_32 = arith.constant dense<0.000000e+00> : vector<9xf32>
    %57 = vector.multi_reduction <add>, %56, %cst_32 [1] : vector<9x9xf32> to vector<9xf32>
    %58 = vector.shape_cast %57 : vector<9xf32> to vector<9x1xf32>
    %59 = tpu.reciprocal %58 {approx = true} : vector<9x1xf32> -> vector<9x1xf32>
    %60 = vector.broadcast %59 : vector<9x1xf32> to vector<9x9xf32>
    %61 = arith.mulf %56, %60 : vector<9x9xf32>
    %62 = arith.truncf %61 : vector<9x9xf32> to vector<9x9xbf16>
    %63 = vector.extract_strided_slice %27 {offsets = [0, 8], sizes = [9, 8], strides = [1, 1]} : vector<9x32xbf16> to vector<9x8xbf16>
    %cst_33 = arith.constant dense<0.000000e+00> : vector<9x8xf32>
    %64 = tpu.matmul %62, %63, %cst_33 {dimension_numbers = #tpu.dot_dimension_numbers<[1], [0], [0], [1], [0, 0, 1, 1], [], []>} : vector<9x9xbf16>, vector<9x8xbf16>, vector<9x8xf32> -> vector<9x8xf32>
    %c0_34 = arith.constant 0 : index
    %c8_35 = arith.constant 8 : index
    %65 = vector.load %arg31[%c0_34, %c8_35] : memref<9x32xf32, #tpu.memory_space<vmem>>, vector<9x8xf32>
    tpu.vector_store %arg31[%c0_34, %c8_35], %64 {strides = array<i32>} : memref<9x32xf32, #tpu.memory_space<vmem>>, vector<9x8xf32>,
    %66 = vector.extract_strided_slice %23 {offsets = [0, 16], sizes = [9, 8], strides = [1, 1]} : vector<9x32xbf16> to vector<9x8xbf16>
    %67 = vector.extract_strided_slice %25 {offsets = [0, 16], sizes = [9, 8], strides = [1, 1]} : vector<9x32xbf16> to vector<9x8xbf16>
    "tpu.trace_start"() <{level = 10 : i32, message = "sd,td->st"}> : () -> ()
    %cst_36 = arith.constant dense<0.000000e+00> : vector<9x9xf32>
    %68 = tpu.matmul %66, %67, %cst_36 {dimension_numbers = #tpu.dot_dimension_numbers<[1], [1], [0], [0], [0, 0, 1, 0], [], []>} : vector<9x8xbf16>, vector<9x8xbf16>, vector<9x9xf32> -> vector<9x9xf32>
    "tpu.trace_stop"() : () -> ()
    %cst_37 = arith.constant 0.353553385 : f32
    %69 = vector.broadcast %cst_37 : f32 to vector<9x9xf32>
    %70 = arith.mulf %68, %69 : vector<9x9xf32>
    %cst_38 = arith.constant dense<0xFF800000> : vector<9xf32>
    %71 = vector.multi_reduction <maximumf>, %70, %cst_38 [1] : vector<9x9xf32> to vector<9xf32>
    %72 = vector.shape_cast %71 : vector<9xf32> to vector<9x1xf32>
    %73 = vector.broadcast %72 : vector<9x1xf32> to vector<9x9xf32>
    %74 = arith.subf %70, %73 : vector<9x9xf32>
    %75 = math.exp %74 : vector<9x9xf32>
    %cst_39 = arith.constant dense<0.000000e+00> : vector<9xf32>
    %76 = vector.multi_reduction <add>, %75, %cst_39 [1] : vector<9x9xf32> to vector<9xf32>
    %77 = vector.shape_cast %76 : vector<9xf32> to vector<9x1xf32>
    %78 = tpu.reciprocal %77 {approx = true} : vector<9x1xf32> -> vector<9x1xf32>
    %79 = vector.broadcast %78 : vector<9x1xf32> to vector<9x9xf32>
    %80 = arith.mulf %75, %79 : vector<9x9xf32>
    %81 = arith.truncf %80 : vector<9x9xf32> to vector<9x9xbf16>
    %82 = vector.extract_strided_slice %27 {offsets = [0, 16], sizes = [9, 8], strides = [1, 1]} : vector<9x32xbf16> to vector<9x8xbf16>
    %cst_40 = arith.constant dense<0.000000e+00> : vector<9x8xf32>
    %83 = tpu.matmul %81, %82, %cst_40 {dimension_numbers = #tpu.dot_dimension_numbers<[1], [0], [0], [1], [0, 0, 1, 1], [], []>} : vector<9x9xbf16>, vector<9x8xbf16>, vector<9x8xf32> -> vector<9x8xf32>
    %c0_41 = arith.constant 0 : index
    %c16 = arith.constant 16 : index
    %84 = vector.load %arg31[%c0_41, %c16] : memref<9x32xf32, #tpu.memory_space<vmem>>, vector<9x8xf32>
    tpu.vector_store %arg31[%c0_41, %c16], %83 {strides = array<i32>} : memref<9x32xf32, #tpu.memory_space<vmem>>, vector<9x8xf32>,
    %85 = vector.extract_strided_slice %23 {offsets = [0, 24], sizes = [9, 8], strides = [1, 1]} : vector<9x32xbf16> to vector<9x8xbf16>
    %86 = vector.extract_strided_slice %25 {offsets = [0, 24], sizes = [9, 8], strides = [1, 1]} : vector<9x32xbf16> to vector<9x8xbf16>
    "tpu.trace_start"() <{level = 10 : i32, message = "sd,td->st"}> : () -> ()
    %cst_42 = arith.constant dense<0.000000e+00> : vector<9x9xf32>
    %87 = tpu.matmul %85, %86, %cst_42 {dimension_numbers = #tpu.dot_dimension_numbers<[1], [1], [0], [0], [0, 0, 1, 0], [], []>} : vector<9x8xbf16>, vector<9x8xbf16>, vector<9x9xf32> -> vector<9x9xf32>
    "tpu.trace_stop"() : () -> ()
    %cst_43 = arith.constant 0.353553385 : f32
    %88 = vector.broadcast %cst_43 : f32 to vector<9x9xf32>
    %89 = arith.mulf %87, %88 : vector<9x9xf32>
    %cst_44 = arith.constant dense<0xFF800000> : vector<9xf32>
    %90 = vector.multi_reduction <maximumf>, %89, %cst_44 [1] : vector<9x9xf32> to vector<9xf32>
    %91 = vector.shape_cast %90 : vector<9xf32> to vector<9x1xf32>
    %92 = vector.broadcast %91 : vector<9x1xf32> to vector<9x9xf32>
    %93 = arith.subf %89, %92 : vector<9x9xf32>
    %94 = math.exp %93 : vector<9x9xf32>
    %cst_45 = arith.constant dense<0.000000e+00> : vector<9xf32>
    %95 = vector.multi_reduction <add>, %94, %cst_45 [1] : vector<9x9xf32> to vector<9xf32>
    %96 = vector.shape_cast %95 : vector<9xf32> to vector<9x1xf32>
    %97 = tpu.reciprocal %96 {approx = true} : vector<9x1xf32> -> vector<9x1xf32>
    %98 = vector.broadcast %97 : vector<9x1xf32> to vector<9x9xf32>
    %99 = arith.mulf %94, %98 : vector<9x9xf32>
    %100 = arith.truncf %99 : vector<9x9xf32> to vector<9x9xbf16>
    %101 = vector.extract_strided_slice %27 {offsets = [0, 24], sizes = [9, 8], strides = [1, 1]} : vector<9x32xbf16> to vector<9x8xbf16>
    %cst_46 = arith.constant dense<0.000000e+00> : vector<9x8xf32>
    %102 = tpu.matmul %100, %101, %cst_46 {dimension_numbers = #tpu.dot_dimension_numbers<[1], [0], [0], [1], [0, 0, 1, 1], [], []>} : vector<9x9xbf16>, vector<9x8xbf16>, vector<9x8xf32> -> vector<9x8xf32>
    %c0_47 = arith.constant 0 : index
    %c24 = arith.constant 24 : index
    %103 = vector.load %arg31[%c0_47, %c24] : memref<9x32xf32, #tpu.memory_space<vmem>>, vector<9x8xf32>
    tpu.vector_store %arg31[%c0_47, %c24], %102 {strides = array<i32>} : memref<9x32xf32, #tpu.memory_space<vmem>>, vector<9x8xf32>,
    %c0_48 = arith.constant 0 : index
    %c0_49 = arith.constant 0 : index
    %104 = vector.load %arg31[%c0_48, %c0_49] : memref<9x32xf32, #tpu.memory_space<vmem>>, vector<9x32xf32>
    %105 = arith.truncf %104 : vector<9x32xf32> to vector<9x32xbf16>
    %c0_50 = arith.constant 0 : index
    %c0_51 = arith.constant 0 : index
    %c0_52 = arith.constant 0 : index
    %106 = vector.load %arg10[%c0_50, %c0_51, %c0_52] : memref<2x32x32xbf16, #tpu.memory_space<vmem>>, vector<1x32x32xbf16>
    %107 = vector.shape_cast %106 : vector<1x32x32xbf16> to vector<32x32xbf16>
    %cst_53 = arith.constant dense<0.000000e+00> : vector<9x32xf32>
    %108 = tpu.matmul %105, %107, %cst_53 {dimension_numbers = #tpu.dot_dimension_numbers<[1], [0], [0], [1], [0, 0, 1, 1], [], []>} : vector<9x32xbf16>, vector<32x32xbf16>, vector<9x32xf32> -> vector<9x32xf32>
    %c0_54 = arith.constant 0 : index
    %c0_55 = arith.constant 0 : index
    %c0_56 = arith.constant 0 : index
    %109 = vector.load %arg11[%c0_54, %c0_55, %c0_56] : memref<2x1x32xf32, #tpu.memory_space<vmem>>, vector<1x1x32xf32>
    %110 = vector.shape_cast %109 : vector<1x1x32xf32> to vector<1x32xf32>
    %111 = vector.broadcast %110 : vector<1x32xf32> to vector<9x32xf32>
    %112 = arith.addf %108, %111 : vector<9x32xf32>
    %113 = arith.addf %13, %112 : vector<9x32xf32>
    %c0_57 = arith.constant 0 : index
    %c0_58 = arith.constant 0 : index
    %c0_59 = arith.constant 0 : index
    %114 = vector.load %arg12[%c0_57, %c0_58, %c0_59] : memref<2x1x32xf32, #tpu.memory_space<vmem>>, vector<1x1x32xf32>
    %115 = vector.shape_cast %114 : vector<1x1x32xf32> to vector<1x32xf32>
    %c0_60 = arith.constant 0 : index
    %c0_61 = arith.constant 0 : index
    %c0_62 = arith.constant 0 : index
    %116 = vector.load %arg13[%c0_60, %c0_61, %c0_62] : memref<2x1x32xf32, #tpu.memory_space<vmem>>, vector<1x1x32xf32>
    %117 = vector.shape_cast %116 : vector<1x1x32xf32> to vector<1x32xf32>
    %cst_63 = arith.constant dense<0.000000e+00> : vector<9xf32>
    %118 = vector.multi_reduction <add>, %113, %cst_63 [1] : vector<9x32xf32> to vector<9xf32>
    %119 = vector.shape_cast %118 : vector<9xf32> to vector<9x1xf32>
    %cst_64 = arith.constant 3.200000e+01 : f32
    %120 = vector.broadcast %cst_64 : f32 to vector<9x1xf32>
    %121 = arith.divf %119, %120 : vector<9x1xf32>
    %122 = vector.broadcast %121 : vector<9x1xf32> to vector<9x32xf32>
    %123 = arith.subf %113, %122 : vector<9x32xf32>
    %124 = arith.mulf %123, %123 : vector<9x32xf32>
    %cst_65 = arith.constant dense<0.000000e+00> : vector<9xf32>
    %125 = vector.multi_reduction <add>, %124, %cst_65 [1] : vector<9x32xf32> to vector<9xf32>
    %126 = vector.shape_cast %125 : vector<9xf32> to vector<9x1xf32>
    %cst_66 = arith.constant 3.200000e+01 : f32
    %127 = vector.broadcast %cst_66 : f32 to vector<9x1xf32>
    %128 = arith.divf %126, %127 : vector<9x1xf32>
    %129 = vector.broadcast %121 : vector<9x1xf32> to vector<9x32xf32>
    %130 = arith.subf %113, %129 : vector<9x32xf32>
    %cst_67 = arith.constant 9.99999974E-6 : f32
    %131 = vector.broadcast %cst_67 : f32 to vector<9x1xf32>
    %132 = arith.addf %128, %131 : vector<9x1xf32>
    %133 = math.rsqrt %132 : vector<9x1xf32>
    %134 = vector.broadcast %133 : vector<9x1xf32> to vector<9x32xf32>
    %135 = arith.mulf %130, %134 : vector<9x32xf32>
    %136 = vector.broadcast %115 : vector<1x32xf32> to vector<9x32xf32>
    %137 = arith.mulf %135, %136 : vector<9x32xf32>
    %138 = vector.broadcast %117 : vector<1x32xf32> to vector<9x32xf32>
    %139 = arith.addf %137, %138 : vector<9x32xf32>
    %140 = arith.truncf %139 : vector<9x32xf32> to vector<9x32xbf16>
    %c0_68 = arith.constant 0 : index
    %c0_69 = arith.constant 0 : index
    %c0_70 = arith.constant 0 : index
    %141 = vector.load %arg14[%c0_68, %c0_69, %c0_70] : memref<2x32x64xbf16, #tpu.memory_space<vmem>>, vector<1x32x64xbf16>
    %142 = vector.shape_cast %141 : vector<1x32x64xbf16> to vector<32x64xbf16>
    %cst_71 = arith.constant dense<0.000000e+00> : vector<9x64xf32>
    %143 = tpu.matmul %140, %142, %cst_71 {dimension_numbers = #tpu.dot_dimension_numbers<[1], [0], [0], [1], [0, 0, 1, 1], [], []>} : vector<9x32xbf16>, vector<32x64xbf16>, vector<9x64xf32> -> vector<9x64xf32>
    %c0_72 = arith.constant 0 : index
    %c0_73 = arith.constant 0 : index
    %c0_74 = arith.constant 0 : index
    %144 = vector.load %arg15[%c0_72, %c0_73, %c0_74] : memref<2x1x64xf32, #tpu.memory_space<vmem>>, vector<1x1x64xf32>
    %145 = vector.shape_cast %144 : vector<1x1x64xf32> to vector<1x64xf32>
    %146 = vector.broadcast %145 : vector<1x64xf32> to vector<9x64xf32>
    %147 = arith.addf %143, %146 : vector<9x64xf32>
    %cst_75 = arith.constant 0.000000e+00 : f32
    %148 = vector.broadcast %cst_75 : f32 to vector<9x64xf32>
    %149 = arith.maximumf %147, %148 : vector<9x64xf32>
    %150 = arith.truncf %149 : vector<9x64xf32> to vector<9x64xbf16>
    %c0_76 = arith.constant 0 : index
    %c0_77 = arith.constant 0 : index
    %c0_78 = arith.constant 0 : index
    %151 = vector.load %arg16[%c0_76, %c0_77, %c0_78] : memref<2x64x32xbf16, #tpu.memory_space<vmem>>, vector<1x64x32xbf16>
    %152 = vector.shape_cast %151 : vector<1x64x32xbf16> to vector<64x32xbf16>
    %cst_79 = arith.constant dense<0.000000e+00> : vector<9x32xf32>
    %153 = tpu.matmul %150, %152, %cst_79 {dimension_numbers = #tpu.dot_dimension_numbers<[1], [0], [0], [1], [0, 0, 1, 1], [], []>} : vector<9x64xbf16>, vector<64x32xbf16>, vector<9x32xf32> -> vector<9x32xf32>
    %c0_80 = arith.constant 0 : index
    %c0_81 = arith.constant 0 : index
    %c0_82 = arith.constant 0 : index
    %154 = vector.load %arg17[%c0_80, %c0_81, %c0_82] : memref<2x1x32xf32, #tpu.memory_space<vmem>>, vector<1x1x32xf32>
    %155 = vector.shape_cast %154 : vector<1x1x32xf32> to vector<1x32xf32>
    %156 = vector.broadcast %155 : vector<1x32xf32> to vector<9x32xf32>
    %157 = arith.addf %153, %156 : vector<9x32xf32>
    %158 = arith.addf %139, %157 : vector<9x32xf32>
    %c0_83 = arith.constant 0 : index
    %c0_84 = arith.constant 0 : index
    %c0_85 = arith.constant 0 : index
    %159 = vector.load %arg18[%c0_83, %c0_84, %c0_85] : memref<2x1x32xf32, #tpu.memory_space<vmem>>, vector<1x1x32xf32>
    %160 = vector.shape_cast %159 : vector<1x1x32xf32> to vector<1x32xf32>
    %c0_86 = arith.constant 0 : index
    %c0_87 = arith.constant 0 : index
    %c0_88 = arith.constant 0 : index
    %161 = vector.load %arg19[%c0_86, %c0_87, %c0_88] : memref<2x1x32xf32, #tpu.memory_space<vmem>>, vector<1x1x32xf32>
    %162 = vector.shape_cast %161 : vector<1x1x32xf32> to vector<1x32xf32>
    %cst_89 = arith.constant dense<0.000000e+00> : vector<9xf32>
    %163 = vector.multi_reduction <add>, %158, %cst_89 [1] : vector<9x32xf32> to vector<9xf32>
    %164 = vector.shape_cast %163 : vector<9xf32> to vector<9x1xf32>
    %cst_90 = arith.constant 3.200000e+01 : f32
    %165 = vector.broadcast %cst_90 : f32 to vector<9x1xf32>
    %166 = arith.divf %164, %165 : vector<9x1xf32>
    %167 = vector.broadcast %166 : vector<9x1xf32> to vector<9x32xf32>
    %168 = arith.subf %158, %167 : vector<9x32xf32>
    %169 = arith.mulf %168, %168 : vector<9x32xf32>
    %cst_91 = arith.constant dense<0.000000e+00> : vector<9xf32>
    %170 = vector.multi_reduction <add>, %169, %cst_91 [1] : vector<9x32xf32> to vector<9xf32>
    %171 = vector.shape_cast %170 : vector<9xf32> to vector<9x1xf32>
    %cst_92 = arith.constant 3.200000e+01 : f32
    %172 = vector.broadcast %cst_92 : f32 to vector<9x1xf32>
    %173 = arith.divf %171, %172 : vector<9x1xf32>
    %174 = vector.broadcast %166 : vector<9x1xf32> to vector<9x32xf32>
    %175 = arith.subf %158, %174 : vector<9x32xf32>
    %cst_93 = arith.constant 9.99999974E-6 : f32
    %176 = vector.broadcast %cst_93 : f32 to vector<9x1xf32>
    %177 = arith.addf %173, %176 : vector<9x1xf32>
    %178 = math.rsqrt %177 : vector<9x1xf32>
    %179 = vector.broadcast %178 : vector<9x1xf32> to vector<9x32xf32>
    %180 = arith.mulf %175, %179 : vector<9x32xf32>
    %181 = vector.broadcast %160 : vector<1x32xf32> to vector<9x32xf32>
    %182 = arith.mulf %180, %181 : vector<9x32xf32>
    %183 = vector.broadcast %162 : vector<1x32xf32> to vector<9x32xf32>
    %184 = arith.addf %182, %183 : vector<9x32xf32>
    %185 = arith.truncf %184 : vector<9x32xf32> to vector<9x32xbf16>
    %c1 = arith.constant 1 : index
    %c0_94 = arith.constant 0 : index
    %c0_95 = arith.constant 0 : index
    %186 = vector.load %arg8[%c1, %c0_94, %c0_95] : memref<2x32x96xbf16, #tpu.memory_space<vmem>>, vector<1x32x96xbf16>
    %187 = vector.shape_cast %186 : vector<1x32x96xbf16> to vector<32x96xbf16>
    %cst_96 = arith.constant dense<0.000000e+00> : vector<9x96xf32>
    %188 = tpu.matmul %185, %187, %cst_96 {dimension_numbers = #tpu.dot_dimension_numbers<[1], [0], [0], [1], [0, 0, 1, 1], [], []>} : vector<9x32xbf16>, vector<32x96xbf16>, vector<9x96xf32> -> vector<9x96xf32>
    %c1_97 = arith.constant 1 : index
    %c0_98 = arith.constant 0 : index
    %c0_99 = arith.constant 0 : index
    %189 = vector.load %arg9[%c1_97, %c0_98, %c0_99] : memref<2x1x96xf32, #tpu.memory_space<vmem>>, vector<1x1x96xf32>
    %190 = vector.shape_cast %189 : vector<1x1x96xf32> to vector<1x96xf32>
    %191 = vector.broadcast %190 : vector<1x96xf32> to vector<9x96xf32>
    %192 = arith.addf %188, %191 : vector<9x96xf32>
    %193 = vector.extract_strided_slice %192 {offsets = [0, 0], sizes = [9, 32], strides = [1, 1]} : vector<9x96xf32> to vector<9x32xf32>
    %194 = arith.truncf %193 : vector<9x32xf32> to vector<9x32xbf16>
    %195 = vector.extract_strided_slice %192 {offsets = [0, 32], sizes = [9, 32], strides = [1, 1]} : vector<9x96xf32> to vector<9x32xf32>
    %196 = arith.truncf %195 : vector<9x32xf32> to vector<9x32xbf16>
    %197 = vector.extract_strided_slice %192 {offsets = [0, 64], sizes = [9, 32], strides = [1, 1]} : vector<9x96xf32> to vector<9x32xf32>
    %198 = arith.truncf %197 : vector<9x32xf32> to vector<9x32xbf16>
    %199 = vector.extract_strided_slice %194 {offsets = [0, 0], sizes = [9, 8], strides = [1, 1]} : vector<9x32xbf16> to vector<9x8xbf16>
    %200 = vector.extract_strided_slice %196 {offsets = [0, 0], sizes = [9, 8], strides = [1, 1]} : vector<9x32xbf16> to vector<9x8xbf16>
    "tpu.trace_start"() <{level = 10 : i32, message = "sd,td->st"}> : () -> ()
    %cst_100 = arith.constant dense<0.000000e+00> : vector<9x9xf32>
    %201 = tpu.matmul %199, %200, %cst_100 {dimension_numbers = #tpu.dot_dimension_numbers<[1], [1], [0], [0], [0, 0, 1, 0], [], []>} : vector<9x8xbf16>, vector<9x8xbf16>, vector<9x9xf32> -> vector<9x9xf32>
    "tpu.trace_stop"() : () -> ()
    %cst_101 = arith.constant 0.353553385 : f32
    %202 = vector.broadcast %cst_101 : f32 to vector<9x9xf32>
    %203 = arith.mulf %201, %202 : vector<9x9xf32>
    %cst_102 = arith.constant dense<0xFF800000> : vector<9xf32>
    %204 = vector.multi_reduction <maximumf>, %203, %cst_102 [1] : vector<9x9xf32> to vector<9xf32>
    %205 = vector.shape_cast %204 : vector<9xf32> to vector<9x1xf32>
    %206 = vector.broadcast %205 : vector<9x1xf32> to vector<9x9xf32>
    %207 = arith.subf %203, %206 : vector<9x9xf32>
    %208 = math.exp %207 : vector<9x9xf32>
    %cst_103 = arith.constant dense<0.000000e+00> : vector<9xf32>
    %209 = vector.multi_reduction <add>, %208, %cst_103 [1] : vector<9x9xf32> to vector<9xf32>
    %210 = vector.shape_cast %209 : vector<9xf32> to vector<9x1xf32>
    %211 = tpu.reciprocal %210 {approx = true} : vector<9x1xf32> -> vector<9x1xf32>
    %212 = vector.broadcast %211 : vector<9x1xf32> to vector<9x9xf32>
    %213 = arith.mulf %208, %212 : vector<9x9xf32>
    %214 = arith.truncf %213 : vector<9x9xf32> to vector<9x9xbf16>
    %215 = vector.extract_strided_slice %198 {offsets = [0, 0], sizes = [9, 8], strides = [1, 1]} : vector<9x32xbf16> to vector<9x8xbf16>
    %cst_104 = arith.constant dense<0.000000e+00> : vector<9x8xf32>
    %216 = tpu.matmul %214, %215, %cst_104 {dimension_numbers = #tpu.dot_dimension_numbers<[1], [0], [0], [1], [0, 0, 1, 1], [], []>} : vector<9x9xbf16>, vector<9x8xbf16>, vector<9x8xf32> -> vector<9x8xf32>
    %c0_105 = arith.constant 0 : index
    %c0_106 = arith.constant 0 : index
    %217 = vector.load %arg31[%c0_105, %c0_106] : memref<9x32xf32, #tpu.memory_space<vmem>>, vector<9x8xf32>
    tpu.vector_store %arg31[%c0_105, %c0_106], %216 {strides = array<i32>} : memref<9x32xf32, #tpu.memory_space<vmem>>, vector<9x8xf32>,
    %218 = vector.extract_strided_slice %194 {offsets = [0, 8], sizes = [9, 8], strides = [1, 1]} : vector<9x32xbf16> to vector<9x8xbf16>
    %219 = vector.extract_strided_slice %196 {offsets = [0, 8], sizes = [9, 8], strides = [1, 1]} : vector<9x32xbf16> to vector<9x8xbf16>
    "tpu.trace_start"() <{level = 10 : i32, message = "sd,td->st"}> : () -> ()
    %cst_107 = arith.constant dense<0.000000e+00> : vector<9x9xf32>
    %220 = tpu.matmul %218, %219, %cst_107 {dimension_numbers = #tpu.dot_dimension_numbers<[1], [1], [0], [0], [0, 0, 1, 0], [], []>} : vector<9x8xbf16>, vector<9x8xbf16>, vector<9x9xf32> -> vector<9x9xf32>
    "tpu.trace_stop"() : () -> ()
    %cst_108 = arith.constant 0.353553385 : f32
    %221 = vector.broadcast %cst_108 : f32 to vector<9x9xf32>
    %222 = arith.mulf %220, %221 : vector<9x9xf32>
    %cst_109 = arith.constant dense<0xFF800000> : vector<9xf32>
    %223 = vector.multi_reduction <maximumf>, %222, %cst_109 [1] : vector<9x9xf32> to vector<9xf32>
    %224 = vector.shape_cast %223 : vector<9xf32> to vector<9x1xf32>
    %225 = vector.broadcast %224 : vector<9x1xf32> to vector<9x9xf32>
    %226 = arith.subf %222, %225 : vector<9x9xf32>
    %227 = math.exp %226 : vector<9x9xf32>
    %cst_110 = arith.constant dense<0.000000e+00> : vector<9xf32>
    %228 = vector.multi_reduction <add>, %227, %cst_110 [1] : vector<9x9xf32> to vector<9xf32>
    %229 = vector.shape_cast %228 : vector<9xf32> to vector<9x1xf32>
    %230 = tpu.reciprocal %229 {approx = true} : vector<9x1xf32> -> vector<9x1xf32>
    %231 = vector.broadcast %230 : vector<9x1xf32> to vector<9x9xf32>
    %232 = arith.mulf %227, %231 : vector<9x9xf32>
    %233 = arith.truncf %232 : vector<9x9xf32> to vector<9x9xbf16>
    %234 = vector.extract_strided_slice %198 {offsets = [0, 8], sizes = [9, 8], strides = [1, 1]} : vector<9x32xbf16> to vector<9x8xbf16>
    %cst_111 = arith.constant dense<0.000000e+00> : vector<9x8xf32>
    %235 = tpu.matmul %233, %234, %cst_111 {dimension_numbers = #tpu.dot_dimension_numbers<[1], [0], [0], [1], [0, 0, 1, 1], [], []>} : vector<9x9xbf16>, vector<9x8xbf16>, vector<9x8xf32> -> vector<9x8xf32>
    %c0_112 = arith.constant 0 : index
    %c8_113 = arith.constant 8 : index
    %236 = vector.load %arg31[%c0_112, %c8_113] : memref<9x32xf32, #tpu.memory_space<vmem>>, vector<9x8xf32>
    tpu.vector_store %arg31[%c0_112, %c8_113], %235 {strides = array<i32>} : memref<9x32xf32, #tpu.memory_space<vmem>>, vector<9x8xf32>,
    %237 = vector.extract_strided_slice %194 {offsets = [0, 16], sizes = [9, 8], strides = [1, 1]} : vector<9x32xbf16> to vector<9x8xbf16>
    %238 = vector.extract_strided_slice %196 {offsets = [0, 16], sizes = [9, 8], strides = [1, 1]} : vector<9x32xbf16> to vector<9x8xbf16>
    "tpu.trace_start"() <{level = 10 : i32, message = "sd,td->st"}> : () -> ()
    %cst_114 = arith.constant dense<0.000000e+00> : vector<9x9xf32>
    %239 = tpu.matmul %237, %238, %cst_114 {dimension_numbers = #tpu.dot_dimension_numbers<[1], [1], [0], [0], [0, 0, 1, 0], [], []>} : vector<9x8xbf16>, vector<9x8xbf16>, vector<9x9xf32> -> vector<9x9xf32>
    "tpu.trace_stop"() : () -> ()
    %cst_115 = arith.constant 0.353553385 : f32
    %240 = vector.broadcast %cst_115 : f32 to vector<9x9xf32>
    %241 = arith.mulf %239, %240 : vector<9x9xf32>
    %cst_116 = arith.constant dense<0xFF800000> : vector<9xf32>
    %242 = vector.multi_reduction <maximumf>, %241, %cst_116 [1] : vector<9x9xf32> to vector<9xf32>
    %243 = vector.shape_cast %242 : vector<9xf32> to vector<9x1xf32>
    %244 = vector.broadcast %243 : vector<9x1xf32> to vector<9x9xf32>
    %245 = arith.subf %241, %244 : vector<9x9xf32>
    %246 = math.exp %245 : vector<9x9xf32>
    %cst_117 = arith.constant dense<0.000000e+00> : vector<9xf32>
    %247 = vector.multi_reduction <add>, %246, %cst_117 [1] : vector<9x9xf32> to vector<9xf32>
    %248 = vector.shape_cast %247 : vector<9xf32> to vector<9x1xf32>
    %249 = tpu.reciprocal %248 {approx = true} : vector<9x1xf32> -> vector<9x1xf32>
    %250 = vector.broadcast %249 : vector<9x1xf32> to vector<9x9xf32>
    %251 = arith.mulf %246, %250 : vector<9x9xf32>
    %252 = arith.truncf %251 : vector<9x9xf32> to vector<9x9xbf16>
    %253 = vector.extract_strided_slice %198 {offsets = [0, 16], sizes = [9, 8], strides = [1, 1]} : vector<9x32xbf16> to vector<9x8xbf16>
    %cst_118 = arith.constant dense<0.000000e+00> : vector<9x8xf32>
    %254 = tpu.matmul %252, %253, %cst_118 {dimension_numbers = #tpu.dot_dimension_numbers<[1], [0], [0], [1], [0, 0, 1, 1], [], []>} : vector<9x9xbf16>, vector<9x8xbf16>, vector<9x8xf32> -> vector<9x8xf32>
    %c0_119 = arith.constant 0 : index
    %c16_120 = arith.constant 16 : index
    %255 = vector.load %arg31[%c0_119, %c16_120] : memref<9x32xf32, #tpu.memory_space<vmem>>, vector<9x8xf32>
    tpu.vector_store %arg31[%c0_119, %c16_120], %254 {strides = array<i32>} : memref<9x32xf32, #tpu.memory_space<vmem>>, vector<9x8xf32>,
    %256 = vector.extract_strided_slice %194 {offsets = [0, 24], sizes = [9, 8], strides = [1, 1]} : vector<9x32xbf16> to vector<9x8xbf16>
    %257 = vector.extract_strided_slice %196 {offsets = [0, 24], sizes = [9, 8], strides = [1, 1]} : vector<9x32xbf16> to vector<9x8xbf16>
    "tpu.trace_start"() <{level = 10 : i32, message = "sd,td->st"}> : () -> ()
    %cst_121 = arith.constant dense<0.000000e+00> : vector<9x9xf32>
    %258 = tpu.matmul %256, %257, %cst_121 {dimension_numbers = #tpu.dot_dimension_numbers<[1], [1], [0], [0], [0, 0, 1, 0], [], []>} : vector<9x8xbf16>, vector<9x8xbf16>, vector<9x9xf32> -> vector<9x9xf32>
    "tpu.trace_stop"() : () -> ()
    %cst_122 = arith.constant 0.353553385 : f32
    %259 = vector.broadcast %cst_122 : f32 to vector<9x9xf32>
    %260 = arith.mulf %258, %259 : vector<9x9xf32>
    %cst_123 = arith.constant dense<0xFF800000> : vector<9xf32>
    %261 = vector.multi_reduction <maximumf>, %260, %cst_123 [1] : vector<9x9xf32> to vector<9xf32>
    %262 = vector.shape_cast %261 : vector<9xf32> to vector<9x1xf32>
    %263 = vector.broadcast %262 : vector<9x1xf32> to vector<9x9xf32>
    %264 = arith.subf %260, %263 : vector<9x9xf32>
    %265 = math.exp %264 : vector<9x9xf32>
    %cst_124 = arith.constant dense<0.000000e+00> : vector<9xf32>
    %266 = vector.multi_reduction <add>, %265, %cst_124 [1] : vector<9x9xf32> to vector<9xf32>
    %267 = vector.shape_cast %266 : vector<9xf32> to vector<9x1xf32>
    %268 = tpu.reciprocal %267 {approx = true} : vector<9x1xf32> -> vector<9x1xf32>
    %269 = vector.broadcast %268 : vector<9x1xf32> to vector<9x9xf32>
    %270 = arith.mulf %265, %269 : vector<9x9xf32>
    %271 = arith.truncf %270 : vector<9x9xf32> to vector<9x9xbf16>
    %272 = vector.extract_strided_slice %198 {offsets = [0, 24], sizes = [9, 8], strides = [1, 1]} : vector<9x32xbf16> to vector<9x8xbf16>
    %cst_125 = arith.constant dense<0.000000e+00> : vector<9x8xf32>
    %273 = tpu.matmul %271, %272, %cst_125 {dimension_numbers = #tpu.dot_dimension_numbers<[1], [0], [0], [1], [0, 0, 1, 1], [], []>} : vector<9x9xbf16>, vector<9x8xbf16>, vector<9x8xf32> -> vector<9x8xf32>
    %c0_126 = arith.constant 0 : index
    %c24_127 = arith.constant 24 : index
    %274 = vector.load %arg31[%c0_126, %c24_127] : memref<9x32xf32, #tpu.memory_space<vmem>>, vector<9x8xf32>
    tpu.vector_store %arg31[%c0_126, %c24_127], %273 {strides = array<i32>} : memref<9x32xf32, #tpu.memory_space<vmem>>, vector<9x8xf32>,
    %c0_128 = arith.constant 0 : index
    %c0_129 = arith.constant 0 : index
    %275 = vector.load %arg31[%c0_128, %c0_129] : memref<9x32xf32, #tpu.memory_space<vmem>>, vector<9x32xf32>
    %276 = arith.truncf %275 : vector<9x32xf32> to vector<9x32xbf16>
    %c1_130 = arith.constant 1 : index
    %c0_131 = arith.constant 0 : index
    %c0_132 = arith.constant 0 : index
    %277 = vector.load %arg10[%c1_130, %c0_131, %c0_132] : memref<2x32x32xbf16, #tpu.memory_space<vmem>>, vector<1x32x32xbf16>
    %278 = vector.shape_cast %277 : vector<1x32x32xbf16> to vector<32x32xbf16>
    %cst_133 = arith.constant dense<0.000000e+00> : vector<9x32xf32>
    %279 = tpu.matmul %276, %278, %cst_133 {dimension_numbers = #tpu.dot_dimension_numbers<[1], [0], [0], [1], [0, 0, 1, 1], [], []>} : vector<9x32xbf16>, vector<32x32xbf16>, vector<9x32xf32> -> vector<9x32xf32>
    %c1_134 = arith.constant 1 : index
    %c0_135 = arith.constant 0 : index
    %c0_136 = arith.constant 0 : index
    %280 = vector.load %arg11[%c1_134, %c0_135, %c0_136] : memref<2x1x32xf32, #tpu.memory_space<vmem>>, vector<1x1x32xf32>
    %281 = vector.shape_cast %280 : vector<1x1x32xf32> to vector<1x32xf32>
    %282 = vector.broadcast %281 : vector<1x32xf32> to vector<9x32xf32>
    %283 = arith.addf %279, %282 : vector<9x32xf32>
    %284 = arith.addf %184, %283 : vector<9x32xf32>
    %c1_137 = arith.constant 1 : index
    %c0_138 = arith.constant 0 : index
    %c0_139 = arith.constant 0 : index
    %285 = vector.load %arg12[%c1_137, %c0_138, %c0_139] : memref<2x1x32xf32, #tpu.memory_space<vmem>>, vector<1x1x32xf32>
    %286 = vector.shape_cast %285 : vector<1x1x32xf32> to vector<1x32xf32>
    %c1_140 = arith.constant 1 : index
    %c0_141 = arith.constant 0 : index
    %c0_142 = arith.constant 0 : index
    %287 = vector.load %arg13[%c1_140, %c0_141, %c0_142] : memref<2x1x32xf32, #tpu.memory_space<vmem>>, vector<1x1x32xf32>
    %288 = vector.shape_cast %287 : vector<1x1x32xf32> to vector<1x32xf32>
    %cst_143 = arith.constant dense<0.000000e+00> : vector<9xf32>
    %289 = vector.multi_reduction <add>, %284, %cst_143 [1] : vector<9x32xf32> to vector<9xf32>
    %290 = vector.shape_cast %289 : vector<9xf32> to vector<9x1xf32>
    %cst_144 = arith.constant 3.200000e+01 : f32
    %291 = vector.broadcast %cst_144 : f32 to vector<9x1xf32>
    %292 = arith.divf %290, %291 : vector<9x1xf32>
    %293 = vector.broadcast %292 : vector<9x1xf32> to vector<9x32xf32>
    %294 = arith.subf %284, %293 : vector<9x32xf32>
    %295 = arith.mulf %294, %294 : vector<9x32xf32>
    %cst_145 = arith.constant dense<0.000000e+00> : vector<9xf32>
    %296 = vector.multi_reduction <add>, %295, %cst_145 [1] : vector<9x32xf32> to vector<9xf32>
    %297 = vector.shape_cast %296 : vector<9xf32> to vector<9x1xf32>
    %cst_146 = arith.constant 3.200000e+01 : f32
    %298 = vector.broadcast %cst_146 : f32 to vector<9x1xf32>
    %299 = arith.divf %297, %298 : vector<9x1xf32>
    %300 = vector.broadcast %292 : vector<9x1xf32> to vector<9x32xf32>
    %301 = arith.subf %284, %300 : vector<9x32xf32>
    %cst_147 = arith.constant 9.99999974E-6 : f32
    %302 = vector.broadcast %cst_147 : f32 to vector<9x1xf32>
    %303 = arith.addf %299, %302 : vector<9x1xf32>
    %304 = math.rsqrt %303 : vector<9x1xf32>
    %305 = vector.broadcast %304 : vector<9x1xf32> to vector<9x32xf32>
    %306 = arith.mulf %301, %305 : vector<9x32xf32>
    %307 = vector.broadcast %286 : vector<1x32xf32> to vector<9x32xf32>
    %308 = arith.mulf %306, %307 : vector<9x32xf32>
    %309 = vector.broadcast %288 : vector<1x32xf32> to vector<9x32xf32>
    %310 = arith.addf %308, %309 : vector<9x32xf32>
    %311 = arith.truncf %310 : vector<9x32xf32> to vector<9x32xbf16>
    %c1_148 = arith.constant 1 : index
    %c0_149 = arith.constant 0 : index
    %c0_150 = arith.constant 0 : index
    %312 = vector.load %arg14[%c1_148, %c0_149, %c0_150] : memref<2x32x64xbf16, #tpu.memory_space<vmem>>, vector<1x32x64xbf16>
    %313 = vector.shape_cast %312 : vector<1x32x64xbf16> to vector<32x64xbf16>
    %cst_151 = arith.constant dense<0.000000e+00> : vector<9x64xf32>
    %314 = tpu.matmul %311, %313, %cst_151 {dimension_numbers = #tpu.dot_dimension_numbers<[1], [0], [0], [1], [0, 0, 1, 1], [], []>} : vector<9x32xbf16>, vector<32x64xbf16>, vector<9x64xf32> -> vector<9x64xf32>
    %c1_152 = arith.constant 1 : index
    %c0_153 = arith.constant 0 : index
    %c0_154 = arith.constant 0 : index
    %315 = vector.load %arg15[%c1_152, %c0_153, %c0_154] : memref<2x1x64xf32, #tpu.memory_space<vmem>>, vector<1x1x64xf32>
    %316 = vector.shape_cast %315 : vector<1x1x64xf32> to vector<1x64xf32>
    %317 = vector.broadcast %316 : vector<1x64xf32> to vector<9x64xf32>
    %318 = arith.addf %314, %317 : vector<9x64xf32>
    %cst_155 = arith.constant 0.000000e+00 : f32
    %319 = vector.broadcast %cst_155 : f32 to vector<9x64xf32>
    %320 = arith.maximumf %318, %319 : vector<9x64xf32>
    %321 = arith.truncf %320 : vector<9x64xf32> to vector<9x64xbf16>
    %c1_156 = arith.constant 1 : index
    %c0_157 = arith.constant 0 : index
    %c0_158 = arith.constant 0 : index
    %322 = vector.load %arg16[%c1_156, %c0_157, %c0_158] : memref<2x64x32xbf16, #tpu.memory_space<vmem>>, vector<1x64x32xbf16>
    %323 = vector.shape_cast %322 : vector<1x64x32xbf16> to vector<64x32xbf16>
    %cst_159 = arith.constant dense<0.000000e+00> : vector<9x32xf32>
    %324 = tpu.matmul %321, %323, %cst_159 {dimension_numbers = #tpu.dot_dimension_numbers<[1], [0], [0], [1], [0, 0, 1, 1], [], []>} : vector<9x64xbf16>, vector<64x32xbf16>, vector<9x32xf32> -> vector<9x32xf32>
    %c1_160 = arith.constant 1 : index
    %c0_161 = arith.constant 0 : index
    %c0_162 = arith.constant 0 : index
    %325 = vector.load %arg17[%c1_160, %c0_161, %c0_162] : memref<2x1x32xf32, #tpu.memory_space<vmem>>, vector<1x1x32xf32>
    %326 = vector.shape_cast %325 : vector<1x1x32xf32> to vector<1x32xf32>
    %327 = vector.broadcast %326 : vector<1x32xf32> to vector<9x32xf32>
    %328 = arith.addf %324, %327 : vector<9x32xf32>
    %329 = arith.addf %310, %328 : vector<9x32xf32>
    %c1_163 = arith.constant 1 : index
    %c0_164 = arith.constant 0 : index
    %c0_165 = arith.constant 0 : index
    %330 = vector.load %arg18[%c1_163, %c0_164, %c0_165] : memref<2x1x32xf32, #tpu.memory_space<vmem>>, vector<1x1x32xf32>
    %331 = vector.shape_cast %330 : vector<1x1x32xf32> to vector<1x32xf32>
    %c1_166 = arith.constant 1 : index
    %c0_167 = arith.constant 0 : index
    %c0_168 = arith.constant 0 : index
    %332 = vector.load %arg19[%c1_166, %c0_167, %c0_168] : memref<2x1x32xf32, #tpu.memory_space<vmem>>, vector<1x1x32xf32>
    %333 = vector.shape_cast %332 : vector<1x1x32xf32> to vector<1x32xf32>
    %cst_169 = arith.constant dense<0.000000e+00> : vector<9xf32>
    %334 = vector.multi_reduction <add>, %329, %cst_169 [1] : vector<9x32xf32> to vector<9xf32>
    %335 = vector.shape_cast %334 : vector<9xf32> to vector<9x1xf32>
    %cst_170 = arith.constant 3.200000e+01 : f32
    %336 = vector.broadcast %cst_170 : f32 to vector<9x1xf32>
    %337 = arith.divf %335, %336 : vector<9x1xf32>
    %338 = vector.broadcast %337 : vector<9x1xf32> to vector<9x32xf32>
    %339 = arith.subf %329, %338 : vector<9x32xf32>
    %340 = arith.mulf %339, %339 : vector<9x32xf32>
    %cst_171 = arith.constant dense<0.000000e+00> : vector<9xf32>
    %341 = vector.multi_reduction <add>, %340, %cst_171 [1] : vector<9x32xf32> to vector<9xf32>
    %342 = vector.shape_cast %341 : vector<9xf32> to vector<9x1xf32>
    %cst_172 = arith.constant 3.200000e+01 : f32
    %343 = vector.broadcast %cst_172 : f32 to vector<9x1xf32>
    %344 = arith.divf %342, %343 : vector<9x1xf32>
    %345 = vector.broadcast %337 : vector<9x1xf32> to vector<9x32xf32>
    %346 = arith.subf %329, %345 : vector<9x32xf32>
    %cst_173 = arith.constant 9.99999974E-6 : f32
    %347 = vector.broadcast %cst_173 : f32 to vector<9x1xf32>
    %348 = arith.addf %344, %347 : vector<9x1xf32>
    %349 = math.rsqrt %348 : vector<9x1xf32>
    %350 = vector.broadcast %349 : vector<9x1xf32> to vector<9x32xf32>
    %351 = arith.mulf %346, %350 : vector<9x32xf32>
    %352 = vector.broadcast %331 : vector<1x32xf32> to vector<9x32xf32>
    %353 = arith.mulf %351, %352 : vector<9x32xf32>
    %354 = vector.broadcast %333 : vector<1x32xf32> to vector<9x32xf32>
    %355 = arith.addf %353, %354 : vector<9x32xf32>
    %356 = arith.truncf %355 : vector<9x32xf32> to vector<9x32xbf16>
    %c0_174 = arith.constant 0 : index
    %c0_175 = arith.constant 0 : index
    %357 = vector.load %arg20[%c0_174, %c0_175] : memref<32x96xbf16, #tpu.memory_space<vmem>>, vector<32x96xbf16>
    %cst_176 = arith.constant dense<0.000000e+00> : vector<9x96xf32>
    %358 = tpu.matmul %356, %357, %cst_176 {dimension_numbers = #tpu.dot_dimension_numbers<[1], [0], [0], [1], [0, 0, 1, 1], [], []>} : vector<9x32xbf16>, vector<32x96xbf16>, vector<9x96xf32> -> vector<9x96xf32>
    %c0_177 = arith.constant 0 : index
    %c0_178 = arith.constant 0 : index
    %359 = vector.load %arg21[%c0_177, %c0_178] : memref<1x96xf32, #tpu.memory_space<vmem>>, vector<1x96xf32>
    %360 = vector.broadcast %359 : vector<1x96xf32> to vector<9x96xf32>
    %361 = arith.addf %358, %360 : vector<9x96xf32>
    %362 = vector.extract_strided_slice %361 {offsets = [0, 0], sizes = [9, 64], strides = [1, 1]} : vector<9x96xf32> to vector<9x64xf32>
    %363 = vector.extract_strided_slice %361 {offsets = [0, 64], sizes = [9, 32], strides = [1, 1]} : vector<9x96xf32> to vector<9x32xf32>
    %c0_179 = arith.constant 0 : index
    %c0_180 = arith.constant 0 : index
    %c0_181 = arith.constant 0 : index
    %364 = vector.load %arg2[%c0_179, %c0_180, %c0_181] : memref<1x3x48xf32, #tpu.memory_space<vmem>>, vector<1x3x48xf32>
    %365 = vector.shape_cast %364 : vector<1x3x48xf32> to vector<3x48xf32>
    %366 = arith.truncf %365 : vector<3x48xf32> to vector<3x48xbf16>
    %c0_182 = arith.constant 0 : index
    %c0_183 = arith.constant 0 : index
    %367 = vector.load %arg22[%c0_182, %c0_183] : memref<48x64xbf16, #tpu.memory_space<vmem>>, vector<48x64xbf16>
    %cst_184 = arith.constant dense<0.000000e+00> : vector<3x64xf32>
    %368 = tpu.matmul %366, %367, %cst_184 {dimension_numbers = #tpu.dot_dimension_numbers<[1], [0], [0], [1], [0, 0, 1, 1], [], []>} : vector<3x48xbf16>, vector<48x64xbf16>, vector<3x64xf32> -> vector<3x64xf32>
    %c0_185 = arith.constant 0 : index
    %c0_186 = arith.constant 0 : index
    %369 = vector.load %arg23[%c0_185, %c0_186] : memref<1x64xf32, #tpu.memory_space<vmem>>, vector<1x64xf32>
    %370 = vector.broadcast %369 : vector<1x64xf32> to vector<3x64xf32>
    %371 = arith.addf %368, %370 : vector<3x64xf32>
    %372 = arith.truncf %371 : vector<3x64xf32> to vector<3x64xbf16>
    %373 = arith.truncf %362 : vector<9x64xf32> to vector<9x64xbf16>
    "tpu.trace_start"() <{level = 10 : i32, message = "qf,kf->qk"}> : () -> ()
    %cst_187 = arith.constant dense<0.000000e+00> : vector<3x9xf32>
    %374 = tpu.matmul %372, %373, %cst_187 {dimension_numbers = #tpu.dot_dimension_numbers<[1], [1], [0], [0], [0, 0, 1, 0], [], []>} : vector<3x64xbf16>, vector<9x64xbf16>, vector<3x9xf32> -> vector<3x9xf32>
    "tpu.trace_stop"() : () -> ()
    %cst_188 = arith.constant 1.250000e-01 : f32
    %375 = vector.broadcast %cst_188 : f32 to vector<3x9xf32>
    %376 = arith.mulf %374, %375 : vector<3x9xf32>
    %cst_189 = arith.constant dense<0xFF800000> : vector<3xf32>
    %377 = vector.multi_reduction <maximumf>, %376, %cst_189 [1] : vector<3x9xf32> to vector<3xf32>
    %378 = vector.shape_cast %377 : vector<3xf32> to vector<3x1xf32>
    %379 = vector.broadcast %378 : vector<3x1xf32> to vector<3x9xf32>
    %380 = arith.subf %376, %379 : vector<3x9xf32>
    %381 = math.exp %380 : vector<3x9xf32>
    %cst_190 = arith.constant dense<0.000000e+00> : vector<3xf32>
    %382 = vector.multi_reduction <add>, %381, %cst_190 [1] : vector<3x9xf32> to vector<3xf32>
    %383 = vector.shape_cast %382 : vector<3xf32> to vector<3x1xf32>
    %384 = tpu.reciprocal %383 {approx = true} : vector<3x1xf32> -> vector<3x1xf32>
    %385 = vector.broadcast %384 : vector<3x1xf32> to vector<3x9xf32>
    %386 = arith.mulf %381, %385 : vector<3x9xf32>
    %387 = arith.truncf %386 : vector<3x9xf32> to vector<3x9xbf16>
    %388 = arith.truncf %363 : vector<9x32xf32> to vector<9x32xbf16>
    %cst_191 = arith.constant dense<0.000000e+00> : vector<3x32xf32>
    %389 = tpu.matmul %387, %388, %cst_191 {dimension_numbers = #tpu.dot_dimension_numbers<[1], [0], [0], [1], [0, 0, 1, 1], [], []>} : vector<3x9xbf16>, vector<9x32xbf16>, vector<3x32xf32> -> vector<3x32xf32>
    %390 = arith.truncf %389 : vector<3x32xf32> to vector<3x32xbf16>
    %c0_192 = arith.constant 0 : index
    %c0_193 = arith.constant 0 : index
    %391 = vector.load %arg24[%c0_192, %c0_193] : memref<32x32xbf16, #tpu.memory_space<vmem>>, vector<32x32xbf16>
    %cst_194 = arith.constant dense<0.000000e+00> : vector<3x32xf32>
    %392 = tpu.matmul %390, %391, %cst_194 {dimension_numbers = #tpu.dot_dimension_numbers<[1], [0], [0], [1], [0, 0, 1, 1], [], []>} : vector<3x32xbf16>, vector<32x32xbf16>, vector<3x32xf32> -> vector<3x32xf32>
    %c0_195 = arith.constant 0 : index
    %c0_196 = arith.constant 0 : index
    %393 = vector.load %arg25[%c0_195, %c0_196] : memref<48x32xbf16, #tpu.memory_space<vmem>>, vector<48x32xbf16>
    %cst_197 = arith.constant dense<0.000000e+00> : vector<3x32xf32>
    %394 = tpu.matmul %366, %393, %cst_197 {dimension_numbers = #tpu.dot_dimension_numbers<[1], [0], [0], [1], [0, 0, 1, 1], [], []>} : vector<3x48xbf16>, vector<48x32xbf16>, vector<3x32xf32> -> vector<3x32xf32>
    %395 = arith.addf %392, %394 : vector<3x32xf32>
    %c0_198 = arith.constant 0 : index
    %c0_199 = arith.constant 0 : index
    %396 = vector.load %arg26[%c0_198, %c0_199] : memref<1x32xf32, #tpu.memory_space<vmem>>, vector<1x32xf32>
    %397 = vector.broadcast %396 : vector<1x32xf32> to vector<3x32xf32>
    %398 = arith.addf %395, %397 : vector<3x32xf32>
    %cst_200 = arith.constant 0.000000e+00 : f32
    %399 = vector.broadcast %cst_200 : f32 to vector<3x32xf32>
    %400 = arith.maximumf %398, %399 : vector<3x32xf32>
    %401 = arith.truncf %400 : vector<3x32xf32> to vector<3x32xbf16>
    %c0_201 = arith.constant 0 : index
    %c0_202 = arith.constant 0 : index
    %402 = vector.load %arg27[%c0_201, %c0_202] : memref<32x16xbf16, #tpu.memory_space<vmem>>, vector<32x16xbf16>
    %cst_203 = arith.constant dense<0.000000e+00> : vector<3x16xf32>
    %403 = tpu.matmul %401, %402, %cst_203 {dimension_numbers = #tpu.dot_dimension_numbers<[1], [0], [0], [1], [0, 0, 1, 1], [], []>} : vector<3x32xbf16>, vector<32x16xbf16>, vector<3x16xf32> -> vector<3x16xf32>
    %c0_204 = arith.constant 0 : index
    %c0_205 = arith.constant 0 : index
    %404 = vector.load %arg28[%c0_204, %c0_205] : memref<1x16xf32, #tpu.memory_space<vmem>>, vector<1x16xf32>
    %405 = vector.broadcast %404 : vector<1x16xf32> to vector<3x16xf32>
    %406 = arith.addf %403, %405 : vector<3x16xf32>
    %c0_206 = arith.constant 0 : index
    %c0_207 = arith.constant 0 : index
    %c0_208 = arith.constant 0 : index
    %407 = vector.load %arg3[%c0_206, %c0_207, %c0_208] : memref<1x3x16xf32, #tpu.memory_space<vmem>>, vector<1x3x16xf32>
    %408 = vector.shape_cast %407 : vector<1x3x16xf32> to vector<3x16xf32>
    %409 = arith.addf %406, %408 : vector<3x16xf32>
    %cst_209 = arith.constant dense<0xFF800000> : vector<3xf32>
    %410 = vector.multi_reduction <maximumf>, %409, %cst_209 [1] : vector<3x16xf32> to vector<3xf32>
    %411 = vector.shape_cast %410 : vector<3xf32> to vector<3x1xf32>
    %412 = vector.broadcast %411 : vector<3x1xf32> to vector<3x16xf32>
    %413 = arith.subf %409, %412 : vector<3x16xf32>
    %414 = math.exp %413 : vector<3x16xf32>
    %cst_210 = arith.constant dense<0.000000e+00> : vector<3xf32>
    %415 = vector.multi_reduction <add>, %414, %cst_210 [1] : vector<3x16xf32> to vector<3xf32>
    %416 = vector.shape_cast %415 : vector<3xf32> to vector<3x1xf32>
    %417 = vector.broadcast %416 : vector<3x1xf32> to vector<3x16xf32>
    %418 = arith.divf %414, %417 : vector<3x16xf32>
    %c0_211 = arith.constant 0 : index
    %c0_212 = arith.constant 0 : index
    %c0_213 = arith.constant 0 : index
    %419 = vector.load %arg29[%c0_211, %c0_212, %c0_213] : memref<1x3x16xf32, #tpu.memory_space<vmem>>, vector<1x3x16xf32>
    %420 = vector.shape_cast %419 : vector<1x3x16xf32> to vector<3x16xf32>
    %421 = vector.shape_cast %418 : vector<3x16xf32> to vector<1x3x16xf32>
    tpu.vector_store %arg29[%c0_211, %c0_212, %c0_213], %421 {strides = array<i32>} : memref<1x3x16xf32, #tpu.memory_space<vmem>>, vector<1x3x16xf32>,
    return
  }
  func.func @transform_0(%arg0: i32) -> (i32, i32, i32) {
    %c0_i32 = arith.constant 0 : i32
    %c0_i32_0 = arith.constant 0 : i32
    %c0_i32_1 = arith.constant 0 : i32
    return %arg0, %c0_i32, %c0_i32_0 : i32, i32, i32
  }
  func.func @transform_1(%arg0: i32) -> (i32, i32, i32) {
    %c0_i32 = arith.constant 0 : i32
    %c0_i32_0 = arith.constant 0 : i32
    %c0_i32_1 = arith.constant 0 : i32
    return %arg0, %c0_i32, %c0_i32_0 : i32, i32, i32
  }
  func.func @transform_2(%arg0: i32) -> (i32, i32, i32) {
    %c0_i32 = arith.constant 0 : i32
    %c0_i32_0 = arith.constant 0 : i32
    %c0_i32_1 = arith.constant 0 : i32
    return %arg0, %c0_i32, %c0_i32_0 : i32, i32, i32
  }
  func.func @transform_3(%arg0: i32) -> (i32, i32) {
    %c0_i32 = arith.constant 0 : i32
    %c0_i32_0 = arith.constant 0 : i32
    %c0_i32_1 = arith.constant 0 : i32
    return %c0_i32, %c0_i32_0 : i32, i32
  }
  func.func @transform_4(%arg0: i32) -> (i32, i32) {
    %c0_i32 = arith.constant 0 : i32
    %c0_i32_0 = arith.constant 0 : i32
    %c0_i32_1 = arith.constant 0 : i32
    return %c0_i32, %c0_i32_0 : i32, i32
  }
  func.func @transform_5(%arg0: i32) -> (i32, i32) {
    %c0_i32 = arith.constant 0 : i32
    %c0_i32_0 = arith.constant 0 : i32
    %c0_i32_1 = arith.constant 0 : i32
    return %c0_i32, %c0_i32_0 : i32, i32
  }
  func.func @transform_6(%arg0: i32) -> (i32, i32) {
    %c0_i32 = arith.constant 0 : i32
    %c0_i32_0 = arith.constant 0 : i32
    %c0_i32_1 = arith.constant 0 : i32
    return %c0_i32, %c0_i32_0 : i32, i32
  }
  func.func @transform_7(%arg0: i32) -> (i32, i32, i32) {
    %c0_i32 = arith.constant 0 : i32
    %c0_i32_0 = arith.constant 0 : i32
    %c0_i32_1 = arith.constant 0 : i32
    %c0_i32_2 = arith.constant 0 : i32
    return %c0_i32, %c0_i32_0, %c0_i32_1 : i32, i32, i32
  }
  func.func @transform_8(%arg0: i32) -> (i32, i32, i32) {
    %c0_i32 = arith.constant 0 : i32
    %c0_i32_0 = arith.constant 0 : i32
    %c0_i32_1 = arith.constant 0 : i32
    %c0_i32_2 = arith.constant 0 : i32
    return %c0_i32, %c0_i32_0, %c0_i32_1 : i32, i32, i32
  }
  func.func @transform_9(%arg0: i32) -> (i32, i32, i32) {
    %c0_i32 = arith.constant 0 : i32
    %c0_i32_0 = arith.constant 0 : i32
    %c0_i32_1 = arith.constant 0 : i32
    %c0_i32_2 = arith.constant 0 : i32
    return %c0_i32, %c0_i32_0, %c0_i32_1 : i32, i32, i32
  }
  func.func @transform_10(%arg0: i32) -> (i32, i32, i32) {
    %c0_i32 = arith.constant 0 : i32
    %c0_i32_0 = arith.constant 0 : i32
    %c0_i32_1 = arith.constant 0 : i32
    %c0_i32_2 = arith.constant 0 : i32
    return %c0_i32, %c0_i32_0, %c0_i32_1 : i32, i32, i32
  }
  func.func @transform_11(%arg0: i32) -> (i32, i32, i32) {
    %c0_i32 = arith.constant 0 : i32
    %c0_i32_0 = arith.constant 0 : i32
    %c0_i32_1 = arith.constant 0 : i32
    %c0_i32_2 = arith.constant 0 : i32
    return %c0_i32, %c0_i32_0, %c0_i32_1 : i32, i32, i32
  }
  func.func @transform_12(%arg0: i32) -> (i32, i32, i32) {
    %c0_i32 = arith.constant 0 : i32
    %c0_i32_0 = arith.constant 0 : i32
    %c0_i32_1 = arith.constant 0 : i32
    %c0_i32_2 = arith.constant 0 : i32
    return %c0_i32, %c0_i32_0, %c0_i32_1 : i32, i32, i32
  }
  func.func @transform_13(%arg0: i32) -> (i32, i32, i32) {
    %c0_i32 = arith.constant 0 : i32
    %c0_i32_0 = arith.constant 0 : i32
    %c0_i32_1 = arith.constant 0 : i32
    %c0_i32_2 = arith.constant 0 : i32
    return %c0_i32, %c0_i32_0, %c0_i32_1 : i32, i32, i32
  }
  func.func @transform_14(%arg0: i32) -> (i32, i32, i32) {
    %c0_i32 = arith.constant 0 : i32
    %c0_i32_0 = arith.constant 0 : i32
    %c0_i32_1 = arith.constant 0 : i32
    %c0_i32_2 = arith.constant 0 : i32
    return %c0_i32, %c0_i32_0, %c0_i32_1 : i32, i32, i32
  }
  func.func @transform_15(%arg0: i32) -> (i32, i32, i32) {
    %c0_i32 = arith.constant 0 : i32
    %c0_i32_0 = arith.constant 0 : i32
    %c0_i32_1 = arith.constant 0 : i32
    %c0_i32_2 = arith.constant 0 : i32
    return %c0_i32, %c0_i32_0, %c0_i32_1 : i32, i32, i32
  }
  func.func @transform_16(%arg0: i32) -> (i32, i32, i32) {
    %c0_i32 = arith.constant 0 : i32
    %c0_i32_0 = arith.constant 0 : i32
    %c0_i32_1 = arith.constant 0 : i32
    %c0_i32_2 = arith.constant 0 : i32
    return %c0_i32, %c0_i32_0, %c0_i32_1 : i32, i32, i32
  }
  func.func @transform_17(%arg0: i32) -> (i32, i32, i32) {
    %c0_i32 = arith.constant 0 : i32
    %c0_i32_0 = arith.constant 0 : i32
    %c0_i32_1 = arith.constant 0 : i32
    %c0_i32_2 = arith.constant 0 : i32
    return %c0_i32, %c0_i32_0, %c0_i32_1 : i32, i32, i32
  }
  func.func @transform_18(%arg0: i32) -> (i32, i32, i32) {
    %c0_i32 = arith.constant 0 : i32
    %c0_i32_0 = arith.constant 0 : i32
    %c0_i32_1 = arith.constant 0 : i32
    %c0_i32_2 = arith.constant 0 : i32
    return %c0_i32, %c0_i32_0, %c0_i32_1 : i32, i32, i32
  }
  func.func @transform_19(%arg0: i32) -> (i32, i32) {
    %c0_i32 = arith.constant 0 : i32
    %c0_i32_0 = arith.constant 0 : i32
    %c0_i32_1 = arith.constant 0 : i32
    return %c0_i32, %c0_i32_0 : i32, i32
  }
  func.func @transform_20(%arg0: i32) -> (i32, i32) {
    %c0_i32 = arith.constant 0 : i32
    %c0_i32_0 = arith.constant 0 : i32
    %c0_i32_1 = arith.constant 0 : i32
    return %c0_i32, %c0_i32_0 : i32, i32
  }
  func.func @transform_21(%arg0: i32) -> (i32, i32) {
    %c0_i32 = arith.constant 0 : i32
    %c0_i32_0 = arith.constant 0 : i32
    %c0_i32_1 = arith.constant 0 : i32
    return %c0_i32, %c0_i32_0 : i32, i32
  }
  func.func @transform_22(%arg0: i32) -> (i32, i32) {
    %c0_i32 = arith.constant 0 : i32
    %c0_i32_0 = arith.constant 0 : i32
    %c0_i32_1 = arith.constant 0 : i32
    return %c0_i32, %c0_i32_0 : i32, i32
  }
  func.func @transform_23(%arg0: i32) -> (i32, i32) {
    %c0_i32 = arith.constant 0 : i32
    %c0_i32_0 = arith.constant 0 : i32
    %c0_i32_1 = arith.constant 0 : i32
    return %c0_i32, %c0_i32_0 : i32, i32
  }
  func.func @transform_24(%arg0: i32) -> (i32, i32) {
    %c0_i32 = arith.constant 0 : i32
    %c0_i32_0 = arith.constant 0 : i32
    %c0_i32_1 = arith.constant 0 : i32
    return %c0_i32, %c0_i32_0 : i32, i32
  }
  func.func @transform_25(%arg0: i32) -> (i32, i32) {
    %c0_i32 = arith.constant 0 : i32
    %c0_i32_0 = arith.constant 0 : i32
    %c0_i32_1 = arith.constant 0 : i32
    return %c0_i32, %c0_i32_0 : i32, i32
  }
  func.func @transform_26(%arg0: i32) -> (i32, i32) {
    %c0_i32 = arith.constant 0 : i32
    %c0_i32_0 = arith.constant 0 : i32
    %c0_i32_1 = arith.constant 0 : i32
    return %c0_i32, %c0_i32_0 : i32, i32
  }
  func.func @transform_27(%arg0: i32) -> (i32, i32) {
    %c0_i32 = arith.constant 0 : i32
    %c0_i32_0 = arith.constant 0 : i32
    %c0_i32_1 = arith.constant 0 : i32
    return %c0_i32, %c0_i32_0 : i32, i32
  }
  func.func @transform_28(%arg0: i32) -> (i32, i32, i32) {
    %c0_i32 = arith.constant 0 : i32
    %c0_i32_0 = arith.constant 0 : i32
    %c0_i32_1 = arith.constant 0 : i32
    return %arg0, %c0_i32, %c0_i32_0 : i32, i32, i32
  }
}

</mosaic_0001>

<bundles_post_ra>
// kernel: vqa_forward.1
= control target key start
LH: loop header
LB: loop body
LE: loop exit
PB: predicated region body
PF: predicated region fallthrough
CT: control target
= control target key end

     0   :  { %s5391_s0 = inlined_call_operand.vmem [shape: f32[2,8,768], index: 0, kind: input, shape index: {}]   ;;  %s5392_s1 = inlined_call_operand.vmem [shape: f32[2,3,48], index: 1, kind: input, shape index: {}]   ;;  %s5393_s2 = inlined_call_operand.vmem [shape: f32[2,3,16], index: 2, kind: input, shape index: {}]   ;;  %s5394_s3 = inlined_call_operand.vmem [shape: bf16[768,32], index: 3, kind: input, shape index: {}]   ;;  %s5395_s4 = inlined_call_operand.vmem [shape: f32[1,32], index: 4, kind: input, shape index: {}]   ;;  %s5396_s5 = inlined_call_operand.vmem [shape: f32[8,32], index: 5, kind: input, shape index: {}]   ;;  %s5397_s6 = inlined_call_operand.vmem [shape: f32[1,32], index: 6, kind: input, shape index: {}]   ;;  %s5398_s7 = inlined_call_operand.vmem [shape: bf16[2,32,96], index: 7, kind: input, shape index: {}]   ;;  %s5399_s8 = inlined_call_operand.vmem [shape: f32[2,1,96], index: 8, kind: input, shape index: {}]   ;;  %s5400_s9 = inlined_call_operand.vmem [shape: bf16[2,32,32], index: 9, kind: input, shape index: {}]   ;;  %s5401_s10 = inlined_call_operand.vmem [shape: f32[2,1,32], index: 10, kind: input, shape index: {}]   ;;  %s5402_s11 = inlined_call_operand.vmem [shape: f32[2,1,32], index: 11, kind: input, shape index: {}]   ;;  %s5403_s12 = inlined_call_operand.vmem [shape: f32[2,1,32], index: 12, kind: input, shape index: {}]   ;;  %s5404_s13 = inlined_call_operand.vmem [shape: bf16[2,32,64], index: 13, kind: input, shape index: {}]   ;;  %s5405_s14 = inlined_call_operand.vmem [shape: f32[2,1,64], index: 14, kind: input, shape index: {}]   ;;  %s5406_s15 = inlined_call_operand.vmem [shape: bf16[2,64,32], index: 15, kind: input, shape index: {}]   ;;  %s5407_s16 = inlined_call_operand.vmem [shape: f32[2,1,32], index: 16, kind: input, shape index: {}]   ;;  %s5408_s17 = inlined_call_operand.vmem [shape: f32[2,1,32], index: 17, kind: input, shape index: {}]   ;;  %s5409_s18 = inlined_call_operand.vmem [shape: f32[2,1,32], index: 18, kind: input, shape index: {}]   ;;  %s5410_s19 = inlined_call_operand.vmem [shape: bf16[32,96], index: 19, kind: input, shape index: {}]   ;;  %s5411_s20 = inlined_call_operand.vmem [shape: f32[1,96], index: 20, kind: input, shape index: {}]   ;;  %s5412_s21 = inlined_call_operand.vmem [shape: bf16[48,64], index: 21, kind: input, shape index: {}]   ;;  %s5413_s22 = inlined_call_operand.vmem [shape: f32[1,64], index: 22, kind: input, shape index: {}]   ;;  %s5414_s23 = inlined_call_operand.vmem [shape: bf16[32,32], index: 23, kind: input, shape index: {}]   ;;  %s5415_s24 = inlined_call_operand.vmem [shape: bf16[48,32], index: 24, kind: input, shape index: {}]   ;;  %s5416_s25 = inlined_call_operand.vmem [shape: f32[1,32], index: 25, kind: input, shape index: {}]   ;;  %s5417_s26 = inlined_call_operand.vmem [shape: bf16[32,16], index: 26, kind: input, shape index: {}]   ;;  %s5418_s27 = inlined_call_operand.vmem [shape: f32[1,16], index: 27, kind: input, shape index: {}]   ;;  %s5419_s28 = inlined_call_operand.vmem [shape: f32[2,3,16], index: 28, kind: output, shape index: {}]  }
   0x1   :  { %5448 = sst [smem:[#allocation4_spill]] %s5391_s0 }
   0x2   :  { %5449 = sst [smem:[#allocation5_spill]] %s5392_s1 }
   0x3   :  { %5450 = sst [smem:[#allocation6_spill]] %s5393_s2 }
   0x4   :  { %5451 = sst [smem:[#allocation7_spill]] %s5394_s3 }
   0x5   :  { %5452 = sst [smem:[#allocation8_spill]] %s5395_s4 }
   0x6   :  { %5453 = sst [smem:[#allocation9_spill]] %s5396_s5 }
   0x7   :  { %5454 = sst [smem:[#allocation10_spill]] %s5397_s6 }
   0x8   :  { %5455 = sst [smem:[#allocation11_spill]] %s5398_s7 }
   0x9   :  { %5456 = sst [smem:[#allocation12_spill]] %s5399_s8  ;;  %s4725_s8 = smov 0  }
   0xa   :  { %5457 = sst [smem:[#allocation13_spill]] %s5400_s9 }
   0xb   :  { %5458 = sst [smem:[#allocation14_spill]] %s5401_s10 }
   0xc   :  { %5459 = sst [smem:[#allocation15_spill]] %s5402_s11 }
   0xd   :  { %5460 = sst [smem:[#allocation16_spill]] %s5403_s12 }
   0xe LB: > { %s3819_s5 = sadd.s32 4294967295, %s4561_s8   ;;  %p3823_p0 = scmp.ge.s32.totalorder %s4561_s8, 1  ;;  %s4561_s8 = sphi %s4725_s8, %s38_s8  }
   0xf   : > { %p780_p1 = scmp.lt.s32.totalorder %s4561_s8, 3 }
  0x11   : > { %p781_p2 = pnand %p3823_p0, %p780_p1 }
  0x12   : > { %s5461_s3 = sld [smem:[#allocation7_spill]] (!%p781_p2)  ;;  %p861_p3 = scmp.lt.s32.totalorder (!%p781_p2), %s3819_s5, 1 }
  0x13   : > { %784 = sbr.rel (%p781_p2) target bundleno = 7260 (0x1c5c), region = 132  ;;  %s5462_s30 = sld [smem:[#allocation4_spill]] (!%p781_p2) }
  0x14   : > { %s5463_s1 = sld [smem:[#allocation11_spill]] (!%p781_p2)  ;;  %s5430_s0 = smov (!%p781_p2), 64  }
  0x15   : > { %s5465_s2 = sld [smem:[#allocation8_spill]] (!%p781_p2)  ;;  %s5435_s11 = smov (!%p781_p2), 80  }
  0x16   : > { %s5466_s12 = sld [smem:[#allocation9_spill]] (!%p781_p2)  ;;  %s5444_s29 = smov (!%p781_p2), 88  }
  0x17   : > { %s5433_s7 = smov (!%p781_p2), 72   ;;  %s5427_s4 = smov (!%p781_p2), 56  }
  0x18   : > { %v4387_v0 = vld [vmem:[%s5461_s3 + $0x78] sm:$0xff]   ;;  %v4391_v4 = vld [vmem:[%s5461_s3 + $0x70] sm:$0xff]   ;;  %v4395_v8 = vld [vmem:[%s5461_s3 + $0x68] sm:$0xff]   ;;  %s5489_s5 = smov (!%p861_p3, %s3819_s5), 1  ;;  %v4563_v62 = vmov 0.0   ;;  %vm4564_vm0 = vmmov 0  }
  0x19   : > { %v4388_v1 = vld [vmem:[%s5461_s3 + $0x38] sm:$0xff]   ;;  %3990 = vmatprep.subr.bf16.mxu0 %v4387_v0  ;;  %v4392_v5 = vld [vmem:[%s5461_s3 + $0x30] sm:$0xff]   ;;  %v4396_v9 = vld [vmem:[%s5461_s3 + $0x28] sm:$0xff]   ;;  %s4361_s6 = smul.u32 48, %s5489_s5  ;;  %vm1407_vm1 = vcmask 253952   ;;  %vm1404_vm2 = vcmask 261120  }
  0x1a   : > { %v4389_v2 = vld [vmem:[%s5461_s3 + $0xf8] sm:$0xff]   ;;  %3991 = vmatpush3.bf16.msra.mxu0 %v4388_v1  ;;  %v4393_v6 = vld [vmem:[%s5461_s3 + $0xf0] sm:$0xff]   ;;  %v4397_v10 = vld [vmem:[%s5461_s3 + $0xe8] sm:$0xff]   ;;  %vm1483_vm3 = vcmask 64512   ;;  %vm1533_vm4 = vcmask 72704   ;;  %vm1537_vm5 = vcmask 65536  }
  0x1b   : > { %v4390_v3 = vld [vmem:[%s5461_s3 + $0xb8] sm:$0xff]   ;;  %4012 = vmatprep.subr.bf16.mxu1 %v4389_v2  ;;  %3992 = vmatprep.subr.bf16.mxu0 %v4391_v4  ;;  %v4394_v7 = vld [vmem:[%s5461_s3 + $0xb0] sm:$0xff]   ;;  %v4398_v11 = vld [vmem:[%s5461_s3 + $0xa8] sm:$0xff]   ;;  %s4830_s10 = scalar_lea.vmem %s5462_s30, %s4361_s6  ;;  %s5464_s30 = sld [smem:[#allocation10_spill]]  ;;  %vm1563_vm6 = vcmask 1043456   ;;  %vm1564_vm7 = vcmask 1044480  }
  0x1c   : > { %4013 = vmatpush3.bf16.msra.mxu1 %v4390_v3  ;;  %v4399_v12 = vld [vmem:[%s5461_s3 + $0x60] sm:$0xff]   ;;  %v4403_v16 = vld [vmem:[%s5461_s3 + $0x58] sm:$0xff]   ;;  %v4407_v20 = vld [vmem:[%s5461_s3 + $0x50] sm:$0xff]   ;;  %s5434_s6 = smov 112   ;;  %vm1612_vm8 = vcmask 57344   ;;  %s5428_s9 = smov 40  }
  0x1d   : > { %4014 = vmatprep.subr.bf16.mxu1 %v4393_v6  ;;  %v4400_v13 = vld [vmem:[%s5461_s3 + $0x20] sm:$0xff]   ;;  %v4404_v17 = vld [vmem:[%s5461_s3 + $0x18] sm:$0xff]   ;;  %v4408_v21 = vld [vmem:[%s5461_s3 + $0x10] sm:$0xff]   ;;  %vm1747_vm9 = vcmask 130112   ;;  %vm1749_vm10 = vcmask 122944   ;;  %vm1884_vm11 = vcmask 195712  }
  0x1e   : > { %3993 = vmatpush3.bf16.msra.mxu0 %v4392_v5  ;;  %v4401_v14 = vld [vmem:[%s5461_s3 + $0xe0] sm:$0xff]   ;;  %v4405_v18 = vld [vmem:[%s5461_s3 + $0xd8] sm:$0xff]   ;;  %v4409_v22 = vld [vmem:[%s5461_s3 + $0xd0] sm:$0xff]   ;;  %vm1886_vm12 = vcmask 188544   ;;  %vm2021_vm13 = vcmask 261312   ;;  %vm2023_vm14 = vcmask 254144  }
  0x1f   : > { %3994 = vmatprep.subr.bf16.mxu0 %v4395_v8  ;;  %v4402_v15 = vld [vmem:[%s5461_s3 + $0xa0] sm:$0xff]   ;;  %v4406_v19 = vld [vmem:[%s5461_s3 + $0x98] sm:$0xff]   ;;  %v4410_v23 = vld [vmem:[%s5461_s3 + $0x90] sm:$0xff]   ;;  %vm2252_vm15 = vcmask 523264  }
  0x20   : > { %4015 = vmatpush3.bf16.msra.mxu1 %v4394_v7  ;;  %v4411_v24 = vld [vmem:[%s5461_s3 + $0x48] sm:$0xff]   ;;  %v4415_v28 = vld [vmem:[%s5461_s3 + $0x40] sm:$0xff]   ;;  %v4419_v36 = vld [vmem:[%s5461_s3 + $0x178] sm:$0xff]  }
  0x21   : > { %4016 = vmatprep.subr.bf16.mxu1 %v4397_v10  ;;  %v4412_v25 = vld [vmem:[%s5461_s3 + $0x8] sm:$0xff]   ;;  %v4416_v29 = vld [vmem:[%s5461_s3] sm:$0xff]   ;;  %v882_v37 = vld [vmem:[%s4830_s10 + $0x18] sm:$0xff] }
  0x22   : > { %3995 = vmatpush3.bf16.msra.mxu0 %v4396_v9  ;;  %v4413_v26 = vld [vmem:[%s5461_s3 + $0xc8] sm:$0xff]   ;;  %v4417_v30 = vld [vmem:[%s5461_s3 + $0xc0] sm:$0xff]   ;;  %v888_v38 = vpack.c.bf16 %v882_v37, %v882_v37  ;;  %v4420_v39 = vld [vmem:[%s5461_s3 + $0x138] sm:$0xff]  }
  0x23   : > { %3996 = vmatprep.subr.bf16.mxu0 %v4399_v12  ;;  %v4414_v27 = vld [vmem:[%s5461_s3 + $0x88] sm:$0xff]   ;;  %v4418_v33 = vld [vmem:[%s5461_s3 + $0x80] sm:$0xff]   ;;  %v881_v40 = vld [vmem:[%s4830_s10 + $0x10] sm:$0xff] }
  0x24   : > { %4017 = vmatpush3.bf16.msra.mxu1 %v4398_v11  ;;  %v880_v31 = vld [vmem:[%s4830_s10 + $0x8] sm:$0xff]  ;;  %v879_v34 = vld [vmem:[%s4830_s10] sm:$0xff]  ;;  %1354 = vmatprep.mubr.bf16.mxu1 %v888_v38  ;;  %v887_v41 = vpack.c.bf16 %v881_v40, %v881_v40  ;;  %v4421_v42 = vld [vmem:[%s5461_s3 + $0x170] sm:$0xff]  }
  0x25   : > { %4018 = vmatprep.subr.bf16.mxu1 %v4401_v14  ;;  %v886_v32 = vpack.c.bf16 %v880_v31, %v880_v31  ;;  %v885_v35 = vpack.c.bf16 %v879_v34, %v879_v34  ;;  %v4422_v43 = vld [vmem:[%s5461_s3 + $0x130] sm:$0xff]   ;;  %v4423_v44 = vld [vmem:[%s5461_s3 + $0x168] sm:$0xff]   ;;  %v4425_v46 = vld [vmem:[%s5461_s3 + $0x160] sm:$0xff]  }
  0x26   : > { %3997 = vmatpush3.bf16.msra.mxu0 %v4400_v13  ;;  %v4424_v45 = vld [vmem:[%s5461_s3 + $0x128] sm:$0xff]   ;;  %v4426_v47 = vld [vmem:[%s5461_s3 + $0x120] sm:$0xff]   ;;  %v4427_v48 = vld [vmem:[%s5461_s3 + $0x158] sm:$0xff]  }
  0x27   : > { %3998 = vmatprep.subr.bf16.mxu0 %v4403_v16  ;;  %1314 = vmatprep.mubr.bf16.mxu0 %v886_v32  ;;  %v4428_v49 = vld [vmem:[%s5461_s3 + $0x118] sm:$0xff]   ;;  %v4429_v50 = vld [vmem:[%s5461_s3 + $0x150] sm:$0xff]   ;;  %v884_v51 = vld [vmem:[%s4830_s10 + $0x28] sm:$0xff] }
  0x28   : > { %4019 = vmatpush3.bf16.msra.mxu1 %v4402_v15  ;;  %v4430_v52 = vld [vmem:[%s5461_s3 + $0x110] sm:$0xff]   ;;  %v890_v53 = vpack.c.bf16 %v884_v51, %v884_v51  ;;  %v4431_v54 = vld [vmem:[%s5461_s3 + $0x148] sm:$0xff]   ;;  %v4433_v56 = vld [vmem:[%s5461_s3 + $0x140] sm:$0xff]  }
  0x29   : > { %4020 = vmatprep.subr.bf16.mxu1 %v4405_v18  ;;  %v4432_v55 = vld [vmem:[%s5461_s3 + $0x108] sm:$0xff]   ;;  %v4434_v57 = vld [vmem:[%s5461_s3 + $0x100] sm:$0xff]   ;;  %s5476_s3 = smov 112  }
  0x2a   : > { %3999 = vmatpush3.bf16.msra.mxu0 %v4404_v17  ;;  %v883_v58 = vld [vmem:[%s4830_s10 + $0x20] sm:$0xff]  ;;  %v4435_v60 = vld [vmem:[%s5463_s1 + $0x8] sm:$0xff]   ;;  %s5443_s10 = smov 96  }
  0x2b   : > { %4000 = vmatprep.subr.bf16.mxu0 %v4407_v20  ;;  %v889_v59 = vpack.c.bf16 %v883_v58, %v883_v58  ;;  %v1406_v61 = vld [vmem:[%s5464_s30] sm:$0x1]  ;;  %s5467_s30 = sld [smem:[#allocation12_spill]] }
  0x2c   : > { %4021 = vmatpush3.bf16.msra.mxu1 %v4406_v19  ;;  %v4436_v63 = vld [vmem:[%s5463_s1] sm:$0xff]   ;;  %1408 = vst.msk [vmem:[#allocation2 + $0x8] sm:$0x1] %vm1407_vm1, %v1406_v61 }
  0x2d   : > { %4022 = vmatprep.subr.bf16.mxu1 %v4409_v22  ;;  %v3828_v9 = vld [vmem:[%s5465_s2] ss:$0 sm:$0xff]  ;;  %s5442_s2 = smov 120  }
  0x2e   : > { %4001 = vmatpush3.bf16.msra.mxu0 %v4408_v21  ;;  %v1402_v16 = vld [vmem:[%s5466_s12] sm:$0xff]  ;;  %s5432_s12 = smov 104  }
  0x2f   : > { %4002 = vmatprep.subr.bf16.mxu0 %v4411_v24 }
  0x30   : > { %4023 = vmatpush3.bf16.msra.mxu1 %v4410_v23 }
  0x31   : > { %4024 = vmatprep.subr.bf16.mxu1 %v4413_v26 }
  0x32   : > { %4003 = vmatpush3.bf16.msra.mxu0 %v4412_v25  ;;  %v3877_v25 = vld [vmem:[%s5467_s30] ss:$0 sm:$0xff] }
  0x33   : > { %4004 = vmatprep.subr.bf16.mxu0 %v4415_v28  ;;  %v4920_v21 = vld [vmem:[#allocation2 + $0x8] sm:$0x1] }
  0x34   : > { %4025 = vmatpush3.bf16.msra.mxu1 %v4414_v27 }
  0x35   : > { %4026 = vmatprep.subr.bf16.mxu1 %v4417_v30 }
  0x36   : > { %4005 = vmatpush3.bf16.msra.mxu0 %v4416_v29 }
  0x37   : > { %4034 = vmatprep.subr.bf16.mxu0 %v4419_v36 }
  0x38   : > { %4027 = vmatpush3.bf16.msra.mxu1 %v4418_v33 }
  0x39   : > { %1315 = vmatmul.mubr.bf16.vlgmr.msra.gmra.mxu0 %v885_v35  ;;  %4137 = vmatprep.subr.bf16.mxu1 %v4563_v62 }
  0x3a   : > { %4035 = vmatpush3.bf16.msra.mxu0 %v4420_v39  ;;  %1394 = vmatprep.mubr.bf16.mxu0 %v890_v53 }
  0x3b   : > { %1355 = vmatmul.mubr.bf16.vlgmr.msra.gmra.mxu1 %v887_v41  ;;  %4036 = vmatprep.subr.bf16.mxu0 %v4421_v42 }
  0x3c   : > { %4141 = vmatprep.mubr.msk.bf16.mxu1 %vm4564_vm0, %v4563_v62  ;;  %4138 = vmatpush3.bf16.msra.mxu1 %v4435_v60 }
  0x3d   : > { %4139 = vmatprep.subr.bf16.mxu1 %v4563_v62 }
  0x3e   : > { %4037 = vmatpush3.bf16.msra.mxu0 %v4422_v43 }
  0x3f   : > { %4038 = vmatprep.subr.bf16.mxu0 %v4423_v44 }
  0x40   : > { %4140 = vmatpush3.bf16.msra.mxu1 %v4436_v63 }
  0x41   : > { %4145 = vmatprep.subr.bf16.mxu1 %v4563_v62 }
  0x42   : > { %4039 = vmatpush3.bf16.msra.mxu0 %v4424_v45  ;;  %v4568_v45 = vmov 65535  }
  0x43   : > { %4040 = vmatprep.subr.bf16.mxu0 %v4425_v46  ;;  %v1565_v46 = vsel %vm1563_vm6, 4294967295, %v4568_v45 }
  0x46   : > { %4041 = vmatpush3.bf16.msra.mxu0 %v4426_v47 }
  0x47   : > { %4042 = vmatprep.subr.bf16.mxu0 %v4427_v48 }
  0x4a   : > { %4043 = vmatpush3.bf16.msra.mxu0 %v4428_v49  ;;  %v4948_v49 = vsel %vm1564_vm7, %v1565_v46, 0 }
  0x4b   : > { %4044 = vmatprep.subr.bf16.mxu0 %v4429_v50 }
  0x4e   : > { %4045 = vmatpush3.bf16.msra.mxu0 %v4430_v52 }
  0x4f   : > { %4046 = vmatprep.subr.bf16.mxu0 %v4431_v54 }
  0x52   : > { %4047 = vmatpush3.bf16.msra.mxu0 %v4432_v55 }
  0x53   : > { %4048 = vmatprep.subr.bf16.mxu0 %v4433_v56 }
  0x56   : > { %4049 = vmatpush3.bf16.msra.mxu0 %v4434_v57 }
  0x57   : > { %4163 = vmatprep.subr.bf16.mxu0 %v4563_v62 }
  0x59   : > { %1395 = vmatmul.mubr.bf16.vlgmr.msra.gmra.mxu0 %v889_v59 }
  0x5a   : > { %4165 = vmatprep.mubr.msk.bf16.mxu0 %vm4564_vm0, %v4563_v62 }
  0xf9   : > { %v4006_v0 = vpop.f32.mrf.mxu0 }
  0xfb   : > { %v4007_v1 = vpop.f32.mrf.mxu0  ;;  %v4028_v2 = vpop.f32.mrf.mxu1 }
  0xfc   : > { %v4008_v8 = vadd.f32 %v4007_v1, %v4006_v0 }
  0xfd   : > { %v4009_v3 = vpop.f32.mrf.mxu0  ;;  %v4029_v4 = vpop.f32.mrf.mxu1 }
  0xfe   : > { %v1317_v10 = vadd.f32 %v4008_v8, %v3828_v9  ;;  %v4030_v11 = vadd.f32 %v4029_v4, %v4028_v2 }
  0xff   : > { %v4010_v5 = vpop.f32.mrf.mxu0  ;;  %v4031_v6 = vpop.f32.mrf.mxu1 }
 0x100   : > { %v1357_v14 = vadd.f32 %v4030_v11, %v1317_v10 }
 0x101   : > { %v4032_v7 = vpop.f32.mrf.mxu1 }
 0x119   : > { %v4050_v12 = vpop.f32.mrf.mxu0 }
 0x11b   : > { %v4051_v13 = vpop.f32.mrf.mxu0 }
 0x11c   : > { %v4052_v15 = vadd.f32 %v4051_v13, %v4050_v12 }
 0x11d   : > { %v4053_v17 = vpop.f32.mrf.mxu0 }
 0x11e   : > { %v1397_v18 = vadd.f32 %v4052_v15, %v1357_v14 }
 0x11f   : > { %v4054_v19 = vpop.f32.mrf.mxu0 }
 0x120   : > { %v1403_v20 = vadd.f32 %v1402_v16, %v1397_v18 }
 0x122   : > { %1405 = vst.msk [vmem:[#allocation2] sm:$0xff] %vm1404_vm2, %v1403_v20 }
 0x129   : > { %v4922_v22 = vld [vmem:[#allocation2] sm:$0xff] }
 0x12a   : > { %v1411_v23 = vpack.c.bf16 %v4920_v21, %v4922_v22 }
 0x12c   : > { %4142 = vmatmul.mubr.msk.bf16.vlgmr.msra.gmra.mxu1 %vm1404_vm2, %v1411_v23 }
 0x12d   : > { %4147 = vmatprep.mubr.msk.bf16.mxu1 %vm4564_vm0, %v4563_v62 }
 0x1ec   : > { %v1472_v24 = vpop.f32.mrf.mxu1 }
 0x1ed   : > { %v1473_v28 = vadd.f32 %v3877_v25, %v1472_v24 }
 0x1ee   : > { %v4143_v26 = vpop.f32.mrf.mxu1 }
 0x1f0   : > { %v1475_v27 = vpop.f32.mrf.mxu1 }
 0x1f1   : > { %v1476_v29 = vadd.f32 %v3877_v25, %v1475_v27 }
 0x1f2   : > { %v4144_v30 = vpop.f32.mrf.mxu1 }
 0x1f3   : > { %v4932_v31 = vpack.c.bf16 %v1476_v29, %v1473_v28 }
 0x1f5   : > { %1481 = vrot.lane.b32.xlu0 %v4932_v31, %s5443_s10  ;;  %s5473_s10 = smov 96  }
 0x267   : > { %v1482_v32 = vpop.permute.xlu0 %1481 }
 0x268   : > { %v1488_v33 = vsel %vm1483_vm3, %v1482_v32, 0 }
 0x269   : > { %4146 = vmatpush3.bf16.xpose.msra.mxu1 %v1488_v33 }
 0x26a   : > { %4151 = vmatprep.subr.bf16.mxu1 %v4563_v62 }
 0x270   : > { %4148 = vmatmul.mubr.msk.bf16.vlgmr.msra.gmra.mxu1 %vm1483_vm3, %v4932_v31 }
 0x271   : > { %4153 = vmatprep.mubr.msk.bf16.mxu1 %vm4564_vm0, %v4563_v62 }
 0x330   : > { %v1524_v34 = vpop.f32.mrf.mxu1 }
 0x331   : > { %v1531_v35 = vmul.f32 0.35355338, %v1524_v34 }
 0x332   : > { %v4149_v36 = vpop.f32.mrf.mxu1 }
 0x333   : > { %v1534_v37 = vsel %vm1533_vm4, %v1531_v35, -inf }
 0x334   : > { %1535 = vmax.xlane.f32.xlu0 %v1534_v37  ;;  %v1527_v38 = vpop.f32.mrf.mxu1 }
 0x335   : > { %v1532_v39 = vmul.f32 0.35355338, %v1527_v38 }
 0x336   : > { %v4150_v40 = vpop.f32.mrf.mxu1 }
 0x337   : > { %v1538_v41 = vsel %vm1537_vm5, %v1532_v39, -inf }
 0x338   : > { %1539 = vmax.xlane.f32.xlu1 %v1538_v41 }
 0x349   : > { %1558 = vrot.lane.b32.xlu1 %v4932_v31, %s5430_s0  ;;  %s5436_s0 = smov 24  }
 0x34a   : > { %1753 = vrot.lane.b32.xlu0 %v4932_v31, %s5435_s11  ;;  %s5470_s11 = sld [smem:[#allocation15_spill]] }
 0x3bd   : > { %v1536_v42 = vpop.xlane.xlu0 %1535 }
 0x3be   : > { %v1541_v43 = vsub.f32 %v1531_v35, %v1536_v42 }
 0x3c0   : > { %v1543_v44 = vmul.f32 1.442695, %v1541_v43 }
 0x3c1   : > { %v1540_v47 = vpop.xlane.xlu1 %1539  ;;  %v1754_v4 = vpop.permute.xlu0 %1753 }
 0x3c2   : > { %4467 = vpow2.f32 %v1543_v44  ;;  %v1542_v48 = vsub.f32 %v1532_v39, %v1540_v47  ;;  %v1759_v6 = vsel %vm1483_vm3, %v1754_v4, 0 }
 0x3c4   : > { %v1545_v50 = vmul.f32 1.442695, %v1542_v48 }
 0x3c5   : > { %v1559_v51 = vpop.permute.xlu1 %1558 }
 0x3c6   : > { %4469 = vpow2.f32 %v1545_v50  ;;  %v1568_v52 = vand.u32 %v4948_v49, %v1559_v51 }
 0x3c8   : > { %4152 = vmatpush3.bf16.msra.mxu1 %v1568_v52 }
 0x3c9   : > { %4157 = vmatprep.subr.bf16.mxu1 %v4563_v62 }
 0x3cf   : > { %v4468_v53 = vpop.eup %4467 }
 0x3d0   : > { %v1547_v54 = vsel %vm1533_vm4, %v4468_v53, 0.0 }
 0x3d1   : > { %1548 = vadd.xlane.f32.xlu1 %v1547_v54 }
 0x3d3   : > { %v4470_v55 = vpop.eup %4469 }
 0x3d4   : > { %v1550_v56 = vsel %vm1537_vm5, %v4470_v55, 0.0 }
 0x3d5   : > { %1551 = vadd.xlane.f32.xlu1 %v1550_v56 }
 0x3e6   : > { %1616 = vrot.lane.b32.xlu1 %v4932_v31, %s5444_s29  ;;  %s5474_s29 = smov 120  }
 0x3ea   : > { %1614 = vrot.lane.b32.xlu1 %v4932_v31, %s5442_s2  ;;  %s5478_s2 = smov 104  }
 0x3ee   : > { %1751 = vrot.lane.b32.xlu1 %v4932_v31, %s5434_s6  ;;  %s5471_s6 = sld [smem:[#allocation16_spill]] }
 0x3f2   : > { %1890 = vrot.lane.b32.xlu1 %v4932_v31, %s5433_s7  ;;  %s5438_s7 = smov 16  }
 0x3f6   : > { %1888 = vrot.lane.b32.xlu1 %v4932_v31, %s5432_s12  ;;  %s5468_s12 = sld [smem:[#allocation13_spill]] }
 0x45a   : > { %v1549_v57 = vpop.xlane.xlu1 %1548 }
 0x45b   : > { %4471 = vrcp.f32 %v1549_v57 }
 0x45e   : > { %v1552_v58 = vpop.xlane.xlu1 %1551 }
 0x45f   : > { %4473 = vrcp.f32 %v1552_v58 }
 0x462   : > { %v1617_v61 = vpop.permute.xlu1 %1616 }
 0x463   : > { %v1622_v2 = vsel %vm1483_vm3, %v1617_v61, 0 }
 0x466   : > { %v1615_v3 = vpop.permute.xlu1 %1614 }
 0x468   : > { %v4472_v59 = vpop.eup %4471 }
 0x469   : > { %v1555_v63 = vmul.f32 %v4472_v59, %v4468_v53 }
 0x46a   : > { %v1752_v5 = vpop.permute.xlu1 %1751 }
 0x46c   : > { %v4474_v60 = vpop.eup %4473 }
 0x46d   : > { %v1556_v0 = vmul.f32 %v4474_v60, %v4470_v55 }
 0x46e   : > { %v1891_v7 = vpop.permute.xlu1 %1890 }
 0x46f   : > { %v1557_v1 = vpack.c.bf16 %v1556_v0, %v1555_v63  ;;  %v1896_v8 = vsel %vm1483_vm3, %v1891_v7, 0 }
 0x471   : > { %4154 = vmatmul.mubr.msk.bf16.vlgmr.msra.gmra.mxu1 %vm1533_vm4, %v1557_v1 }
 0x472   : > { %4158 = vmatpush3.bf16.xpose.msra.mxu1 %v1622_v2  ;;  %4159 = vmatprep.mubr.msk.bf16.mxu1 %vm4564_vm0, %v4563_v62  ;;  %v1889_v9 = vpop.permute.xlu1 %1888 }
 0x473   : > { %4169 = vmatprep.subr.bf16.mxu1 %v4563_v62 }
 0x479   : > { %4160 = vmatmul.mubr.msk.bf16.vlgmr.msra.gmra.mxu1 %vm1483_vm3, %v1615_v3 }
 0x47a   : > { %4170 = vmatpush3.bf16.xpose.msra.mxu1 %v1759_v6  ;;  %4171 = vmatprep.mubr.msk.bf16.mxu1 %vm4564_vm0, %v4563_v62 }
 0x47b   : > { %4181 = vmatprep.subr.bf16.mxu1 %v4563_v62 }
 0x481   : > { %4172 = vmatmul.mubr.msk.bf16.vlgmr.msra.gmra.mxu1 %vm1483_vm3, %v1752_v5 }
 0x482   : > { %4182 = vmatpush3.bf16.xpose.msra.mxu1 %v1896_v8  ;;  %4183 = vmatprep.mubr.msk.bf16.mxu1 %vm4564_vm0, %v4563_v62 }
 0x483   : > { %4193 = vmatprep.subr.bf16.mxu1 %v4563_v62 }
 0x489   : > { %4184 = vmatmul.mubr.msk.bf16.vlgmr.msra.gmra.mxu1 %vm1483_vm3, %v1889_v9 }
 0x48a   : > { %4197 = vmatprep.mubr.msk.bf16.mxu1 %vm4564_vm0, %v4563_v62 }
 0x531   : > { %v1604_v10 = vpop.f32.mrf.mxu1 }
 0x532   : > { %1611 = vst.msk [vmem:[#allocation3] sm:$0xff] %vm1483_vm3, %v1604_v10 }
 0x533   : > { %v4155_v11 = vpop.f32.mrf.mxu1 }
 0x535   : > { %v1607_v12 = vpop.f32.mrf.mxu1 }
 0x536   : > { %1613 = vst.msk [vmem:[#allocation3 + $0x8] sm:$0x1] %vm1612_vm8, %v1607_v12 }
 0x537   : > { %v4156_v13 = vpop.f32.mrf.mxu1 }
 0x539   : > { %v1658_v14 = vpop.f32.mrf.mxu1 }
 0x53a   : > { %v1665_v15 = vmul.f32 0.35355338, %v1658_v14 }
 0x53b   : > { %v4161_v16 = vpop.f32.mrf.mxu1 }
 0x53c   : > { %v1667_v17 = vsel %vm1533_vm4, %v1665_v15, -inf }
 0x53d   : > { %1668 = vmax.xlane.f32.xlu1 %v1667_v17  ;;  %v1661_v18 = vpop.f32.mrf.mxu1 }
 0x53e   : > { %v1666_v19 = vmul.f32 0.35355338, %v1661_v18 }
 0x53f   : > { %v4162_v20 = vpop.f32.mrf.mxu1 }
 0x540   : > { %v1670_v23 = vsel %vm1537_vm5, %v1666_v19, -inf }
 0x541   : > { %1671 = vmax.xlane.f32.xlu0 %v1670_v23  ;;  %v1795_v24 = vpop.f32.mrf.mxu1 }
 0x542   : > { %v1802_v25 = vmul.f32 0.35355338, %v1795_v24 }
 0x543   : > { %v4173_v26 = vpop.f32.mrf.mxu1 }
 0x544   : > { %v1804_v27 = vsel %vm1533_vm4, %v1802_v25, -inf }
 0x545   : > { %1805 = vmax.xlane.f32.xlu1 %v1804_v27  ;;  %v1798_v28 = vpop.f32.mrf.mxu1 }
 0x546   : > { %v1803_v29 = vmul.f32 0.35355338, %v1798_v28 }
 0x547   : > { %v4174_v30 = vpop.f32.mrf.mxu1 }
 0x548   : > { %v1807_v32 = vsel %vm1537_vm5, %v1803_v29, -inf }
 0x549   : > { %1808 = vmax.xlane.f32.xlu0 %v1807_v32  ;;  %v1932_v33 = vpop.f32.mrf.mxu1 }
 0x54a   : > { %v1939_v34 = vmul.f32 0.35355338, %v1932_v33 }
 0x54b   : > { %v4185_v35 = vpop.f32.mrf.mxu1 }
 0x54c   : > { %v1941_v36 = vsel %vm1533_vm4, %v1939_v34, -inf }
 0x54d   : > { %1942 = vmax.xlane.f32.xlu1 %v1941_v36  ;;  %v1935_v37 = vpop.f32.mrf.mxu1 }
 0x54e   : > { %v1940_v38 = vmul.f32 0.35355338, %v1935_v37 }
 0x54f   : > { %v4186_v39 = vpop.f32.mrf.mxu1 }
 0x550   : > { %v1944_v40 = vsel %vm1537_vm5, %v1940_v38, -inf }
 0x551   : > { %1945 = vmax.xlane.f32.xlu0 %v1944_v40 }
 0x55e   : > { %1690 = vrot.lane.b32.xlu1 %v4932_v31, %s5427_s4  ;;  %s5429_s4 = smov 48  }
 0x5c6   : > { %v1669_v41 = vpop.xlane.xlu1 %1668 }
 0x5c7   : > { %v1673_v42 = vsub.f32 %v1665_v15, %v1669_v41 }
 0x5c9   : > { %v1675_v43 = vmul.f32 1.442695, %v1673_v42 }
 0x5ca   : > { %v1672_v44 = vpop.xlane.xlu0 %1671 }
 0x5cb   : > { %4475 = vpow2.f32 %v1675_v43  ;;  %v1674_v45 = vsub.f32 %v1666_v19, %v1672_v44  ;;  %v4437_v43 = vld [vmem:[%s5468_s12 + $0x8] sm:$0xff]  }
 0x5cc   : > { %4194 = vmatpush3.bf16.msra.mxu1 %v4437_v43  ;;  %v3895_v43 = vld [vmem:[%s5405_s14] ss:$0 sm:$0xff] }
 0x5cd   : > { %v1677_v46 = vmul.f32 1.442695, %v1674_v45  ;;  %v4438_v45 = vld [vmem:[%s5468_s12] sm:$0xff]   ;;  %4195 = vmatprep.subr.bf16.mxu1 %v4563_v62 }
 0x5ce   : > { %v1806_v47 = vpop.xlane.xlu1 %1805 }
 0x5cf   : > { %4477 = vpow2.f32 %v1677_v46  ;;  %v1810_v48 = vsub.f32 %v1802_v25, %v1806_v47 }
 0x5d0   : > { %4196 = vmatpush3.bf16.msra.mxu1 %v4438_v45 }
 0x5d1   : > { %v1812_v50 = vmul.f32 1.442695, %v1810_v48  ;;  %4209 = vmatprep.subr.bf16.mxu1 %v4563_v62 }
 0x5d2   : > { %v1809_v51 = vpop.xlane.xlu0 %1808 }
 0x5d3   : > { %4479 = vpow2.f32 %v1812_v50  ;;  %v1811_v52 = vsub.f32 %v1803_v29, %v1809_v51 }
 0x5d5   : > { %v1814_v53 = vmul.f32 1.442695, %v1811_v52 }
 0x5d6   : > { %v1943_v54 = vpop.xlane.xlu1 %1942 }
 0x5d7   : > { %4481 = vpow2.f32 %v1814_v53  ;;  %v1947_v55 = vsub.f32 %v1939_v34, %v1943_v54 }
 0x5d8   : > { %v4476_v56 = vpop.eup %4475 }
 0x5d9   : > { %v1949_v57 = vmul.f32 1.442695, %v1947_v55  ;;  %v1679_v58 = vsel %vm1533_vm4, %v4476_v56, 0.0 }
 0x5da   : > { %1680 = vadd.xlane.f32.xlu1 %v1679_v58  ;;  %v1691_v59 = vpop.permute.xlu1 %1690  ;;  %v1946_v60 = vpop.xlane.xlu0 %1945 }
 0x5db   : > { %4483 = vpow2.f32 %v1949_v57  ;;  %v1696_v61 = vand.u32 %v1691_v59, %v4948_v49  ;;  %v1948_v63 = vsub.f32 %v1940_v38, %v1946_v60 }
 0x5dc   : > { %v4478_v0 = vpop.eup %4477 }
 0x5dd   : > { %v1951_v1 = vmul.f32 1.442695, %v1948_v63  ;;  %4164 = vmatpush3.bf16.msra.mxu0 %v1696_v61  ;;  %v1682_v2 = vsel %vm1537_vm5, %v4478_v0, 0.0 }
 0x5de   : > { %1683 = vadd.xlane.f32.xlu0 %v1682_v2  ;;  %4175 = vmatprep.subr.bf16.mxu0 %v4563_v62 }
 0x5df   : > { %4485 = vpow2.f32 %v1951_v1 }
 0x5e0   : > { %v4480_v3 = vpop.eup %4479 }
 0x5e1   : > { %v1816_v4 = vsel %vm1533_vm4, %v4480_v3, 0.0 }
 0x5e2   : > { %1817 = vadd.xlane.f32.xlu1 %v1816_v4 }
 0x5e4   : > { %v4482_v5 = vpop.eup %4481 }
 0x5e5   : > { %v1819_v6 = vsel %vm1537_vm5, %v4482_v5, 0.0 }
 0x5e6   : > { %1820 = vadd.xlane.f32.xlu0 %v1819_v6 }
 0x5e8   : > { %v4484_v7 = vpop.eup %4483 }
 0x5e9   : > { %v1953_v8 = vsel %vm1533_vm4, %v4484_v7, 0.0 }
 0x5ea   : > { %1954 = vadd.xlane.f32.xlu1 %v1953_v8 }
 0x5ec   : > { %v4486_v9 = vpop.eup %4485 }
 0x5ed   : > { %v1956_v10 = vsel %vm1537_vm5, %v4486_v9, 0.0 }
 0x5ee   : > { %1957 = vadd.xlane.f32.xlu0 %v1956_v10 }
 0x5fb   : > { %1964 = vrot.lane.b32.xlu1 %v4932_v31, %s5428_s9  ;;  %s5440_s9 = smov 8  }
 0x604   : > { %1827 = vrot.lane.b32.xlu0 %v4932_v31, %s5429_s4  ;;  %s5469_s4 = sld [smem:[#allocation14_spill]] }
 0x60a   : > { %v3889_v63 = vld [vmem:[%s5469_s4] ss:$0 sm:$0xff] }
 0x663   : > { %v1681_v11 = vpop.xlane.xlu1 %1680 }
 0x664   : > { %4487 = vrcp.f32 %v1681_v11 }
 0x667   : > { %v1684_v12 = vpop.xlane.xlu0 %1683 }
 0x668   : > { %4489 = vrcp.f32 %v1684_v12 }
 0x66b   : > { %v1818_v13 = vpop.xlane.xlu1 %1817 }
 0x66c   : > { %4491 = vrcp.f32 %v1818_v13 }
 0x66f   : > { %v1821_v14 = vpop.xlane.xlu0 %1820 }
 0x670   : > { %4493 = vrcp.f32 %v1821_v14 }
 0x671   : > { %v4488_v15 = vpop.eup %4487 }
 0x672   : > { %v1687_v18 = vmul.f32 %v4488_v15, %v4476_v56 }
 0x673   : > { %v1955_v16 = vpop.xlane.xlu1 %1954 }
 0x674   : > { %4495 = vrcp.f32 %v1955_v16 }
 0x675   : > { %v4490_v17 = vpop.eup %4489 }
 0x676   : > { %v1688_v19 = vmul.f32 %v4490_v17, %v4478_v0 }
 0x677   : > { %v1958_v20 = vpop.xlane.xlu0 %1957  ;;  %v1965_v27 = vpop.permute.xlu1 %1964 }
 0x678   : > { %4497 = vrcp.f32 %v1958_v20  ;;  %v1689_v23 = vpack.c.bf16 %v1688_v19, %v1687_v18  ;;  %v1970_v32 = vand.u32 %v1965_v27, %v4948_v49  ;;  %v4440_v19 = vld [vmem:[%s5404_s13] sm:$0xff]   ;;  %v4441_v20 = vld [vmem:[%s5406_s15 + $0x18] sm:$0xff]  }
 0x679   : > { %v4492_v31 = vpop.eup %4491 }
 0x67a   : > { %4166 = vmatmul.mubr.msk.bf16.vlgmr.msra.gmra.mxu0 %vm1533_vm4, %v1689_v23  ;;  %v1824_v28 = vmul.f32 %v4492_v31, %v4480_v3 }
 0x67b   : > { %v1828_v24 = vpop.permute.xlu0 %1827  ;;  %4177 = vmatprep.mubr.msk.bf16.mxu0 %vm4564_vm0, %v4563_v62 }
 0x67c   : > { %v1833_v25 = vand.u32 %v1828_v24, %v4948_v49 }
 0x67d   : > { %v4494_v26 = vpop.eup %4493 }
 0x67e   : > { %4176 = vmatpush3.bf16.msra.mxu0 %v1833_v25  ;;  %v1825_v29 = vmul.f32 %v4494_v26, %v4482_v5 }
 0x67f   : > { %4187 = vmatprep.subr.bf16.mxu0 %v4563_v62 }
 0x680   : > { %v1826_v30 = vpack.c.bf16 %v1825_v29, %v1824_v28 }
 0x681   : > { %v4496_v33 = vpop.eup %4495 }
 0x682   : > { %4178 = vmatmul.mubr.msk.bf16.vlgmr.msra.gmra.mxu0 %vm1533_vm4, %v1826_v30  ;;  %v1961_v35 = vmul.f32 %v4496_v33, %v4484_v7  ;;  %v3893_v30 = vld [vmem:[%s5470_s11] ss:$0 sm:$0xff] }
 0x683   : > { %4188 = vmatpush3.bf16.msra.mxu0 %v1970_v32  ;;  %4189 = vmatprep.mubr.msk.bf16.mxu0 %vm4564_vm0, %v4563_v62 }
 0x684   : > { %4201 = vmatprep.subr.bf16.mxu0 %v4563_v62 }
 0x685   : > { %v4498_v34 = vpop.eup %4497 }
 0x686   : > { %v1962_v36 = vmul.f32 %v4498_v34, %v4486_v9 }
 0x688   : > { %v1963_v37 = vpack.c.bf16 %v1962_v36, %v1961_v35  ;;  %v3894_v35 = vld [vmem:[%s5471_s6] ss:$0 sm:$0xff] }
 0x68a   : > { %4190 = vmatmul.mubr.msk.bf16.vlgmr.msra.gmra.mxu0 %vm1533_vm4, %v1963_v37 }
 0x68b   : > { %4205 = vmatprep.mubr.msk.bf16.mxu0 %vm4564_vm0, %v4563_v62 }
 0x73a   : > { %v1732_v38 = vpop.f32.mrf.mxu0 }
 0x73b   : > { %1741 = vrot.lane.b32.xlu1 %v1732_v38, %s5440_s9 }
 0x73c   : > { %v4167_v39 = vpop.f32.mrf.mxu0 }
 0x73e   : > { %v1735_v40 = vpop.f32.mrf.mxu0 }
 0x73f   : > { %1743 = vrot.lane.b32.xlu0 %v1735_v40, %s5440_s9  ;;  %v4442_v40 = vld [vmem:[%s5406_s15 + $0x10] sm:$0xff]   ;;  %s5472_s9 = smov 88  }
 0x740   : > { %v4168_v41 = vpop.f32.mrf.mxu0 }
 0x741   : > { %v4443_v41 = vld [vmem:[%s5406_s15 + $0x8] sm:$0xff]  }
 0x742   : > { %v1869_v42 = vpop.f32.mrf.mxu0 }
 0x743   : > { %1878 = vrot.lane.b32.xlu1 %v1869_v42, %s5438_s7  ;;  %v4444_v42 = vld [vmem:[%s5406_s15] sm:$0xff]  }
 0x744   : > { %v4179_v44 = vpop.f32.mrf.mxu0 }
 0x746   : > { %v1872_v46 = vpop.f32.mrf.mxu0 }
 0x747   : > { %1880 = vrot.lane.b32.xlu0 %v1872_v46, %s5438_s7  ;;  %s5475_s7 = smov 80  }
 0x748   : > { %v4180_v47 = vpop.f32.mrf.mxu0 }
 0x74a   : > { %v2006_v48 = vpop.f32.mrf.mxu0 }
 0x74b   : > { %2015 = vrot.lane.b32.xlu1 %v2006_v48, %s5436_s0 }
 0x74c   : > { %v4191_v50 = vpop.f32.mrf.mxu0 }
 0x74e   : > { %v2009_v51 = vpop.f32.mrf.mxu0 }
 0x74f   : > { %2017 = vrot.lane.b32.xlu0 %v2009_v51, %s5436_s0  ;;  %s5477_s0 = smov 72  }
 0x750   : > { %v4192_v52 = vpop.f32.mrf.mxu0 }
 0x7ad   : > { %v1742_v53 = vpop.permute.xlu1 %1741 }
 0x7ae   : > { %1748 = vst.msk [vmem:[#allocation3] sm:$0xff] %vm1747_vm9, %v1742_v53 }
 0x7b1   : > { %v1744_v54 = vpop.permute.xlu0 %1743 }
 0x7b2   : > { %1750 = vst.msk [vmem:[#allocation3 + $0x8] sm:$0x1] %vm1749_vm10, %v1744_v54  ;;  %v3899_v54 = vld [vmem:[%s5407_s16] ss:$0 sm:$0xff] }
 0x7b5   : > { %v1879_v55 = vpop.permute.xlu1 %1878 }
 0x7b6   : > { %1885 = vst.msk [vmem:[#allocation3] sm:$0xff] %vm1884_vm11, %v1879_v55 }
 0x7b9   : > { %v1881_v56 = vpop.permute.xlu0 %1880 }
 0x7ba   : > { %1887 = vst.msk [vmem:[#allocation3 + $0x8] sm:$0x1] %vm1886_vm12, %v1881_v56 }
 0x7bd   : > { %v2016_v57 = vpop.permute.xlu1 %2015 }
 0x7be   : > { %2022 = vst.msk [vmem:[#allocation3] sm:$0xff] %vm2021_vm13, %v2016_v57 }
 0x7c1   : > { %v2018_v58 = vpop.permute.xlu0 %2017 }
 0x7c2   : > { %2024 = vst.msk [vmem:[#allocation3 + $0x8] sm:$0x1] %vm2023_vm14, %v2018_v58 }
 0x7c5   : > { %v2025_v59 = vld [vmem:[#allocation3] sm:$0xff] }
 0x7c9   : > { %v2026_v60 = vld [vmem:[#allocation3 + $0x8] sm:$0x1] }
 0x7ca   : > { %v2027_v61 = vpack.c.bf16 %v2026_v60, %v2025_v59 }
 0x7cc   : > { %4198 = vmatmul.mubr.msk.bf16.vlgmr.msra.gmra.mxu1 %vm1404_vm2, %v2027_v61 }
 0x7cd   : > { %4217 = vmatprep.mubr.msk.bf16.mxu1 %vm4564_vm0, %v4563_v62  ;;  %4210 = vmatpush3.bf16.msra.mxu1 %v4441_v20  ;;  %v3905_v20 = vld [vmem:[%s5408_s17] ss:$0 sm:$0xff] }
 0x7ce   : > { %4211 = vmatprep.subr.bf16.mxu1 %v4563_v62 }
 0x7d1   : > { %4212 = vmatpush3.bf16.msra.mxu1 %v4442_v40 }
 0x7d2   : > { %4213 = vmatprep.subr.bf16.mxu1 %v4563_v62 }
 0x7d5   : > { %4214 = vmatpush3.bf16.msra.mxu1 %v4443_v41 }
 0x7d6   : > { %4215 = vmatprep.subr.bf16.mxu1 %v4563_v62 }
 0x7d9   : > { %4216 = vmatpush3.bf16.msra.mxu1 %v4444_v42 }
 0x7da   : > { %4235 = vmatprep.subr.bf16.mxu1 %v4563_v62 }
 0x88c   : > { %v2088_v0 = vpop.f32.mrf.mxu1 }
 0x88d   : > { %v2089_v1 = vadd.f32 %v3889_v63, %v2088_v0 }
 0x88e   : > { %v4199_v2 = vpop.f32.mrf.mxu1 }
 0x88f   : > { %v2095_v3 = vadd.f32 %v2089_v1, %v4922_v22 }
 0x890   : > { %v2091_v4 = vpop.f32.mrf.mxu1 }
 0x891   : > { %v2092_v5 = vadd.f32 %v3889_v63, %v2091_v4  ;;  %v2099_v6 = vsel %vm1404_vm2, %v2095_v3, 0.0 }
 0x892   : > { %2100 = vadd.xlane.f32.xlu1 %v2099_v6  ;;  %v4200_v7 = vpop.f32.mrf.mxu1 }
 0x893   : > { %v2096_v8 = vadd.f32 %v2092_v5, %v4920_v21  ;;  %v4439_v21 = vld [vmem:[%s5404_s13 + $0x8] sm:$0xff]  }
 0x894   : > { %4202 = vmatpush3.bf16.msra.mxu0 %v4439_v21 }
 0x895   : > { %v2102_v9 = vsel %vm1407_vm1, %v2096_v8, 0.0  ;;  %4203 = vmatprep.subr.bf16.mxu0 %v4563_v62 }
 0x896   : > { %2103 = vadd.xlane.f32.xlu0 %v2102_v9 }
 0x898   : > { %4204 = vmatpush3.bf16.msra.mxu0 %v4440_v19 }
 0x899   : > { %4221 = vmatprep.subr.bf16.mxu0 %v4563_v62 }
 0x91b   : > { %v2101_v10 = vpop.xlane.xlu1 %2100 }
 0x91c   : > { %v2106_v11 = vmul.f32 0.03125, %v2101_v10 }
 0x91e   : > { %v2108_v12 = vsub.f32 %v2095_v3, %v2106_v11 }
 0x91f   : > { %v2104_v13 = vpop.xlane.xlu0 %2103 }
 0x920   : > { %v2107_v14 = vmul.f32 0.03125, %v2104_v13  ;;  %v2110_v15 = vmul.f32 %v2108_v12, %v2108_v12  ;;  %v4446_v13 = vld [vmem:[%s5463_s1 + $0x10] sm:$0xff]  }
 0x922   : > { %v2109_v16 = vsub.f32 %v2096_v8, %v2107_v14  ;;  %v2112_v22 = vsel %vm1404_vm2, %v2110_v15, 0.0 }
 0x923   : > { %2113 = vadd.xlane.f32.xlu0 %v2112_v22 }
 0x924   : > { %v2111_v17 = vmul.f32 %v2109_v16, %v2109_v16 }
 0x926   : > { %v2115_v18 = vsel %vm1407_vm1, %v2111_v17, 0.0 }
 0x927   : > { %2116 = vadd.xlane.f32.xlu1 %v2115_v18 }
 0x9ac   : > { %v2114_v23 = vpop.xlane.xlu0 %2113 }
 0x9ad   : > { %v2118_v31 = vmul.f32 0.03125, %v2114_v23 }
 0x9af   : > { %v2120_v24 = vadd.f32 1e-05, %v2118_v31 }
 0x9b0   : > { %v2117_v25 = vpop.xlane.xlu1 %2116 }
 0x9b1   : > { %4499 = vrsqrt.f32 %v2120_v24  ;;  %v2119_v26 = vmul.f32 0.03125, %v2117_v25  ;;  %v3906_v25 = vld [vmem:[%s5409_s18] ss:$0 sm:$0xff] }
 0x9b3   : > { %v2121_v27 = vadd.f32 1e-05, %v2119_v26 }
 0x9b5   : > { %4501 = vrsqrt.f32 %v2121_v27 }
 0x9be   : > { %v4500_v28 = vpop.eup %4499 }
 0x9bf   : > { %v2124_v29 = vmul.f32 %v4500_v28, %v2108_v12  ;;  %v4445_v12 = vld [vmem:[%s5463_s1 + $0x18] sm:$0xff]   ;;  %s5487_s1 = sld [smem:[#allocation6_spill]] }
 0x9c1   : > { %v2132_v34 = vmul.f32 %v3893_v30, %v2124_v29 }
 0x9c2   : > { %v4502_v32 = vpop.eup %4501 }
 0x9c3   : > { %v2125_v33 = vmul.f32 %v4502_v32, %v2109_v16  ;;  %v2140_v37 = vadd.f32 %v3894_v35, %v2132_v34  ;;  %v3912_v32 = vld [vmem:[%s5467_s30 + $0x1] ss:$0 sm:$0xff] }
 0x9c5   : > { %v2133_v36 = vmul.f32 %v3893_v30, %v2125_v33 }
 0x9c7   : > { %v2141_v38 = vadd.f32 %v3894_v35, %v2133_v36 }
 0x9c9   : > { %v2142_v39 = vpack.c.bf16 %v2141_v38, %v2140_v37 }
 0x9cb   : > { %4206 = vmatmul.mubr.msk.bf16.vlgmr.msra.gmra.mxu0 %vm1404_vm2, %v2142_v39 }
 0x9cc   : > { %4225 = vmatprep.mubr.msk.bf16.mxu0 %vm4564_vm0, %v4563_v62  ;;  %4222 = vmatpush3.bf16.msra.mxu0 %v4445_v12 }
 0x9cd   : > { %4223 = vmatprep.subr.bf16.mxu0 %v4563_v62 }
 0x9d0   : > { %4224 = vmatpush3.bf16.msra.mxu0 %v4446_v13 }
 0x9d1   : > { %4229 = vmatprep.subr.bf16.mxu0 %v4563_v62 }
 0xa8b   : > { %v2203_v44 = vpop.f32.mrf.mxu0 }
 0xa8c   : > { %v2204_v46 = vadd.f32 %v3895_v43, %v2203_v44 }
 0xa8d   : > { %v4207_v45 = vpop.f32.mrf.mxu0 }
 0xa8e   : > { %v2210_v51 = vmax.f32 %v2204_v46, 0.0 }
 0xa8f   : > { %v2206_v47 = vpop.f32.mrf.mxu0 }
 0xa90   : > { %v2207_v48 = vadd.f32 %v3895_v43, %v2206_v47 }
 0xa91   : > { %v4208_v50 = vpop.f32.mrf.mxu0 }
 0xa92   : > { %v2211_v52 = vmax.f32 %v2207_v48, 0.0 }
 0xa94   : > { %v2212_v53 = vpack.c.bf16 %v2211_v52, %v2210_v51 }
 0xa96   : > { %4218 = vmatmul.mubr.msk.bf16.vlgmr.msra.gmra.mxu1 %vm2252_vm15, %v2212_v53 }
 0xa97   : > { %4237 = vmatprep.mubr.msk.bf16.mxu1 %vm4564_vm0, %v4563_v62 }
 0xb56   : > { %v2290_v55 = vpop.f32.mrf.mxu1 }
 0xb57   : > { %v2291_v56 = vadd.f32 %v3899_v54, %v2290_v55 }
 0xb58   : > { %v4219_v57 = vpop.f32.mrf.mxu1 }
 0xb59   : > { %v2297_v58 = vadd.f32 %v2291_v56, %v2140_v37 }
 0xb5a   : > { %v2293_v59 = vpop.f32.mrf.mxu1 }
 0xb5b   : > { %v2294_v60 = vadd.f32 %v3899_v54, %v2293_v59  ;;  %v2301_v61 = vsel %vm1404_vm2, %v2297_v58, 0.0 }
 0xb5c   : > { %2302 = vadd.xlane.f32.xlu0 %v2301_v61  ;;  %v4220_v63 = vpop.f32.mrf.mxu1 }
 0xb5d   : > { %v2298_v0 = vadd.f32 %v2294_v60, %v2141_v38 }
 0xb5f   : > { %v2304_v1 = vsel %vm1407_vm1, %v2298_v0, 0.0 }
 0xb60   : > { %2305 = vadd.xlane.f32.xlu1 %v2304_v1 }
 0xbe5   : > { %v2303_v2 = vpop.xlane.xlu0 %2302 }
 0xbe6   : > { %v2307_v3 = vmul.f32 0.03125, %v2303_v2 }
 0xbe8   : > { %v2309_v4 = vsub.f32 %v2297_v58, %v2307_v3 }
 0xbe9   : > { %v2306_v5 = vpop.xlane.xlu1 %2305 }
 0xbea   : > { %v2308_v6 = vmul.f32 0.03125, %v2306_v5  ;;  %v2311_v7 = vmul.f32 %v2309_v4, %v2309_v4 }
 0xbec   : > { %v2310_v8 = vsub.f32 %v2298_v0, %v2308_v6  ;;  %v2313_v9 = vsel %vm1404_vm2, %v2311_v7, 0.0 }
 0xbed   : > { %2314 = vadd.xlane.f32.xlu0 %v2313_v9 }
 0xbee   : > { %v2312_v10 = vmul.f32 %v2310_v8, %v2310_v8 }
 0xbf0   : > { %v2316_v11 = vsel %vm1407_vm1, %v2312_v10, 0.0 }
 0xbf1   : > { %2317 = vadd.xlane.f32.xlu1 %v2316_v11 }
 0xc76   : > { %v2315_v14 = vpop.xlane.xlu0 %2314 }
 0xc77   : > { %v2319_v15 = vmul.f32 0.03125, %v2315_v14 }
 0xc79   : > { %v2321_v16 = vadd.f32 1e-05, %v2319_v15 }
 0xc7a   : > { %v2318_v22 = vpop.xlane.xlu1 %2317 }
 0xc7b   : > { %4503 = vrsqrt.f32 %v2321_v16  ;;  %v2320_v17 = vmul.f32 0.03125, %v2318_v22 }
 0xc7d   : > { %v2322_v18 = vadd.f32 1e-05, %v2320_v17 }
 0xc7f   : > { %4505 = vrsqrt.f32 %v2322_v18 }
 0xc88   : > { %v4504_v21 = vpop.eup %4503 }
 0xc89   : > { %v2325_v19 = vmul.f32 %v4504_v21, %v2309_v4 }
 0xc8b   : > { %v2333_v24 = vmul.f32 %v3905_v20, %v2325_v19 }
 0xc8c   : > { %v4506_v23 = vpop.eup %4505 }
 0xc8d   : > { %v2326_v31 = vmul.f32 %v4506_v23, %v2310_v8  ;;  %v5109_v27 = vadd.f32 %v3906_v25, %v2333_v24 }
 0xc8f   : > { %v2334_v26 = vmul.f32 %v3905_v20, %v2326_v31 }
 0xc91   : > { %v5111_v28 = vadd.f32 %v3906_v25, %v2334_v26 }
 0xc93   : > { %v2343_v29 = vpack.c.bf16 %v5111_v28, %v5109_v27 }
 0xc95   : > { %4226 = vmatmul.mubr.msk.bf16.vlgmr.msra.gmra.mxu0 %vm1404_vm2, %v2343_v29 }
 0xc96   : > { %4231 = vmatprep.mubr.msk.bf16.mxu0 %vm4564_vm0, %v4563_v62 }
 0xd55   : > { %v2406_v30 = vpop.f32.mrf.mxu0 }
 0xd56   : > { %v2407_v35 = vadd.f32 %v3912_v32, %v2406_v30 }
 0xd57   : > { %v4227_v33 = vpop.f32.mrf.mxu0 }
 0xd59   : > { %v2409_v34 = vpop.f32.mrf.mxu0 }
 0xd5a   : > { %v2410_v36 = vadd.f32 %v3912_v32, %v2409_v34 }
 0xd5b   : > { %v4228_v37 = vpop.f32.mrf.mxu0 }
 0xd5c   : > { %v5121_v38 = vpack.c.bf16 %v2410_v36, %v2407_v35 }
 0xd5e   : > { %2542 = vrot.lane.b32.xlu1 %v5121_v38, %s5472_s9  ;;  %2415 = vrot.lane.b32.xlu0 %v5121_v38, %s5473_s10  ;;  %s5479_s9 = smov 64   ;;  %s5480_s10 = smov 48  }
 0xd62   : > { %2540 = vrot.lane.b32.xlu1 %v5121_v38, %s5474_s29  ;;  %2677 = vrot.lane.b32.xlu0 %v5121_v38, %s5475_s7  ;;  %s5481_s29 = smov 40   ;;  %s5482_s7 = smov 56  }
 0xd66   : > { %2675 = vrot.lane.b32.xlu1 %v5121_v38, %s5476_s3  ;;  %2812 = vrot.lane.b32.xlu0 %v5121_v38, %s5477_s0  ;;  %s5483_s3 = smov 8  }
 0xd6a   : > { %2810 = vrot.lane.b32.xlu1 %v5121_v38, %s5478_s2 }
 0xdd0   : > { %v2416_v39 = vpop.permute.xlu0 %2415  ;;  %v2543_v41 = vpop.permute.xlu1 %2542 }
 0xdd1   : > { %v2421_v40 = vsel %vm1483_vm3, %v2416_v39, 0  ;;  %v2548_v42 = vsel %vm1483_vm3, %v2543_v41, 0 }
 0xdd2   : > { %4230 = vmatpush3.bf16.xpose.msra.mxu0 %v2421_v40 }
 0xdd3   : > { %4241 = vmatprep.subr.bf16.mxu0 %v4563_v62 }
 0xdd4   : > { %v2678_v43 = vpop.permute.xlu0 %2677  ;;  %v2541_v44 = vpop.permute.xlu1 %2540 }
 0xdd5   : > { %v2683_v45 = vsel %vm1483_vm3, %v2678_v43, 0 }
 0xdd8   : > { %v2813_v46 = vpop.permute.xlu0 %2812  ;;  %v2676_v47 = vpop.permute.xlu1 %2675 }
 0xdd9   : > { %4232 = vmatmul.mubr.msk.bf16.vlgmr.msra.gmra.mxu0 %vm1483_vm3, %v5121_v38  ;;  %v2818_v48 = vsel %vm1483_vm3, %v2813_v46, 0 }
 0xdda   : > { %4242 = vmatpush3.bf16.xpose.msra.mxu0 %v2548_v42  ;;  %4243 = vmatprep.mubr.msk.bf16.mxu0 %vm4564_vm0, %v4563_v62 }
 0xddb   : > { %4253 = vmatprep.subr.bf16.mxu0 %v4563_v62 }
 0xddc   : > { %v2811_v50 = vpop.permute.xlu1 %2810 }
 0xde1   : > { %4244 = vmatmul.mubr.msk.bf16.vlgmr.msra.gmra.mxu0 %vm1483_vm3, %v2541_v44 }
 0xde2   : > { %4254 = vmatpush3.bf16.xpose.msra.mxu0 %v2683_v45  ;;  %4255 = vmatprep.mubr.msk.bf16.mxu0 %vm4564_vm0, %v4563_v62 }
 0xde3   : > { %4265 = vmatprep.subr.bf16.mxu0 %v4563_v62 }
 0xde9   : > { %4256 = vmatmul.mubr.msk.bf16.vlgmr.msra.gmra.mxu0 %vm1483_vm3, %v2676_v47 }
 0xdea   : > { %4266 = vmatpush3.bf16.xpose.msra.mxu0 %v2818_v48  ;;  %4267 = vmatprep.mubr.msk.bf16.mxu0 %vm4564_vm0, %v4563_v62 }
 0xdeb   : > { %4277 = vmatprep.subr.bf16.mxu0 %v4563_v62 }
 0xdf1   : > { %4268 = vmatmul.mubr.msk.bf16.vlgmr.msra.gmra.mxu0 %vm1483_vm3, %v2811_v50 }
 0xdf2   : > { %4281 = vmatprep.mubr.msk.bf16.mxu0 %vm4564_vm0, %v4563_v62 }
 0xe99   : > { %v2457_v51 = vpop.f32.mrf.mxu0 }
 0xe9a   : > { %v2464_v52 = vmul.f32 0.35355338, %v2457_v51 }
 0xe9b   : > { %v4233_v53 = vpop.f32.mrf.mxu0 }
 0xe9c   : > { %v2466_v54 = vsel %vm1533_vm4, %v2464_v52, -inf }
 0xe9d   : > { %2467 = vmax.xlane.f32.xlu0 %v2466_v54  ;;  %v2460_v55 = vpop.f32.mrf.mxu0 }
 0xe9e   : > { %v2465_v56 = vmul.f32 0.35355338, %v2460_v55 }
 0xe9f   : > { %v4234_v57 = vpop.f32.mrf.mxu0 }
 0xea0   : > { %v2469_v58 = vsel %vm1537_vm5, %v2465_v56, -inf }
 0xea1   : > { %2470 = vmax.xlane.f32.xlu1 %v2469_v58  ;;  %v2584_v59 = vpop.f32.mrf.mxu0 }
 0xea2   : > { %v2591_v60 = vmul.f32 0.35355338, %v2584_v59 }
 0xea3   : > { %v4245_v61 = vpop.f32.mrf.mxu0 }
 0xea4   : > { %v2593_v63 = vsel %vm1533_vm4, %v2591_v60, -inf }
 0xea5   : > { %2594 = vmax.xlane.f32.xlu0 %v2593_v63  ;;  %v2587_v0 = vpop.f32.mrf.mxu0 }
 0xea6   : > { %v2592_v1 = vmul.f32 0.35355338, %v2587_v0 }
 0xea7   : > { %v4246_v2 = vpop.f32.mrf.mxu0 }
 0xea8   : > { %v2596_v3 = vsel %vm1537_vm5, %v2592_v1, -inf }
 0xea9   : > { %2597 = vmax.xlane.f32.xlu0 %v2596_v3  ;;  %v2719_v4 = vpop.f32.mrf.mxu0 }
 0xeaa   : > { %v2726_v5 = vmul.f32 0.35355338, %v2719_v4 }
 0xeab   : > { %v4257_v6 = vpop.f32.mrf.mxu0 }
 0xeac   : > { %v2728_v7 = vsel %vm1533_vm4, %v2726_v5, -inf }
 0xead   : > { %2729 = vmax.xlane.f32.xlu1 %v2728_v7  ;;  %v2722_v8 = vpop.f32.mrf.mxu0 }
 0xeae   : > { %v2727_v9 = vmul.f32 0.35355338, %v2722_v8 }
 0xeaf   : > { %v4258_v10 = vpop.f32.mrf.mxu0 }
 0xeb0   : > { %v2731_v11 = vsel %vm1537_vm5, %v2727_v9, -inf }
 0xeb1   : > { %2732 = vmax.xlane.f32.xlu0 %v2731_v11  ;;  %v2854_v12 = vpop.f32.mrf.mxu0 }
 0xeb2   : > { %v2861_v13 = vmul.f32 0.35355338, %v2854_v12 }
 0xeb3   : > { %v4269_v14 = vpop.f32.mrf.mxu0 }
 0xeb4   : > { %v2863_v15 = vsel %vm1533_vm4, %v2861_v13, -inf }
 0xeb5   : > { %2864 = vmax.xlane.f32.xlu1 %v2863_v15  ;;  %v2857_v16 = vpop.f32.mrf.mxu0 }
 0xeb6   : > { %v2862_v22 = vmul.f32 0.35355338, %v2857_v16 }
 0xeb7   : > { %v4270_v17 = vpop.f32.mrf.mxu0 }
 0xeb8   : > { %v2866_v18 = vsel %vm1537_vm5, %v2862_v22, -inf }
 0xeb9   : > { %2867 = vmax.xlane.f32.xlu0 %v2866_v18 }
 0xec6   : > { %2489 = vrot.lane.b32.xlu1 %v5121_v38, %s5479_s9 }
 0xf26   : > { %v2468_v21 = vpop.xlane.xlu0 %2467 }
 0xf27   : > { %v2472_v19 = vsub.f32 %v2464_v52, %v2468_v21 }
 0xf29   : > { %v2474_v20 = vmul.f32 1.442695, %v2472_v19 }
 0xf2a   : > { %v2471_v23 = vpop.xlane.xlu1 %2470 }
 0xf2b   : > { %4507 = vpow2.f32 %v2474_v20  ;;  %v2473_v31 = vsub.f32 %v2465_v56, %v2471_v23 }
 0xf2d   : > { %v2476_v24 = vmul.f32 1.442695, %v2473_v31 }
 0xf2e   : > { %v2595_v25 = vpop.xlane.xlu0 %2594 }
 0xf2f   : > { %4509 = vpow2.f32 %v2476_v24  ;;  %v2599_v26 = vsub.f32 %v2591_v60, %v2595_v25 }
 0xf31   : > { %v2601_v29 = vmul.f32 1.442695, %v2599_v26 }
 0xf32   : > { %v2598_v30 = vpop.xlane.xlu0 %2597 }
 0xf33   : > { %4511 = vpow2.f32 %v2601_v29  ;;  %v2600_v32 = vsub.f32 %v2592_v1, %v2598_v30 }
 0xf35   : > { %v2603_v33 = vmul.f32 1.442695, %v2600_v32 }
 0xf36   : > { %v2730_v34 = vpop.xlane.xlu1 %2729 }
 0xf37   : > { %4513 = vpow2.f32 %v2603_v33  ;;  %v2734_v35 = vsub.f32 %v2726_v5, %v2730_v34 }
 0xf38   : > { %v4508_v36 = vpop.eup %4507 }
 0xf39   : > { %v2736_v37 = vmul.f32 1.442695, %v2734_v35  ;;  %v2478_v39 = vsel %vm1533_vm4, %v4508_v36, 0.0 }
 0xf3a   : > { %v2733_v40 = vpop.xlane.xlu0 %2732  ;;  %2479 = vadd.xlane.f32.xlu1 %v2478_v39 }
 0xf3b   : > { %4515 = vpow2.f32 %v2736_v37  ;;  %v2735_v41 = vsub.f32 %v2727_v9, %v2733_v40 }
 0xf3c   : > { %v4510_v42 = vpop.eup %4509 }
 0xf3d   : > { %v2738_v43 = vmul.f32 1.442695, %v2735_v41  ;;  %v2481_v44 = vsel %vm1537_vm5, %v4510_v42, 0.0 }
 0xf3e   : > { %v2865_v45 = vpop.xlane.xlu1 %2864  ;;  %2482 = vadd.xlane.f32.xlu0 %v2481_v44 }
 0xf3f   : > { %4517 = vpow2.f32 %v2738_v43  ;;  %v2869_v46 = vsub.f32 %v2861_v13, %v2865_v45 }
 0xf40   : > { %v4512_v47 = vpop.eup %4511 }
 0xf41   : > { %v2871_v48 = vmul.f32 1.442695, %v2869_v46  ;;  %v2605_v50 = vsel %vm1533_vm4, %v4512_v47, 0.0 }
 0xf42   : > { %2606 = vadd.xlane.f32.xlu1 %v2605_v50  ;;  %v2490_v51 = vpop.permute.xlu1 %2489  ;;  %v2868_v52 = vpop.xlane.xlu0 %2867 }
 0xf43   : > { %4519 = vpow2.f32 %v2871_v48  ;;  %v2495_v53 = vand.u32 %v2490_v51, %v4948_v49  ;;  %v2870_v54 = vsub.f32 %v2862_v22, %v2868_v52  ;;  %v4447_v48 = vld [vmem:[%s5468_s12 + $0x18] sm:$0xff]   ;;  %v4448_v51 = vld [vmem:[%s5468_s12 + $0x10] sm:$0xff]  }
 0xf44   : > { %v4514_v55 = vpop.eup %4513  ;;  %4278 = vmatpush3.bf16.msra.mxu0 %v4447_v48  ;;  %v3942_v48 = vld [vmem:[%s5405_s14 + $0x1] ss:$0 sm:$0xff] }
 0xf45   : > { %v2873_v56 = vmul.f32 1.442695, %v2870_v54  ;;  %4236 = vmatpush3.bf16.msra.mxu1 %v2495_v53  ;;  %v2608_v57 = vsel %vm1537_vm5, %v4514_v55, 0.0  ;;  %4279 = vmatprep.subr.bf16.mxu0 %v4563_v62 }
 0xf46   : > { %2609 = vadd.xlane.f32.xlu0 %v2608_v57  ;;  %4247 = vmatprep.subr.bf16.mxu1 %v4563_v62 }
 0xf47   : > { %4521 = vpow2.f32 %v2873_v56 }
 0xf48   : > { %v4516_v58 = vpop.eup %4515  ;;  %4280 = vmatpush3.bf16.msra.mxu0 %v4448_v51 }
 0xf49   : > { %v2740_v59 = vsel %vm1533_vm4, %v4516_v58, 0.0  ;;  %4293 = vmatprep.subr.bf16.mxu0 %v4563_v62 }
 0xf4a   : > { %2741 = vadd.xlane.f32.xlu1 %v2740_v59 }
 0xf4c   : > { %v4518_v60 = vpop.eup %4517 }
 0xf4d   : > { %v2743_v61 = vsel %vm1537_vm5, %v4518_v60, 0.0 }
 0xf4e   : > { %2744 = vadd.xlane.f32.xlu0 %v2743_v61 }
 0xf50   : > { %v4520_v63 = vpop.eup %4519 }
 0xf51   : > { %v2875_v0 = vsel %vm1533_vm4, %v4520_v63, 0.0 }
 0xf52   : > { %2876 = vadd.xlane.f32.xlu1 %v2875_v0 }
 0xf54   : > { %v4522_v1 = vpop.eup %4521 }
 0xf55   : > { %v2878_v2 = vsel %vm1537_vm5, %v4522_v1, 0.0 }
 0xf56   : > { %2879 = vadd.xlane.f32.xlu0 %v2878_v2 }
 0xf63   : > { %2751 = vrot.lane.b32.xlu1 %v5121_v38, %s5480_s10  ;;  %s5484_s10 = smov 16  }
 0xf67   : > { %2886 = vrot.lane.b32.xlu1 %v5121_v38, %s5481_s29  ;;  %s5486_s29 = sld [smem:[#allocation5_spill]] }
 0xf6c   : > { %2616 = vrot.lane.b32.xlu0 %v5121_v38, %s5482_s7 }
 0xfc3   : > { %v2480_v3 = vpop.xlane.xlu1 %2479 }
 0xfc4   : > { %4523 = vrcp.f32 %v2480_v3 }
 0xfc7   : > { %v2483_v4 = vpop.xlane.xlu0 %2482 }
 0xfc8   : > { %4525 = vrcp.f32 %v2483_v4  ;;  %v3929_v4 = vld [vmem:[%s5469_s4 + $0x1] ss:$0 sm:$0xff] }
 0xfcb   : > { %v2607_v6 = vpop.xlane.xlu1 %2606 }
 0xfcf   : > { %v2610_v5 = vpop.xlane.xlu0 %2609 }
 0xfd0   : > { %4527 = vrcp.f32 %v2610_v5 }
 0xfd1   : > { %v4524_v7 = vpop.eup %4523  ;;  %4529 = vrcp.f32 %v2607_v6 }
 0xfd2   : > { %v2486_v9 = vmul.f32 %v4524_v7, %v4508_v36 }
 0xfd3   : > { %v2742_v13 = vpop.xlane.xlu1 %2741 }
 0xfd5   : > { %v4526_v8 = vpop.eup %4525 }
 0xfd6   : > { %v2487_v10 = vmul.f32 %v4526_v8, %v4510_v42 }
 0xfd7   : > { %v2745_v11 = vpop.xlane.xlu0 %2744 }
 0xfd8   : > { %v2488_v12 = vpack.c.bf16 %v2487_v10, %v2486_v9  ;;  %4531 = vrcp.f32 %v2745_v11 }
 0xfd9   : > { %4533 = vrcp.f32 %v2742_v13 }
 0xfda   : > { %4238 = vmatmul.mubr.msk.bf16.vlgmr.msra.gmra.mxu1 %vm1533_vm4, %v2488_v12 }
 0xfdb   : > { %4249 = vmatprep.mubr.msk.bf16.mxu1 %vm4564_vm0, %v4563_v62  ;;  %v2877_v38 = vpop.xlane.xlu1 %2876 }
 0xfdd   : > { %v4528_v15 = vpop.eup %4527 }
 0xfde   : > { %v4530_v16 = vpop.eup %4529  ;;  %v2614_v17 = vmul.f32 %v4528_v15, %v4514_v55 }
 0xfdf   : > { %v2880_v14 = vpop.xlane.xlu0 %2879  ;;  %v2752_v21 = vpop.permute.xlu1 %2751  ;;  %v2613_v19 = vmul.f32 %v4530_v16, %v4512_v47 }
 0xfe0   : > { %4535 = vrcp.f32 %v2880_v14  ;;  %v2757_v31 = vand.u32 %v2752_v21, %v4948_v49 }
 0xfe1   : > { %4537 = vrcp.f32 %v2877_v38  ;;  %v2615_v20 = vpack.c.bf16 %v2614_v17, %v2613_v19 }
 0xfe3   : > { %v2617_v22 = vpop.permute.xlu0 %2616  ;;  %v2887_v26 = vpop.permute.xlu1 %2886 }
 0xfe4   : > { %v2622_v18 = vand.u32 %v2617_v22, %v4948_v49  ;;  %v2892_v33 = vand.u32 %v2887_v26, %v4948_v49 }
 0xfe5   : > { %v4532_v23 = vpop.eup %4531 }
 0xfe6   : > { %4248 = vmatpush3.bf16.msra.mxu1 %v2622_v18  ;;  %v4534_v24 = vpop.eup %4533  ;;  %v2749_v25 = vmul.f32 %v4532_v23, %v4518_v60  ;;  %v4450_v23 = vld [vmem:[%s5404_s13 + $0x10] sm:$0xff]  }
 0xfe7   : > { %4259 = vmatprep.subr.bf16.mxu1 %v4563_v62  ;;  %v2748_v29 = vmul.f32 %v4534_v24, %v4516_v58 }
 0xfe9   : > { %4250 = vmatmul.mubr.msk.bf16.vlgmr.msra.gmra.mxu1 %vm1533_vm4, %v2615_v20  ;;  %v2750_v30 = vpack.c.bf16 %v2749_v25, %v2748_v29 }
 0xfea   : > { %4260 = vmatpush3.bf16.msra.mxu1 %v2757_v31  ;;  %4261 = vmatprep.mubr.msk.bf16.mxu1 %vm4564_vm0, %v4563_v62  ;;  %v4451_v31 = vld [vmem:[%s5406_s15 + $0x38] sm:$0xff]  }
 0xfeb   : > { %4271 = vmatprep.subr.bf16.mxu1 %v4563_v62 }
 0xfed   : > { %v4536_v32 = vpop.eup %4535 }
 0xfee   : > { %v4538_v34 = vpop.eup %4537  ;;  %v2884_v35 = vmul.f32 %v4536_v32, %v4522_v1 }
 0xfef   : > { %v2883_v36 = vmul.f32 %v4538_v34, %v4520_v63 }
 0xff1   : > { %4262 = vmatmul.mubr.msk.bf16.vlgmr.msra.gmra.mxu1 %vm1533_vm4, %v2750_v30  ;;  %v2885_v37 = vpack.c.bf16 %v2884_v35, %v2883_v36  ;;  %v3935_v35 = vld [vmem:[%s5470_s11 + $0x1] ss:$0 sm:$0xff] }
 0xff2   : > { %4272 = vmatpush3.bf16.msra.mxu1 %v2892_v33  ;;  %4273 = vmatprep.mubr.msk.bf16.mxu1 %vm4564_vm0, %v4563_v62 }
 0xff3   : > { %4285 = vmatprep.subr.bf16.mxu1 %v4563_v62 }
 0xff9   : > { %4274 = vmatmul.mubr.msk.bf16.vlgmr.msra.gmra.mxu1 %vm1533_vm4, %v2885_v37 }
 0xffa   : > { %4289 = vmatprep.mubr.msk.bf16.mxu1 %vm4564_vm0, %v4563_v62 }
0x109a   : > { %v2531_v39 = vpop.f32.mrf.mxu1 }
0x109b   : > { %2538 = vst.msk [vmem:[#allocation3] sm:$0xff] %vm1483_vm3, %v2531_v39  ;;  %vm3465_vm3 = vcmask 67584  }
0x109c   : > { %v4239_v40 = vpop.f32.mrf.mxu1 }
0x109d   : > { %v3936_v40 = vld [vmem:[%s5471_s6 + $0x1] ss:$0 sm:$0xff] }
0x109e   : > { %v2534_v41 = vpop.f32.mrf.mxu1 }
0x109f   : > { %2539 = vst.msk [vmem:[#allocation3 + $0x8] sm:$0x1] %vm1612_vm8, %v2534_v41 }
0x10a0   : > { %v4240_v42 = vpop.f32.mrf.mxu1 }
0x10a9   : > { %v2658_v43 = vpop.f32.mrf.mxu1 }
0x10aa   : > { %2667 = vrot.lane.b32.xlu0 %v2658_v43, %s5483_s3 }
0x10ab   : > { %v4251_v44 = vpop.f32.mrf.mxu1 }
0x10ad   : > { %v2661_v45 = vpop.f32.mrf.mxu1 }
0x10ae   : > { %2669 = vrot.lane.b32.xlu1 %v2661_v45, %s5483_s3  ;;  %s5485_s3 = smov 24   ;;  %v4452_v45 = vld [vmem:[%s5406_s15 + $0x30] sm:$0xff]  }
0x10af   : > { %v4252_v46 = vpop.f32.mrf.mxu1 }
0x10b0   : > { %v4453_v46 = vld [vmem:[%s5406_s15 + $0x28] sm:$0xff]  }
0x10b1   : > { %v2793_v47 = vpop.f32.mrf.mxu1 }
0x10b2   : > { %2802 = vrot.lane.b32.xlu0 %v2793_v47, %s5484_s10  ;;  %v4454_v47 = vld [vmem:[%s5406_s15 + $0x20] sm:$0xff]  }
0x10b3   : > { %v4263_v50 = vpop.f32.mrf.mxu1 }
0x10b5   : > { %v2796_v52 = vpop.f32.mrf.mxu1 }
0x10b6   : > { %2804 = vrot.lane.b32.xlu1 %v2796_v52, %s5484_s10 }
0x10b7   : > { %v4264_v53 = vpop.f32.mrf.mxu1 }
0x10b9   : > { %v2928_v54 = vpop.f32.mrf.mxu1 }
0x10ba   : > { %2937 = vrot.lane.b32.xlu0 %v2928_v54, %s5485_s3 }
0x10bb   : > { %v4275_v55 = vpop.f32.mrf.mxu1 }
0x10bd   : > { %v2931_v56 = vpop.f32.mrf.mxu1 }
0x10be   : > { %2939 = vrot.lane.b32.xlu1 %v2931_v56, %s5485_s3  ;;  %s5300_s3 = sshll.u32 %s5489_s5, 2 }
0x10bf   : > { %v4276_v57 = vpop.f32.mrf.mxu1  ;;  %s869_s7 = scalar_lea.vmem %s5486_s29, %s5300_s3  ;;  %s873_s29 = scalar_lea.vmem %s5487_s1, %s5300_s3 }
0x10c0   : > { %s877_s2 = scalar_lea.vmem %s5419_s28, %s5300_s3 }
0x111c   : > { %v2668_v58 = vpop.permute.xlu0 %2667 }
0x111d   : > { %2673 = vst.msk [vmem:[#allocation3] sm:$0xff] %vm1747_vm9, %v2668_v58 }
0x1120   : > { %v2670_v59 = vpop.permute.xlu1 %2669 }
0x1121   : > { %2674 = vst.msk [vmem:[#allocation3 + $0x8] sm:$0x1] %vm1749_vm10, %v2670_v59  ;;  %v3955_v59 = vld [vmem:[%s5407_s16 + $0x1] ss:$0 sm:$0xff] }
0x1124   : > { %v2803_v60 = vpop.permute.xlu0 %2802 }
0x1125   : > { %2808 = vst.msk [vmem:[#allocation3] sm:$0xff] %vm1884_vm11, %v2803_v60 }
0x1128   : > { %v2805_v61 = vpop.permute.xlu1 %2804 }
0x1129   : > { %2809 = vst.msk [vmem:[#allocation3 + $0x8] sm:$0x1] %vm1886_vm12, %v2805_v61 }
0x112c   : > { %v2938_v63 = vpop.permute.xlu0 %2937 }
0x112d   : > { %2943 = vst.msk [vmem:[#allocation3] sm:$0xff] %vm2021_vm13, %v2938_v63 }
0x1130   : > { %v2940_v0 = vpop.permute.xlu1 %2939 }
0x1131   : > { %2944 = vst.msk [vmem:[#allocation3 + $0x8] sm:$0x1] %vm2023_vm14, %v2940_v0 }
0x1134   : > { %v2945_v1 = vld [vmem:[#allocation3] sm:$0xff] }
0x1138   : > { %v2946_v2 = vld [vmem:[#allocation3 + $0x8] sm:$0x1] }
0x1139   : > { %v2947_v3 = vpack.c.bf16 %v2946_v2, %v2945_v1 }
0x113b   : > { %4282 = vmatmul.mubr.msk.bf16.vlgmr.msra.gmra.mxu0 %vm1404_vm2, %v2947_v3 }
0x113c   : > { %4301 = vmatprep.mubr.msk.bf16.mxu0 %vm4564_vm0, %v4563_v62  ;;  %4294 = vmatpush3.bf16.msra.mxu0 %v4451_v31  ;;  %v3963_v31 = vld [vmem:[%s5408_s17 + $0x1] ss:$0 sm:$0xff] }
0x113d   : > { %4295 = vmatprep.subr.bf16.mxu0 %v4563_v62 }
0x1140   : > { %4296 = vmatpush3.bf16.msra.mxu0 %v4452_v45 }
0x1141   : > { %4297 = vmatprep.subr.bf16.mxu0 %v4563_v62 }
0x1144   : > { %4298 = vmatpush3.bf16.msra.mxu0 %v4453_v46 }
0x1145   : > { %4299 = vmatprep.subr.bf16.mxu0 %v4563_v62 }
0x1148   : > { %4300 = vmatpush3.bf16.msra.mxu0 %v4454_v47 }
0x1149   : > { %4323 = vmatprep.subr.bf16.mxu0 %v4563_v62 }
0x11fb   : > { %v3010_v5 = vpop.f32.mrf.mxu0 }
0x11fc   : > { %v3011_v6 = vadd.f32 %v3929_v4, %v3010_v5 }
0x11fd   : > { %v4283_v7 = vpop.f32.mrf.mxu0 }
0x11fe   : > { %v3017_v8 = vadd.f32 %v3011_v6, %v5109_v27 }
0x11ff   : > { %v3013_v9 = vpop.f32.mrf.mxu0 }
0x1200   : > { %v3014_v10 = vadd.f32 %v3929_v4, %v3013_v9  ;;  %v3023_v11 = vsel %vm1404_vm2, %v3017_v8, 0.0 }
0x1201   : > { %3024 = vadd.xlane.f32.xlu0 %v3023_v11  ;;  %v4284_v12 = vpop.f32.mrf.mxu0 }
0x1202   : > { %v3018_v13 = vadd.f32 %v3014_v10, %v5111_v28  ;;  %v4449_v28 = vld [vmem:[%s5404_s13 + $0x18] sm:$0xff]  }
0x1203   : > { %4286 = vmatpush3.bf16.msra.mxu1 %v4449_v28 }
0x1204   : > { %v3026_v38 = vsel %vm1407_vm1, %v3018_v13, 0.0  ;;  %4287 = vmatprep.subr.bf16.mxu1 %v4563_v62 }
0x1205   : > { %3027 = vadd.xlane.f32.xlu1 %v3026_v38 }
0x1207   : > { %4288 = vmatpush3.bf16.msra.mxu1 %v4450_v23 }
0x1208   : > { %4305 = vmatprep.subr.bf16.mxu1 %v4563_v62 }
0x128a   : > { %v3025_v14 = vpop.xlane.xlu0 %3024 }
0x128b   : > { %v3029_v15 = vmul.f32 0.03125, %v3025_v14 }
0x128d   : > { %v3031_v16 = vsub.f32 %v3017_v8, %v3029_v15 }
0x128e   : > { %v3028_v22 = vpop.xlane.xlu1 %3027 }
0x128f   : > { %v3030_v17 = vmul.f32 0.03125, %v3028_v22  ;;  %v3033_v18 = vmul.f32 %v3031_v16, %v3031_v16  ;;  %v4456_v22 = vld [vmem:[%s5410_s19] sm:$0xff]  }
0x1291   : > { %v3032_v21 = vsub.f32 %v3018_v13, %v3030_v17  ;;  %v3035_v27 = vsel %vm1404_vm2, %v3033_v18, 0.0 }
0x1292   : > { %3036 = vadd.xlane.f32.xlu0 %v3035_v27 }
0x1293   : > { %v3034_v19 = vmul.f32 %v3032_v21, %v3032_v21 }
0x1295   : > { %v3038_v20 = vsel %vm1407_vm1, %v3034_v19, 0.0 }
0x1296   : > { %3039 = vadd.xlane.f32.xlu0 %v3038_v20 }
0x131b   : > { %v3037_v24 = vpop.xlane.xlu0 %3036 }
0x131c   : > { %v3041_v25 = vmul.f32 0.03125, %v3037_v24 }
0x131e   : > { %v3043_v26 = vadd.f32 1e-05, %v3041_v25 }
0x131f   : > { %v3040_v29 = vpop.xlane.xlu0 %3039 }
0x1320   : > { %4539 = vrsqrt.f32 %v3043_v26  ;;  %v3042_v30 = vmul.f32 0.03125, %v3040_v29  ;;  %v3964_v29 = vld [vmem:[%s5409_s18 + $0x1] ss:$0 sm:$0xff] }
0x1322   : > { %v3044_v32 = vadd.f32 1e-05, %v3042_v30 }
0x1324   : > { %4541 = vrsqrt.f32 %v3044_v32 }
0x132d   : > { %v4540_v33 = vpop.eup %4539 }
0x132e   : > { %v3047_v34 = vmul.f32 %v4540_v33, %v3031_v16  ;;  %v4455_v16 = vld [vmem:[%s5410_s19 + $0x8] sm:$0xff]  }
0x1330   : > { %v3055_v39 = vmul.f32 %v3935_v35, %v3047_v34  ;;  %v4457_v34 = vld [vmem:[%s5412_s21 + $0x10] sm:$0xff]  }
0x1331   : > { %v4542_v36 = vpop.eup %4541 }
0x1332   : > { %v3048_v37 = vmul.f32 %v4542_v36, %v3032_v21  ;;  %v3063_v42 = vadd.f32 %v3936_v40, %v3055_v39  ;;  %v4458_v36 = vld [vmem:[%s5412_s21 + $0x8] sm:$0xff]   ;;  %v3339_v39 = vld [vmem:[%s869_s7] sm:$0x7] }
0x1334   : > { %v3056_v41 = vmul.f32 %v3935_v35, %v3048_v37  ;;  %v4459_v37 = vld [vmem:[%s5412_s21] sm:$0xff]  }
0x1336   : > { %v3064_v43 = vadd.f32 %v3936_v40, %v3056_v41  ;;  %v3340_v40 = vpack.c.bf16 %v3339_v39, %v3339_v39 }
0x1338   : > { %v3065_v44 = vpack.c.bf16 %v3064_v43, %v3063_v42 }
0x133a   : > { %4290 = vmatmul.mubr.msk.bf16.vlgmr.msra.gmra.mxu1 %vm1404_vm2, %v3065_v44 }
0x133b   : > { %4309 = vmatprep.mubr.msk.bf16.mxu1 %vm4564_vm0, %v4563_v62  ;;  %4306 = vmatpush3.bf16.msra.mxu1 %v4455_v16 }
0x133c   : > { %4307 = vmatprep.subr.bf16.mxu1 %v4563_v62 }
0x133f   : > { %4308 = vmatpush3.bf16.msra.mxu1 %v4456_v22 }
0x1340   : > { %4313 = vmatprep.subr.bf16.mxu1 %v4563_v62 }
0x13fa   : > { %v3128_v50 = vpop.f32.mrf.mxu1 }
0x13fb   : > { %v3129_v52 = vadd.f32 %v3942_v48, %v3128_v50 }
0x13fc   : > { %v4291_v51 = vpop.f32.mrf.mxu1 }
0x13fd   : > { %v3135_v56 = vmax.f32 %v3129_v52, 0.0  ;;  %v3969_v51 = vld [vmem:[%s5413_s22] ss:$0 sm:$0xff] }
0x13fe   : > { %v3131_v53 = vpop.f32.mrf.mxu1 }
0x13ff   : > { %v3132_v54 = vadd.f32 %v3942_v48, %v3131_v53 }
0x1400   : > { %v4292_v55 = vpop.f32.mrf.mxu1 }
0x1401   : > { %v3136_v57 = vmax.f32 %v3132_v54, 0.0 }
0x1403   : > { %v3137_v58 = vpack.c.bf16 %v3136_v57, %v3135_v56 }
0x1405   : > { %4302 = vmatmul.mubr.msk.bf16.vlgmr.msra.gmra.mxu0 %vm2252_vm15, %v3137_v58 }
0x1406   : > { %4325 = vmatprep.mubr.msk.bf16.mxu0 %vm4564_vm0, %v4563_v62 }
0x14c5   : > { %v3216_v60 = vpop.f32.mrf.mxu0 }
0x14c6   : > { %v3217_v61 = vadd.f32 %v3955_v59, %v3216_v60 }
0x14c7   : > { %v4303_v63 = vpop.f32.mrf.mxu0 }
0x14c8   : > { %v3223_v0 = vadd.f32 %v3217_v61, %v3063_v42  ;;  %v3965_v42 = vld [vmem:[%s5411_s20] ss:$0 sm:$0xff] }
0x14c9   : > { %v3219_v1 = vpop.f32.mrf.mxu0 }
0x14ca   : > { %v3220_v2 = vadd.f32 %v3955_v59, %v3219_v1  ;;  %v3229_v3 = vsel %vm1404_vm2, %v3223_v0, 0.0 }
0x14cb   : > { %3230 = vadd.xlane.f32.xlu1 %v3229_v3  ;;  %v4304_v4 = vpop.f32.mrf.mxu0 }
0x14cc   : > { %v3224_v5 = vadd.f32 %v3220_v2, %v3064_v43 }
0x14ce   : > { %v3232_v6 = vsel %vm1407_vm1, %v3224_v5, 0.0 }
0x14cf   : > { %3233 = vadd.xlane.f32.xlu0 %v3232_v6 }
0x1554   : > { %v3231_v7 = vpop.xlane.xlu1 %3230 }
0x1555   : > { %v3235_v8 = vmul.f32 0.03125, %v3231_v7 }
0x1557   : > { %v3237_v9 = vsub.f32 %v3223_v0, %v3235_v8  ;;  %v4460_v8 = vld [vmem:[%s5415_s24 + $0x10] sm:$0xff]  }
0x1558   : > { %v3234_v10 = vpop.xlane.xlu0 %3233 }
0x1559   : > { %v3236_v11 = vmul.f32 0.03125, %v3234_v10  ;;  %v3239_v12 = vmul.f32 %v3237_v9, %v3237_v9 }
0x155b   : > { %v3238_v13 = vsub.f32 %v3224_v5, %v3236_v11  ;;  %v3241_v38 = vsel %vm1404_vm2, %v3239_v12, 0.0 }
0x155c   : > { %3242 = vadd.xlane.f32.xlu1 %v3241_v38 }
0x155d   : > { %v3240_v14 = vmul.f32 %v3238_v13, %v3238_v13 }
0x155f   : > { %v3244_v15 = vsel %vm1407_vm1, %v3240_v14, 0.0  ;;  %vm3372_vm1 = vcmask 392192   ;;  %v4464_v14 = vld [vmem:[%s5414_s23] sm:$0xff]  }
0x1560   : > { %3245 = vadd.xlane.f32.xlu0 %v3244_v15 }
0x15e5   : > { %v3243_v17 = vpop.xlane.xlu1 %3242 }
0x15e6   : > { %v3247_v18 = vmul.f32 0.03125, %v3243_v17 }
0x15e8   : > { %v3249_v21 = vadd.f32 1e-05, %v3247_v18 }
0x15e9   : > { %v3246_v27 = vpop.xlane.xlu0 %3245 }
0x15ea   : > { %4543 = vrsqrt.f32 %v3249_v21  ;;  %v3248_v19 = vmul.f32 0.03125, %v3246_v27 }
0x15ec   : > { %v3250_v20 = vadd.f32 1e-05, %v3248_v19 }
0x15ee   : > { %4545 = vrsqrt.f32 %v3250_v20 }
0x15f7   : > { %v4544_v28 = vpop.eup %4543 }
0x15f8   : > { %v3253_v23 = vmul.f32 %v4544_v28, %v3237_v9  ;;  %v4461_v9 = vld [vmem:[%s5415_s24 + $0x8] sm:$0xff]  }
0x15f9   : > { %v4465_v28 = vld [vmem:[%s5417_s26 + $0x8] sm:$0xff]  }
0x15fa   : > { %v3261_v26 = vmul.f32 %v3963_v31, %v3253_v23  ;;  %v4466_v23 = vld [vmem:[%s5417_s26] sm:$0xff]  }
0x15fb   : > { %v4546_v24 = vpop.eup %4545 }
0x15fc   : > { %v3254_v25 = vmul.f32 %v4546_v24, %v3238_v13  ;;  %v3269_v32 = vadd.f32 %v3964_v29, %v3261_v26  ;;  %v4462_v13 = vld [vmem:[%s5414_s23 + $0x8] sm:$0xff]   ;;  %v3983_v24 = vld [vmem:[%s5416_s25] ss:$0 sm:$0xff] }
0x15fe   : > { %v3262_v30 = vmul.f32 %v3963_v31, %v3254_v25 }
0x1600   : > { %v3270_v33 = vadd.f32 %v3964_v29, %v3262_v30 }
0x1602   : > { %v3271_v35 = vpack.c.bf16 %v3270_v33, %v3269_v32 }
0x1604   : > { %4310 = vmatmul.mubr.msk.bf16.vlgmr.msra.gmra.mxu1 %vm1404_vm2, %v3271_v35 }
0x1605   : > { %4314 = vmatpush3.bf16.msra.mxu1 %v4457_v34  ;;  %4319 = vmatprep.mubr.msk.bf16.mxu1 %vm4564_vm0, %v4563_v62 }
0x1606   : > { %4315 = vmatprep.subr.bf16.mxu1 %v4563_v62 }
0x1609   : > { %4316 = vmatpush3.bf16.msra.mxu1 %v4458_v36  ;;  %v3727_v36 = vld [vmem:[%s873_s29] sm:$0x7] }
0x160a   : > { %4317 = vmatprep.subr.bf16.mxu1 %v4563_v62 }
0x160d   : > { %4318 = vmatpush3.bf16.msra.mxu1 %v4459_v37 }
0x160e   : > { %4329 = vmatprep.subr.bf16.mxu1 %v4563_v62 }
0x1610   : > { %4320 = vmatmul.mubr.msk.bf16.vlgmr.msra.gmra.mxu1 %vm3372_vm1, %v3340_v40 }
0x1611   : > { %4331 = vmatprep.mubr.msk.bf16.mxu1 %vm4564_vm0, %v4563_v62 }
0x16c4   : > { %v3332_v41 = vpop.f32.mrf.mxu1 }
0x16c5   : > { %v3333_v45 = vadd.f32 %v3965_v42, %v3332_v41 }
0x16c6   : > { %v4311_v43 = vpop.f32.mrf.mxu1 }
0x16c8   : > { %v3335_v44 = vpop.f32.mrf.mxu1 }
0x16c9   : > { %v3336_v46 = vadd.f32 %v3965_v42, %v3335_v44 }
0x16ca   : > { %v4312_v47 = vpop.f32.mrf.mxu1 }
0x16cb   : > { %v3417_v48 = vpack.c.bf16 %v3336_v46, %v3333_v45 }
0x16cd   : > { %v3422_v50 = vsel %vm2252_vm15, %v3417_v48, 0 }
0x16ce   : > { %4324 = vmatpush3.bf16.xpose.msra.mxu0 %v3422_v50 }
0x16cf   : > { %4335 = vmatprep.subr.bf16.mxu0 %v4563_v62 }
0x16d0   : > { %v3410_v52 = vpop.f32.mrf.mxu1 }
0x16d1   : > { %v3411_v53 = vadd.f32 %v3969_v51, %v3410_v52 }
0x16d2   : > { %v4321_v54 = vpop.f32.mrf.mxu1 }
0x16d3   : > { %v3416_v55 = vpack.c.bf16 %v3411_v53, %v3411_v53 }
0x16d4   : > { %v3413_v56 = vpop.f32.mrf.mxu1 }
0x16d5   : > { %4326 = vmatmul.mubr.msk.bf16.vlgmr.msra.gmra.mxu0 %vm2252_vm15, %v3416_v55 }
0x16d6   : > { %v4322_v57 = vpop.f32.mrf.mxu1  ;;  %4341 = vmatprep.mubr.msk.bf16.mxu0 %vm4564_vm0, %v4563_v62  ;;  %4336 = vmatpush3.bf16.msra.mxu0 %v4460_v8 }
0x16d7   : > { %4337 = vmatprep.subr.bf16.mxu0 %v4563_v62 }
0x16da   : > { %4338 = vmatpush3.bf16.msra.mxu0 %v4461_v9 }
0x16db   : > { %4339 = vmatprep.subr.bf16.mxu0 %v4563_v62 }
0x1795   : > { %v3458_v58 = vpop.f32.mrf.mxu0 }
0x1796   : > { %v3464_v59 = vmul.f32 0.125, %v3458_v58 }
0x1797   : > { %v4327_v60 = vpop.f32.mrf.mxu0 }
0x1798   : > { %v3466_v61 = vsel %vm3465_vm3, %v3464_v59, -inf }
0x1799   : > { %3467 = vmax.xlane.f32.xlu1 %v3466_v61  ;;  %v3461_v63 = vpop.f32.mrf.mxu0 }
0x179b   : > { %v4328_v0 = vpop.f32.mrf.mxu0 }
0x17aa   : > { %3479 = vrot.lane.b32.xlu1 %v3417_v48, %s5479_s9 }
0x1822   : > { %v3468_v1 = vpop.xlane.xlu1 %3467 }
0x1823   : > { %v3469_v2 = vsub.f32 %v3464_v59, %v3468_v1 }
0x1825   : > { %v3470_v3 = vmul.f32 1.442695, %v3469_v2 }
0x1826   : > { %v3480_v4 = vpop.permute.xlu1 %3479 }
0x1827   : > { %4547 = vpow2.f32 %v3470_v3  ;;  %v3485_v5 = vand.u32 %v3480_v4, %v4948_v49  ;;  %v4463_v49 = vld [vmem:[%s5415_s24] sm:$0xff]  }
0x1828   : > { %4340 = vmatpush3.bf16.msra.mxu0 %v4463_v49 }
0x1829   : > { %4330 = vmatpush3.bf16.msra.mxu1 %v3485_v5  ;;  %4353 = vmatprep.subr.bf16.mxu0 %v4563_v62 }
0x182a   : > { %4345 = vmatprep.subr.bf16.mxu1 %v4563_v62 }
0x182b   : > { %4342 = vmatmul.mubr.msk.bf16.vlgmr.msra.gmra.mxu0 %vm3372_vm1, %v3340_v40 }
0x182c   : > { %4357 = vmatprep.mubr.msk.bf16.mxu0 %vm4564_vm0, %v4563_v62  ;;  %4354 = vmatpush3.bf16.msra.mxu0 %v4465_v28 }
0x182d   : > { %4355 = vmatprep.subr.bf16.mxu0 %v4563_v62 }
0x1830   : > { %4356 = vmatpush3.bf16.msra.mxu0 %v4466_v23 }
0x1834   : > { %v4548_v6 = vpop.eup %4547 }
0x1835   : > { %v3472_v7 = vsel %vm3465_vm3, %v4548_v6, 0.0 }
0x1836   : > { %3473 = vadd.xlane.f32.xlu0 %v3472_v7 }
0x18bf   : > { %v3474_v10 = vpop.xlane.xlu0 %3473 }
0x18c0   : > { %4549 = vrcp.f32 %v3474_v10 }
0x18cd   : > { %v4550_v11 = vpop.eup %4549 }
0x18ce   : > { %v3476_v12 = vmul.f32 %v4550_v11, %v4548_v6 }
0x18d0   : > { %v3477_v38 = vpack.c.bf16 %v3476_v12, %v3476_v12 }
0x18d2   : > { %4332 = vmatmul.mubr.msk.bf16.vlgmr.msra.gmra.mxu1 %vm1533_vm4, %v3477_v38 }
0x18d3   : > { %4346 = vmatpush3.bf16.msra.mxu1 %v4462_v13  ;;  %4349 = vmatprep.mubr.msk.bf16.mxu1 %vm4564_vm0, %v4563_v62  ;;  %vm3729_vm0 = vcmask 124928  }
0x18d4   : > { %4347 = vmatprep.subr.bf16.mxu1 %v4563_v62  ;;  %v3984_v62 = vld [vmem:[%s5418_s27] ss:$0 sm:$0xff] }
0x18d7   : > { %4348 = vmatpush3.bf16.msra.mxu1 %v4464_v14 }
0x18eb   : > { %v3590_v15 = vpop.f32.mrf.mxu0 }
0x18ed   : > { %v4343_v16 = vpop.f32.mrf.mxu0 }
0x18ef   : > { %v3593_v22 = vpop.f32.mrf.mxu0 }
0x18f1   : > { %v4344_v17 = vpop.f32.mrf.mxu0 }
0x1992   : > { %v3521_v18 = vpop.f32.mrf.mxu1 }
0x1993   : > { %v3527_v21 = vpack.c.bf16 %v3521_v18, %v3521_v18 }
0x1994   : > { %v4333_v27 = vpop.f32.mrf.mxu1 }
0x1995   : > { %4350 = vmatmul.mubr.msk.bf16.vlgmr.msra.gmra.mxu1 %vm1404_vm2, %v3527_v21 }
0x1996   : > { %v3524_v19 = vpop.f32.mrf.mxu1 }
0x1998   : > { %v4334_v20 = vpop.f32.mrf.mxu1 }
0x1a55   : > { %v3645_v31 = vpop.f32.mrf.mxu1 }
0x1a56   : > { %v3646_v25 = vadd.f32 %v3645_v31, %v3590_v15 }
0x1a57   : > { %v4351_v26 = vpop.f32.mrf.mxu1 }
0x1a58   : > { %v3658_v29 = vadd.f32 %v3983_v24, %v3646_v25 }
0x1a59   : > { %v3648_v30 = vpop.f32.mrf.mxu1 }
0x1a5a   : > { %v3659_v32 = vmax.f32 %v3658_v29, 0.0 }
0x1a5b   : > { %v4352_v33 = vpop.f32.mrf.mxu1 }
0x1a5c   : > { %v3660_v34 = vpack.c.bf16 %v3659_v32, %v3659_v32 }
0x1a5e   : > { %4358 = vmatmul.mubr.msk.bf16.vlgmr.msra.gmra.mxu0 %vm1404_vm2, %v3660_v34 }
0x1b1e   : > { %v3721_v35 = vpop.f32.mrf.mxu0 }
0x1b1f   : > { %v3722_v37 = vadd.f32 %v3984_v62, %v3721_v35 }
0x1b20   : > { %v4359_v39 = vpop.f32.mrf.mxu0 }
0x1b21   : > { %v3728_v40 = vadd.f32 %v3727_v36, %v3722_v37 }
0x1b22   : > { %v3724_v41 = vpop.f32.mrf.mxu0 }
0x1b23   : > { %v3730_v42 = vsel %vm3729_vm0, %v3728_v40, -inf }
0x1b24   : > { %3731 = vmax.xlane.f32.xlu0 %v3730_v42  ;;  %v4360_v43 = vpop.f32.mrf.mxu0 }
0x1bad   : > { %v3732_v44 = vpop.xlane.xlu0 %3731 }
0x1bae   : > { %v3733_v45 = vsub.f32 %v3728_v40, %v3732_v44 }
0x1bb0   : > { %v3734_v46 = vmul.f32 1.442695, %v3733_v45 }
0x1bb2   : > { %4551 = vpow2.f32 %v3734_v46 }
0x1bbf   : > { %v4552_v47 = vpop.eup %4551 }
0x1bc0   : > { %v3736_v48 = vsel %vm3729_vm0, %v4552_v47, 0.0 }
0x1bc1   : > { %3737 = vadd.xlane.f32.xlu0 %v3736_v48 }
0x1c4a   : > { %v3738_v50 = vpop.xlane.xlu0 %3737 }
0x1c4b   : > { %4553 = vrcp.f32 %v3738_v50 }
0x1c58   : > { %v4554_v51 = vpop.eup %4553 }
0x1c59   : > { %v3740_v52 = vmul.f32 %v4554_v51, %v4552_v47 }
0x1c5b   : > { %3741 = vst.msk [vmem:[%s877_s2] sm:$0x7] %vm3729_vm0, %v3740_v52 }
0x1c5c PF: > { %s38_s8 = sadd.s32 1, %s4561_s8  }
0x1c5d   : > { %p35_p4 = scmp.ge.s32.totalorder %s38_s8, 4  }
0x1c5f   :  { %37 = sbr.rel (!%p35_p4) target bundleno = 14 (0xe), region = 180 }

</bundles_post_ra>
